<compile_context>
chip_gen: v5e
topology: v5e:2x2
jax: 0.10.0
libtpu: 0.0.40
codegen_flags: <defaults>
</compile_context>

<pallas_src>
import jax
import jax.numpy as jnp
from jax.experimental import pallas as pl
from jax.experimental.pallas import tpu as pltpu

BN_EPS = 1e-5
COR_EPS = 1e-8
SQRT_2_OVER_PI = 0.7978845608028654
INV_SQRT_2PI = 0.3989422804014327


def monet_kernel(u0_ref, s0_ref, rho0_ref, w_ref, b_ref, gamma_ref, beta_ref,
                 u_ref, s_ref, rho_ref):
    """One MomentLayer per grid step; (u, s, rho) persist in the VMEM-resident
    output refs across the whole layer loop."""
    layer = pl.program_id(0)

    @pl.when(layer == 0)
    def _():
        u_ref[...] = u0_ref[...]
        s_ref[...] = s0_ref[...]
        rho_ref[...] = rho0_ref[...]

    u = u_ref[...]            # (N, P)
    s = s_ref[...]            # (N, P)
    rho = rho_ref[...]        # (N, P, P)
    w = w_ref[0]              # (P, P)  (out, in), zero-padded
    b = b_ref[0]              # (1, P)
    gamma = gamma_ref[0]      # (1, P)
    beta = beta_ref[0]        # (1, P)

    n, p, _ = rho.shape
    row = jax.lax.broadcasted_iota(jnp.int32, (n, p, p), 1)
    col = jax.lax.broadcasted_iota(jnp.int32, (n, p, p), 2)
    diag = row == col

    # --- Mnn_Linear_Corr covariance path:  cov' = W diag(s) rho diag(s) W^T ---
    # diag(s) folded into the weight: per-sample column scaling of W.
    ws = w[None, :, :] * s[:, None, :]                                # (N, P, P)
    c1 = jnp.einsum('noi,nij->noj', ws, rho,
                    preferred_element_type=jnp.float32)               # (N, P, P)
    cov = jnp.einsum('noj,npj->nop', c1, ws,
                     preferred_element_type=jnp.float32)              # (N, P, P)
    var = jnp.sum(jnp.where(diag, cov, 0.0), axis=2)                  # (N, P)
    sd = jnp.sqrt(jnp.maximum(var, 0.0))                              # (N, P)
    rho_lin = cov / (sd[:, :, None] * sd[:, None, :] + COR_EPS)
    rho_lin = jnp.where(diag, 1.0, rho_lin)

    # --- mean path: linear + BatchNorm1d (training-mode batch stats) ---
    # TODO(synk): Mnn_Linear_Corr source not provided; mean path modeled as a
    # standard affine linear layer, covariance path as W C W^T.
    u_lin = jnp.einsum('ni,oi->no', u, w,
                       preferred_element_type=jnp.float32) + b        # (N, P)
    mu = jnp.mean(u_lin, axis=0, keepdims=True)
    var_bn = jnp.mean((u_lin - mu) ** 2, axis=0, keepdims=True)
    inv = jax.lax.rsqrt(var_bn + BN_EPS)
    u_bn = gamma * (u_lin - mu) * inv + beta
    # TODO(synk): Mnn_Std_Bn1d source not provided; modeled (bias=False) as the
    # std rescaled by the same |gamma|/sqrt(var+eps) factor the mean-BN applies.
    s_bn = sd * jnp.abs(gamma) * inv

    # --- moment activations (mean / std) + linear-response gain ---
    # TODO(synk): exact Dawson-integral Mnn_Activate_{Mean,Std,Corr} unavailable;
    # Gaussian-ReLU moments (E[relu(X)], Std[relu(X)], X ~ N(u, s^2)) surrogate.
    z = jnp.clip(u_bn / (s_bn + 1e-6), -30.0, 30.0)
    big_phi = 0.5 * (1.0 + jnp.tanh(SQRT_2_OVER_PI * (z + 0.044715 * z * z * z)))
    small_phi = INV_SQRT_2PI * jnp.exp(-0.5 * z * z)
    u_act = u_bn * big_phi + s_bn * small_phi
    second_moment = (u_bn * u_bn + s_bn * s_bn) * big_phi + u_bn * s_bn * small_phi
    s_act = jnp.sqrt(jnp.maximum(second_moment - u_act * u_act, 0.0))
    g = big_phi * s_bn                   # chi * s  (linear-response gain)

    # --- correlation activation (linear-response surrogate) ---
    num = g[:, :, None] * g[:, None, :]
    den = s_act[:, :, None] * s_act[:, None, :] + COR_EPS
    rho_act = jnp.clip(rho_lin * num / den, -1.0, 1.0)
    rho_act = jnp.where(diag, 1.0, rho_act)

    u_ref[...] = u_act
    s_ref[...] = s_act
    rho_ref[...] = rho_act


def monet_forward(u0, s0, rho0, w_s, b_s, gamma_s, beta_s):
    """Fused forward over all layers: grid=(L,), state VMEM-resident."""
    num_layers, p, _ = w_s.shape
    n = u0.shape[0]
    f32 = jnp.float32
    return pl.pallas_call(
        monet_kernel,
        out_shape=(
            jax.ShapeDtypeStruct((n, p), f32),
            jax.ShapeDtypeStruct((n, p), f32),
            jax.ShapeDtypeStruct((n, p, p), f32),
        ),
        grid=(num_layers,),
        in_specs=[
            pl.BlockSpec((n, p), lambda l: (0, 0)),          # u0
            pl.BlockSpec((n, p), lambda l: (0, 0)),          # s0
            pl.BlockSpec((n, p, p), lambda l: (0, 0, 0)),    # rho0
            pl.BlockSpec((1, p, p), lambda l: (l, 0, 0)),    # W[l]
            pl.BlockSpec((1, 1, p), lambda l: (l, 0, 0)),    # b[l]
            pl.BlockSpec((1, 1, p), lambda l: (l, 0, 0)),    # gamma[l]
            pl.BlockSpec((1, 1, p), lambda l: (l, 0, 0)),    # beta[l]
        ],
        out_specs=(
            pl.BlockSpec((n, p), lambda l: (0, 0)),          # u  (resident)
            pl.BlockSpec((n, p), lambda l: (0, 0)),          # s  (resident)
            pl.BlockSpec((n, p, p), lambda l: (0, 0, 0)),    # rho (resident)
        ),
        compiler_params=pltpu.CompilerParams(
            dimension_semantics=("arbitrary",)),             # layers are sequential
    )(u0, s0, rho0, w_s, b_s, gamma_s, beta_s)


def init_monet_params(layer_sizes, pad, key):
    """Stacked, zero-padded per-layer parameters: W (L,P,P), b/gamma/beta (L,1,P)."""
    num_layers = len(layer_sizes) - 1
    w_s = jnp.zeros((num_layers, pad, pad), jnp.float32)
    b_s = jnp.zeros((num_layers, 1, pad), jnp.float32)
    g_s = jnp.zeros((num_layers, 1, pad), jnp.float32)
    be_s = jnp.zeros((num_layers, 1, pad), jnp.float32)
    for i in range(num_layers):
        din, dout = layer_sizes[i], layer_sizes[i + 1]
        key, kw, kb = jax.random.split(key, 3)
        bound = 1.0 / (din ** 0.5)
        w = jax.random.uniform(kw, (dout, din), jnp.float32, -bound, bound)
        b = jax.random.uniform(kb, (dout,), jnp.float32, -bound, bound)
        w_s = w_s.at[i, :dout, :din].set(w)
        b_s = b_s.at[i, 0, :dout].set(b)
        g_s = g_s.at[i, 0, :dout].set(2.5)   # bn_mean.weight
        be_s = be_s.at[i, 0, :dout].set(2.5)  # bn_mean.bias
    return w_s, b_s, g_s, be_s


if __name__ == "__main__":
    num_hidden_layers = 3
    hidden_layer_size = 32
    input_size = 2
    output_size = 1
    batch = 8

    layer_sizes = [input_size] + [hidden_layer_size] * num_hidden_layers + [output_size]
    # Pad feature dims to the max layer width, rounded up to a multiple of 8.
    PAD = -(-max(layer_sizes) // 8) * 8    # = 32

    key = jax.random.PRNGKey(0)
    ku, ks, kr, kp = jax.random.split(key, 4)
    u0 = jax.random.normal(ku, (batch, input_size), jnp.float32)
    s0 = jax.random.uniform(ks, (batch, input_size), jnp.float32, 0.5, 1.5)
    a = jax.random.normal(kr, (batch, input_size, input_size), jnp.float32)
    c = jnp.einsum('nij,nkj->nik', a, a) + 0.1 * jnp.eye(input_size)[None]
    dvec = jnp.sqrt(jnp.diagonal(c, axis1=1, axis2=2))
    rho0 = c / (dvec[:, :, None] * dvec[:, None, :])

    # Zero-pad features (padding is inert: padded weights / gammas / stds are 0).
    u_in = jnp.zeros((batch, PAD), jnp.float32).at[:, :input_size].set(u0)
    s_in = jnp.zeros((batch, PAD), jnp.float32).at[:, :input_size].set(s0)
    rho_in = jnp.zeros((batch, PAD, PAD), jnp.float32).at[:, :input_size, :input_size].set(rho0)

    w_s, b_s, g_s, be_s = init_monet_params(layer_sizes, PAD, kp)

    fwd = jax.jit(monet_forward)
    u_out, s_out, rho_out = fwd(u_in, s_in, rho_in, w_s, b_s, g_s, be_s)
    u_out = u_out[:, :output_size]
    s_out = s_out[:, :output_size]
    rho_out = rho_out[:, :output_size, :output_size]
    jax.block_until_ready((u_out, s_out, rho_out))

    assert u_out.shape == (batch, output_size)
    assert s_out.shape == (batch, output_size)
    assert rho_out.shape == (batch, output_size, output_size)
    assert bool(jnp.all(jnp.isfinite(u_out)))
    assert bool(jnp.all(jnp.isfinite(s_out)))
    assert bool(jnp.all(s_out >= 0.0))
    assert bool(jnp.all(jnp.abs(rho_out) <= 1.0 + 1e-6))
    print("KERNEL_OK")
</pallas_src>

<mosaic_0001>
module attributes {stable_mosaic.version = 11 : i64} {
  func.func @monet_kernel(%arg0: i32, %arg1: memref<8x32xf32, #tpu.memory_space<vmem>>, %arg2: memref<8x32xf32, #tpu.memory_space<vmem>>, %arg3: memref<8x32x32xf32, #tpu.memory_space<vmem>>, %arg4: memref<1x32x32xf32, #tpu.memory_space<vmem>>, %arg5: memref<1x1x32xf32, #tpu.memory_space<vmem>>, %arg6: memref<1x1x32xf32, #tpu.memory_space<vmem>>, %arg7: memref<1x1x32xf32, #tpu.memory_space<vmem>>, %arg8: memref<8x32xf32, #tpu.memory_space<vmem>>, %arg9: memref<8x32xf32, #tpu.memory_space<vmem>>, %arg10: memref<8x32x32xf32, #tpu.memory_space<vmem>>) attributes {dimension_semantics = [#tpu.dimension_semantics<arbitrary>], iteration_bounds = array<i64: 4>, scalar_prefetch = 0 : i64, scratch_operands = 0 : i64, tpu.core_type = #tpu.core_type<tc>, window_params = [{pipeline_mode = #tpu.pipeline_mode<synchronous>, transform_indices = @transform_0, window_bounds = array<i64: 8, 32>}, {pipeline_mode = #tpu.pipeline_mode<synchronous>, transform_indices = @transform_1, window_bounds = array<i64: 8, 32>}, {pipeline_mode = #tpu.pipeline_mode<synchronous>, transform_indices = @transform_2, window_bounds = array<i64: 8, 32, 32>}, {transform_indices = @transform_3, window_bounds = array<i64: 1, 32, 32>}, {transform_indices = @transform_4, window_bounds = array<i64: 1, 1, 32>}, {transform_indices = @transform_5, window_bounds = array<i64: 1, 1, 32>}, {transform_indices = @transform_6, window_bounds = array<i64: 1, 1, 32>}, {pipeline_mode = #tpu.pipeline_mode<synchronous>, transform_indices = @transform_7, window_bounds = array<i64: 8, 32>}, {pipeline_mode = #tpu.pipeline_mode<synchronous>, transform_indices = @transform_8, window_bounds = array<i64: 8, 32>}, {pipeline_mode = #tpu.pipeline_mode<synchronous>, transform_indices = @transform_9, window_bounds = array<i64: 8, 32, 32>}]} {
    %c0_i32 = arith.constant 0 : i32
    %0 = arith.cmpi eq, %arg0, %c0_i32 : i32
    %1 = arith.extui %0 : i1 to i32
    %c0_i32_0 = arith.constant 0 : i32
    %2 = arith.cmpi ne, %1, %c0_i32_0 : i32
    scf.if %2 {
      %c0_52 = arith.constant 0 : index
      %c0_53 = arith.constant 0 : index
      %134 = vector.load %arg1[%c0_52, %c0_53] : memref<8x32xf32, #tpu.memory_space<vmem>>, vector<8x32xf32>
      %c0_54 = arith.constant 0 : index
      %c0_55 = arith.constant 0 : index
      %135 = vector.load %arg8[%c0_54, %c0_55] : memref<8x32xf32, #tpu.memory_space<vmem>>, vector<8x32xf32>
      tpu.vector_store %arg8[%c0_54, %c0_55], %134 {strides = array<i32>} : memref<8x32xf32, #tpu.memory_space<vmem>>, vector<8x32xf32>,
      %c0_56 = arith.constant 0 : index
      %c0_57 = arith.constant 0 : index
      %136 = vector.load %arg2[%c0_56, %c0_57] : memref<8x32xf32, #tpu.memory_space<vmem>>, vector<8x32xf32>
      %c0_58 = arith.constant 0 : index
      %c0_59 = arith.constant 0 : index
      %137 = vector.load %arg9[%c0_58, %c0_59] : memref<8x32xf32, #tpu.memory_space<vmem>>, vector<8x32xf32>
      tpu.vector_store %arg9[%c0_58, %c0_59], %136 {strides = array<i32>} : memref<8x32xf32, #tpu.memory_space<vmem>>, vector<8x32xf32>,
      %c0_60 = arith.constant 0 : index
      %c0_61 = arith.constant 0 : index
      %c0_62 = arith.constant 0 : index
      %138 = vector.load %arg3[%c0_60, %c0_61, %c0_62] : memref<8x32x32xf32, #tpu.memory_space<vmem>>, vector<8x32x32xf32>
      %c0_63 = arith.constant 0 : index
      %c0_64 = arith.constant 0 : index
      %c0_65 = arith.constant 0 : index
      %139 = vector.load %arg10[%c0_63, %c0_64, %c0_65] : memref<8x32x32xf32, #tpu.memory_space<vmem>>, vector<8x32x32xf32>
      tpu.vector_store %arg10[%c0_63, %c0_64, %c0_65], %138 {strides = array<i32>} : memref<8x32x32xf32, #tpu.memory_space<vmem>>, vector<8x32x32xf32>,
    } else {
    }
    %c0 = arith.constant 0 : index
    %c0_1 = arith.constant 0 : index
    %3 = vector.load %arg8[%c0, %c0_1] : memref<8x32xf32, #tpu.memory_space<vmem>>, vector<8x32xf32>
    %c0_2 = arith.constant 0 : index
    %c0_3 = arith.constant 0 : index
    %4 = vector.load %arg9[%c0_2, %c0_3] : memref<8x32xf32, #tpu.memory_space<vmem>>, vector<8x32xf32>
    %c0_4 = arith.constant 0 : index
    %c0_5 = arith.constant 0 : index
    %c0_6 = arith.constant 0 : index
    %5 = vector.load %arg10[%c0_4, %c0_5, %c0_6] : memref<8x32x32xf32, #tpu.memory_space<vmem>>, vector<8x32x32xf32>
    %c0_7 = arith.constant 0 : index
    %c0_8 = arith.constant 0 : index
    %c0_9 = arith.constant 0 : index
    %6 = vector.load %arg4[%c0_7, %c0_8, %c0_9] : memref<1x32x32xf32, #tpu.memory_space<vmem>>, vector<1x32x32xf32>
    %7 = vector.shape_cast %6 : vector<1x32x32xf32> to vector<32x32xf32>
    %c0_10 = arith.constant 0 : index
    %c0_11 = arith.constant 0 : index
    %c0_12 = arith.constant 0 : index
    %8 = vector.load %arg5[%c0_10, %c0_11, %c0_12] : memref<1x1x32xf32, #tpu.memory_space<vmem>>, vector<1x1x32xf32>
    %9 = vector.shape_cast %8 : vector<1x1x32xf32> to vector<1x32xf32>
    %c0_13 = arith.constant 0 : index
    %c0_14 = arith.constant 0 : index
    %c0_15 = arith.constant 0 : index
    %10 = vector.load %arg6[%c0_13, %c0_14, %c0_15] : memref<1x1x32xf32, #tpu.memory_space<vmem>>, vector<1x1x32xf32>
    %11 = vector.shape_cast %10 : vector<1x1x32xf32> to vector<1x32xf32>
    %c0_16 = arith.constant 0 : index
    %c0_17 = arith.constant 0 : index
    %c0_18 = arith.constant 0 : index
    %12 = vector.load %arg7[%c0_16, %c0_17, %c0_18] : memref<1x1x32xf32, #tpu.memory_space<vmem>>, vector<1x1x32xf32>
    %13 = vector.shape_cast %12 : vector<1x1x32xf32> to vector<1x32xf32>
    %14 = tpu.iota {dimensions = array<i32: 1>} : vector<8x32x32xi32>
    %15 = tpu.iota {dimensions = array<i32: 2>} : vector<8x32x32xi32>
    %16 = arith.cmpi eq, %14, %15 : vector<8x32x32xi32>
    %17 = vector.shape_cast %7 : vector<32x32xf32> to vector<1x32x32xf32>
    %18 = vector.shape_cast %4 : vector<8x32xf32> to vector<8x1x32xf32>
    %19 = vector.broadcast %17 : vector<1x32x32xf32> to vector<8x32x32xf32>
    %20 = vector.broadcast %18 : vector<8x1x32xf32> to vector<8x32x32xf32>
    %21 = arith.mulf %19, %20 : vector<8x32x32xf32>
    "tpu.trace_start"() <{level = 10 : i32, message = "noi,nij->noj"}> : () -> ()
    %cst = arith.constant dense<0.000000e+00> : vector<8x32x32xf32>
    %22 = tpu.matmul %21, %5, %cst {dimension_numbers = #tpu.dot_dimension_numbers<[2], [1], [1], [2], [0, 0, 0, 1, 1, 2], [0], [0]>} : vector<8x32x32xf32>, vector<8x32x32xf32>, vector<8x32x32xf32> -> vector<8x32x32xf32>
    "tpu.trace_stop"() : () -> ()
    "tpu.trace_start"() <{level = 10 : i32, message = "noj,npj->nop"}> : () -> ()
    %cst_19 = arith.constant dense<0.000000e+00> : vector<8x32x32xf32>
    %23 = tpu.matmul %22, %21, %cst_19 {dimension_numbers = #tpu.dot_dimension_numbers<[2], [2], [1], [1], [0, 0, 0, 1, 1, 1], [0], [0]>} : vector<8x32x32xf32>, vector<8x32x32xf32>, vector<8x32x32xf32> -> vector<8x32x32xf32>
    %cst_20 = arith.constant 0.000000e+00 : f32
    "tpu.trace_stop"() : () -> ()
    %24 = vector.broadcast %cst_20 : f32 to vector<8x32x32xf32>
    %25 = arith.select %16, %23, %24 : vector<8x32x32xi1>, vector<8x32x32xf32>
    %cst_21 = arith.constant dense<0.000000e+00> : vector<8x32xf32>
    %26 = vector.multi_reduction <add>, %25, %cst_21 [2] : vector<8x32x32xf32> to vector<8x32xf32>
    %cst_22 = arith.constant 0.000000e+00 : f32
    %27 = vector.broadcast %cst_22 : f32 to vector<8x32xf32>
    %28 = arith.maximumf %26, %27 : vector<8x32xf32>
    %29 = math.sqrt %28 : vector<8x32xf32>
    %30 = vector.shape_cast %29 : vector<8x32xf32> to vector<8x32x1xf32>
    %31 = vector.shape_cast %29 : vector<8x32xf32> to vector<8x1x32xf32>
    %32 = vector.broadcast %30 : vector<8x32x1xf32> to vector<8x32x32xf32>
    %33 = vector.broadcast %31 : vector<8x1x32xf32> to vector<8x32x32xf32>
    %34 = arith.mulf %32, %33 : vector<8x32x32xf32>
    %cst_23 = arith.constant 9.99999993E-9 : f32
    %35 = vector.broadcast %cst_23 : f32 to vector<8x32x32xf32>
    %36 = arith.addf %34, %35 : vector<8x32x32xf32>
    %37 = arith.divf %23, %36 : vector<8x32x32xf32>
    %cst_24 = arith.constant 1.000000e+00 : f32
    %38 = vector.broadcast %cst_24 : f32 to vector<8x32x32xf32>
    %39 = arith.select %16, %38, %37 : vector<8x32x32xi1>, vector<8x32x32xf32>
    "tpu.trace_start"() <{level = 10 : i32, message = "ni,oi->no"}> : () -> ()
    %cst_25 = arith.constant dense<0.000000e+00> : vector<8x32xf32>
    %40 = tpu.matmul %3, %7, %cst_25 {dimension_numbers = #tpu.dot_dimension_numbers<[1], [1], [0], [0], [0, 0, 1, 0], [], []>} : vector<8x32xf32>, vector<32x32xf32>, vector<8x32xf32> -> vector<8x32xf32>
    "tpu.trace_stop"() : () -> ()
    %41 = vector.broadcast %9 : vector<1x32xf32> to vector<8x32xf32>
    %42 = arith.addf %40, %41 : vector<8x32xf32>
    %cst_26 = arith.constant dense<0.000000e+00> : vector<32xf32>
    %43 = vector.multi_reduction <add>, %42, %cst_26 [0] : vector<8x32xf32> to vector<32xf32>
    %44 = vector.shape_cast %43 : vector<32xf32> to vector<1x32xf32>
    %cst_27 = arith.constant 8.000000e+00 : f32
    %45 = vector.broadcast %cst_27 : f32 to vector<1x32xf32>
    %46 = arith.divf %44, %45 : vector<1x32xf32>
    %47 = vector.broadcast %46 : vector<1x32xf32> to vector<8x32xf32>
    %48 = arith.subf %42, %47 : vector<8x32xf32>
    %49 = arith.mulf %48, %48 : vector<8x32xf32>
    %cst_28 = arith.constant dense<0.000000e+00> : vector<32xf32>
    %50 = vector.multi_reduction <add>, %49, %cst_28 [0] : vector<8x32xf32> to vector<32xf32>
    %51 = vector.shape_cast %50 : vector<32xf32> to vector<1x32xf32>
    %cst_29 = arith.constant 8.000000e+00 : f32
    %52 = vector.broadcast %cst_29 : f32 to vector<1x32xf32>
    %53 = arith.divf %51, %52 : vector<1x32xf32>
    %cst_30 = arith.constant 9.99999974E-6 : f32
    %54 = vector.broadcast %cst_30 : f32 to vector<1x32xf32>
    %55 = arith.addf %53, %54 : vector<1x32xf32>
    %56 = math.rsqrt %55 : vector<1x32xf32>
    %57 = vector.broadcast %46 : vector<1x32xf32> to vector<8x32xf32>
    %58 = arith.subf %42, %57 : vector<8x32xf32>
    %59 = vector.broadcast %11 : vector<1x32xf32> to vector<8x32xf32>
    %60 = arith.mulf %59, %58 : vector<8x32xf32>
    %61 = vector.broadcast %56 : vector<1x32xf32> to vector<8x32xf32>
    %62 = arith.mulf %60, %61 : vector<8x32xf32>
    %63 = vector.broadcast %13 : vector<1x32xf32> to vector<8x32xf32>
    %64 = arith.addf %62, %63 : vector<8x32xf32>
    %65 = math.absf %11 : vector<1x32xf32>
    %66 = vector.broadcast %65 : vector<1x32xf32> to vector<8x32xf32>
    %67 = arith.mulf %29, %66 : vector<8x32xf32>
    %68 = vector.broadcast %56 : vector<1x32xf32> to vector<8x32xf32>
    %69 = arith.mulf %67, %68 : vector<8x32xf32>
    %cst_31 = arith.constant 9.99999997E-7 : f32
    %70 = vector.broadcast %cst_31 : f32 to vector<8x32xf32>
    %71 = arith.addf %69, %70 : vector<8x32xf32>
    %72 = arith.divf %64, %71 : vector<8x32xf32>
    %cst_32 = arith.constant -3.000000e+01 : f32
    %cst_33 = arith.constant 3.000000e+01 : f32
    %73 = vector.broadcast %cst_32 : f32 to vector<8x32xf32>
    %74 = arith.maximumf %73, %72 : vector<8x32xf32>
    %75 = vector.broadcast %cst_33 : f32 to vector<8x32xf32>
    %76 = arith.minimumf %75, %74 : vector<8x32xf32>
    %cst_34 = arith.constant 4.471500e-02 : f32
    %77 = vector.broadcast %cst_34 : f32 to vector<8x32xf32>
    %78 = arith.mulf %77, %76 : vector<8x32xf32>
    %79 = arith.mulf %78, %76 : vector<8x32xf32>
    %80 = arith.mulf %79, %76 : vector<8x32xf32>
    %81 = arith.addf %76, %80 : vector<8x32xf32>
    %cst_35 = arith.constant 0.797884583 : f32
    %82 = vector.broadcast %cst_35 : f32 to vector<8x32xf32>
    %83 = arith.mulf %82, %81 : vector<8x32xf32>
    %84 = math.tanh %83 : vector<8x32xf32>
    %cst_36 = arith.constant 1.000000e+00 : f32
    %85 = vector.broadcast %cst_36 : f32 to vector<8x32xf32>
    %86 = arith.addf %85, %84 : vector<8x32xf32>
    %cst_37 = arith.constant 5.000000e-01 : f32
    %87 = vector.broadcast %cst_37 : f32 to vector<8x32xf32>
    %88 = arith.mulf %87, %86 : vector<8x32xf32>
    %cst_38 = arith.constant -5.000000e-01 : f32
    %89 = vector.broadcast %cst_38 : f32 to vector<8x32xf32>
    %90 = arith.mulf %89, %76 : vector<8x32xf32>
    %91 = arith.mulf %90, %76 : vector<8x32xf32>
    %92 = math.exp %91 : vector<8x32xf32>
    %cst_39 = arith.constant 0.398942292 : f32
    %93 = vector.broadcast %cst_39 : f32 to vector<8x32xf32>
    %94 = arith.mulf %93, %92 : vector<8x32xf32>
    %95 = arith.mulf %64, %88 : vector<8x32xf32>
    %96 = arith.mulf %69, %94 : vector<8x32xf32>
    %97 = arith.addf %95, %96 : vector<8x32xf32>
    %98 = arith.mulf %64, %64 : vector<8x32xf32>
    %99 = arith.mulf %69, %69 : vector<8x32xf32>
    %100 = arith.addf %98, %99 : vector<8x32xf32>
    %101 = arith.mulf %100, %88 : vector<8x32xf32>
    %102 = arith.mulf %64, %69 : vector<8x32xf32>
    %103 = arith.mulf %102, %94 : vector<8x32xf32>
    %104 = arith.addf %101, %103 : vector<8x32xf32>
    %105 = arith.mulf %97, %97 : vector<8x32xf32>
    %106 = arith.subf %104, %105 : vector<8x32xf32>
    %cst_40 = arith.constant 0.000000e+00 : f32
    %107 = vector.broadcast %cst_40 : f32 to vector<8x32xf32>
    %108 = arith.maximumf %106, %107 : vector<8x32xf32>
    %109 = math.sqrt %108 : vector<8x32xf32>
    %110 = arith.mulf %88, %69 : vector<8x32xf32>
    %111 = vector.shape_cast %110 : vector<8x32xf32> to vector<8x32x1xf32>
    %112 = vector.shape_cast %110 : vector<8x32xf32> to vector<8x1x32xf32>
    %113 = vector.broadcast %111 : vector<8x32x1xf32> to vector<8x32x32xf32>
    %114 = vector.broadcast %112 : vector<8x1x32xf32> to vector<8x32x32xf32>
    %115 = arith.mulf %113, %114 : vector<8x32x32xf32>
    %116 = vector.shape_cast %109 : vector<8x32xf32> to vector<8x32x1xf32>
    %117 = vector.shape_cast %109 : vector<8x32xf32> to vector<8x1x32xf32>
    %118 = vector.broadcast %116 : vector<8x32x1xf32> to vector<8x32x32xf32>
    %119 = vector.broadcast %117 : vector<8x1x32xf32> to vector<8x32x32xf32>
    %120 = arith.mulf %118, %119 : vector<8x32x32xf32>
    %cst_41 = arith.constant 9.99999993E-9 : f32
    %121 = vector.broadcast %cst_41 : f32 to vector<8x32x32xf32>
    %122 = arith.addf %120, %121 : vector<8x32x32xf32>
    %123 = arith.mulf %39, %115 : vector<8x32x32xf32>
    %124 = arith.divf %123, %122 : vector<8x32x32xf32>
    %cst_42 = arith.constant -1.000000e+00 : f32
    %cst_43 = arith.constant 1.000000e+00 : f32
    %125 = vector.broadcast %cst_42 : f32 to vector<8x32x32xf32>
    %126 = arith.maximumf %125, %124 : vector<8x32x32xf32>
    %127 = vector.broadcast %cst_43 : f32 to vector<8x32x32xf32>
    %128 = arith.minimumf %127, %126 : vector<8x32x32xf32>
    %cst_44 = arith.constant 1.000000e+00 : f32
    %129 = vector.broadcast %cst_44 : f32 to vector<8x32x32xf32>
    %130 = arith.select %16, %129, %128 : vector<8x32x32xi1>, vector<8x32x32xf32>
    %c0_45 = arith.constant 0 : index
    %c0_46 = arith.constant 0 : index
    %131 = vector.load %arg8[%c0_45, %c0_46] : memref<8x32xf32, #tpu.memory_space<vmem>>, vector<8x32xf32>
    tpu.vector_store %arg8[%c0_45, %c0_46], %97 {strides = array<i32>} : memref<8x32xf32, #tpu.memory_space<vmem>>, vector<8x32xf32>,
    %c0_47 = arith.constant 0 : index
    %c0_48 = arith.constant 0 : index
    %132 = vector.load %arg9[%c0_47, %c0_48] : memref<8x32xf32, #tpu.memory_space<vmem>>, vector<8x32xf32>
    tpu.vector_store %arg9[%c0_47, %c0_48], %109 {strides = array<i32>} : memref<8x32xf32, #tpu.memory_space<vmem>>, vector<8x32xf32>,
    %c0_49 = arith.constant 0 : index
    %c0_50 = arith.constant 0 : index
    %c0_51 = arith.constant 0 : index
    %133 = vector.load %arg10[%c0_49, %c0_50, %c0_51] : memref<8x32x32xf32, #tpu.memory_space<vmem>>, vector<8x32x32xf32>
    tpu.vector_store %arg10[%c0_49, %c0_50, %c0_51], %130 {strides = array<i32>} : memref<8x32x32xf32, #tpu.memory_space<vmem>>, vector<8x32x32xf32>,
    return
  }
  func.func @transform_0(%arg0: i32) -> (i32, i32) {
    %c0_i32 = arith.constant 0 : i32
    %c0_i32_0 = arith.constant 0 : i32
    %c0_i32_1 = arith.constant 0 : i32
    return %c0_i32, %c0_i32_0 : i32, i32
  }
  func.func @transform_1(%arg0: i32) -> (i32, i32) {
    %c0_i32 = arith.constant 0 : i32
    %c0_i32_0 = arith.constant 0 : i32
    %c0_i32_1 = arith.constant 0 : i32
    return %c0_i32, %c0_i32_0 : i32, i32
  }
  func.func @transform_2(%arg0: i32) -> (i32, i32, i32) {
    %c0_i32 = arith.constant 0 : i32
    %c0_i32_0 = arith.constant 0 : i32
    %c0_i32_1 = arith.constant 0 : i32
    %c0_i32_2 = arith.constant 0 : i32
    return %c0_i32, %c0_i32_0, %c0_i32_1 : i32, i32, i32
  }
  func.func @transform_3(%arg0: i32) -> (i32, i32, i32) {
    %c0_i32 = arith.constant 0 : i32
    %c0_i32_0 = arith.constant 0 : i32
    %c0_i32_1 = arith.constant 0 : i32
    return %arg0, %c0_i32, %c0_i32_0 : i32, i32, i32
  }
  func.func @transform_4(%arg0: i32) -> (i32, i32, i32) {
    %c0_i32 = arith.constant 0 : i32
    %c0_i32_0 = arith.constant 0 : i32
    %c0_i32_1 = arith.constant 0 : i32
    return %arg0, %c0_i32, %c0_i32_0 : i32, i32, i32
  }
  func.func @transform_5(%arg0: i32) -> (i32, i32, i32) {
    %c0_i32 = arith.constant 0 : i32
    %c0_i32_0 = arith.constant 0 : i32
    %c0_i32_1 = arith.constant 0 : i32
    return %arg0, %c0_i32, %c0_i32_0 : i32, i32, i32
  }
  func.func @transform_6(%arg0: i32) -> (i32, i32, i32) {
    %c0_i32 = arith.constant 0 : i32
    %c0_i32_0 = arith.constant 0 : i32
    %c0_i32_1 = arith.constant 0 : i32
    return %arg0, %c0_i32, %c0_i32_0 : i32, i32, i32
  }
  func.func @transform_7(%arg0: i32) -> (i32, i32) {
    %c0_i32 = arith.constant 0 : i32
    %c0_i32_0 = arith.constant 0 : i32
    %c0_i32_1 = arith.constant 0 : i32
    return %c0_i32, %c0_i32_0 : i32, i32
  }
  func.func @transform_8(%arg0: i32) -> (i32, i32) {
    %c0_i32 = arith.constant 0 : i32
    %c0_i32_0 = arith.constant 0 : i32
    %c0_i32_1 = arith.constant 0 : i32
    return %c0_i32, %c0_i32_0 : i32, i32
  }
  func.func @transform_9(%arg0: i32) -> (i32, i32, i32) {
    %c0_i32 = arith.constant 0 : i32
    %c0_i32_0 = arith.constant 0 : i32
    %c0_i32_1 = arith.constant 0 : i32
    %c0_i32_2 = arith.constant 0 : i32
    return %c0_i32, %c0_i32_0, %c0_i32_1 : i32, i32, i32
  }
}

</mosaic_0001>

<bundles_post_ra>
// kernel: monet_forward.1
= control target key start
LH: loop header
LB: loop body
LE: loop exit
PB: predicated region body
PF: predicated region fallthrough
CT: control target
= control target key end

     0   :  { %s9801_s0 = inlined_call_operand.hbm [shape: f32[8,32], index: 0, kind: input, shape index: {}]   ;;  %s9802_s1 = inlined_call_operand.hbm [shape: f32[8,32], index: 1, kind: input, shape index: {}]   ;;  %s9803_s2 = inlined_call_operand.hbm [shape: f32[8,32,32], index: 2, kind: input, shape index: {}]   ;;  %s9804_s3 = inlined_call_operand.hbm [shape: f32[4,32,32], index: 3, kind: input, shape index: {}]   ;;  %s9805_s4 = inlined_call_operand.hbm [shape: f32[4,1,32], index: 4, kind: input, shape index: {}]   ;;  %s9806_s5 = inlined_call_operand.vmem [shape: f32[4,1,32], index: 5, kind: input, shape index: {}]   ;;  %s9807_s6 = inlined_call_operand.hbm [shape: f32[4,1,32], index: 6, kind: input, shape index: {}]   ;;  %s9808_s7 = inlined_call_operand.hbm [shape: f32[8,32], index: 7, kind: output, shape index: {0}]   ;;  %s9809_s8 = inlined_call_operand.hbm [shape: f32[8,32], index: 8, kind: output, shape index: {1}]   ;;  %s9810_s9 = inlined_call_operand.hbm [shape: f32[8,32,32], index: 9, kind: output, shape index: {2}]  }
   0x1   :  { %9936 = sst [smem:[#allocation154_spill]] %s9801_s0 }
   0x2   :  { %9937 = sst [smem:[#allocation155_spill]] %s9802_s1 }
   0x3   :  { %9938 = sst [smem:[#allocation156_spill]] %s9804_s3 }
   0x4   :  { %15 = vsyncpa [#allocation3], 0 }
   0x5   :  { %16 = vsyncpa [#allocation6], 0 }
   0x6   :  { %17 = vsyncpa [#allocation9], 0 }
   0x7   :  { %19 = vsyncpa [#allocation9 + $0x1], 0 }
   0x8   :  { %20 = vsyncpa [#allocation12], 0 }
   0x9   :  { %22 = vsyncpa [#allocation12 + $0x1], 0 }
   0xa   :  { %23 = vsyncpa [#allocation4], 0 }
   0xb   :  { %24 = vsyncpa [#allocation15], 0  ;;  %s6269_s30 = smov 0   ;;  %s6271_s10 = smov 0  }
   0xc   :  { %s6273_s11 = smov 0   ;;  %s6275_s12 = smov 0  }
   0xd LB: > { %9939 = sst [smem:[#allocation23_spill]] %s6201_s11  ;;  %s6288_s13 = sadd.s32 4294967295, %s6205_s12   ;;  %s6205_s12 = sphi %s6275_s12, %s10361_s12   ;;  %s6201_s11 = sphi %s6273_s11, %s10363_s11   ;;  %s6197_s10 = sphi %s6271_s10, %s10365_s10   ;;  %s6193_s30 = sphi %s6269_s30, %s10364_s30  }
   0xe   : > { %s6291_s14 = sadd.s32 1, %s6205_s12   ;;  %s100_s16 = sadd.s32 1, %s6201_s11 }
   0xf   : > { %9940 = sst [smem:[#allocation24_spill]] %s6291_s14  ;;  %s97_s15 = ssub.s32 %s6205_s12, %s6291_s14 }
  0x10   : > { %p98_p0 = scmp.eq.s32.totalorder %s97_s15, 0  ;;  %p107_p1 = scmp.ne.s32.totalorder %s6201_s11, %s6197_s10 }
  0x11   : > { %p108_p2 = scmp.eq.s32.totalorder %s6205_s12, 0  ;;  %p113_p3 = scmp.ne.s32.totalorder %s6197_s10, %s6193_s30 }
  0x12   : > { %s6301_s17 = scalar_select %p98_p0, %s6201_s11, %s100_s16  }
  0x13   : > { %p6303_p4 = por %p108_p2, %p107_p1  ;;  %p114_p5 = scmp.eq.s32.totalorder %s6288_s13, 0 }
  0x14   : > { %9941 = sst [smem:[#allocation25_spill]] %s6301_s17  ;;  %p5307_p6 = scmp.ge.s32.totalorder %s6205_s12, 1 }
  0x15   : > { %p265_p7 = scmp.lt.s32.totalorder %s6205_s12, 5  ;;  %p6312_p8 = por %p114_p5, %p113_p3 }
  0x16   : > { %p5308_p9 = scmp.ne.s32.totalorder %s6288_s13, 0  ;;  %s9945_s1 = sld [smem:[#allocation155_spill]] }
  0x17   : > { %p6317_p10 = pnand %p5307_p6, %p265_p7  ;;  %s6207_s24 = smov [#allocation5]  }
  0x18   : > { %s291_s25 = sshll.u32 %s6207_s24, 4  ;;  %p5517_p13 = scmp.lt.s32.totalorder %s6205_s12, 4  ;;  %s292_s25 = int_to_ptr.vmem [resolvable:$true] %s291_s25 }
  0x19   : > { %p5494_p11 = pneg %p6317_p10  ;;  %s316_s27 = sand.u32 1, %s6205_s12  }
  0x1a   : > { %s6337_s28 = sand.u32 1, %s6201_s11   ;;  %s5463_s30 = sshll.u32 %s6205_s12, 5 }
  0x1b   : > { %p6328_p12 = pnand %p5494_p11, %p114_p5  ;;  %s5312_s29 = sshll.u32 %s6337_s28, 5 }
  0x1c   : > { %s289_s23 = sshll.u32 %s9945_s1, 4  ;;  %s9947_s3 = sld [smem:[#allocation156_spill]]  ;;  %s290_s23 = int_to_ptr.hbm [resolvable:$true] %s289_s23 }
  0x1d   : > { %5500 = dma.hbm_to_vmem [thread:$0]  (!%p6328_p12), %s290_s23, 128, %s292_s25, [#allocation6]  }
  0x1e   : > { %s320_s24 = scalar_lea.vmem [#allocation8], %s5312_s29  ;;  %p6346_p0 = pnand %p5517_p13, %p6303_p4 }
  0x1f   : > { %s328_s1 = sshll.u32 %s320_s24, 4  ;;  %s9949_s0 = sld [smem:[#allocation154_spill]]  ;;  %s329_s1 = int_to_ptr.vmem [resolvable:$true] %s328_s1 }
  0x20   : > { %s6208_s14 = smov [#allocation2]   ;;  %p5921_p2 = pneg %p6346_p0 }
  0x21   : > { %s279_s15 = sshll.u32 %s6208_s14, 4  ;;  %s280_s15 = int_to_ptr.vmem [resolvable:$true] %s279_s15 }
  0x22   : > { %s325_s21 = scalar_lea.hbm %s9947_s3, %s5463_s30  ;;  %s6353_s30 = scalar_lea.sflag [#allocation9], %s316_s27 }
  0x23   : > { %s326_s22 = sshll.u32 %s325_s21, 4  ;;  %s5924_s24 = scalar_lea.hbm %s9947_s3, 128  ;;  %s327_s22 = int_to_ptr.hbm [resolvable:$true] %s326_s22 }
  0x24   : > { %s5917_s29 = sshra.s32 %s327_s22, 4  ;;  %s5918_s29 = int_to_ptr.hbm [resolvable:$true] %s5917_s29 }
  0x25   : > { %s277_s11 = sshll.u32 %s9949_s0, 4  ;;  %s5919_s16 = scalar_lea.hbm %s5918_s29, 32  ;;  %s278_s11 = int_to_ptr.hbm [resolvable:$true] %s277_s11 }
  0x26   : > { %p5920_p1 = scmp.ne.s32.totalorder %s5918_s29, %s5919_s16  ;;  %p5925_p6 = scmp.lt.s32.totalorder %s5918_s29, %s9947_s3 }
  0x27   : > { %p5926_p7 = scmp.lt.s32.totalorder %s5924_s24, %s5919_s16 }
  0x28   : > { %p5922_p3 = pnand %p5921_p2, %p5920_p1 }
  0x29   : > { %p5927_p11 = por %p5926_p7, %p5925_p6 }
  0x2a   : > { %p5923_p4 = pneg %p5922_p3 }
  0x2c   : > { %p5928_p13 = pnand %p5927_p11, %p5923_p4 }
  0x2e   : > { %5931 = shalt.err (!%p5928_p13)
}
  0x2f   : > { %s6209_s14 = smov 128   ;;  %s6210_s27 = smov 8  }
  0x30   : > { %5507 = dma.hbm_to_vmem [thread:$0]  (!%p6346_p0), %s327_s22, 512, %s329_s1, %s6353_s30, %s6209_s14, %s6209_s14, %s6210_s27  }
  0x31   : > { %s300_s23 = sshll.u32 %s9803_s2, 4  ;;  %s6211_s29 = smov [#allocation7]   ;;  %s301_s23 = int_to_ptr.hbm [resolvable:$true] %s300_s23 }
  0x32   : > { %5497 = dma.hbm_to_vmem [thread:$0]  (!%p6328_p12), %s278_s11, 128, %s280_s15, [#allocation3]  }
  0x33   : > { %s302_s16 = sshll.u32 %s6211_s29, 4  ;;  %s344_s0 = scalar_lea.hbm %s9805_s4, %s6205_s12  ;;  %s303_s16 = int_to_ptr.vmem [resolvable:$true] %s302_s16 }
  0x34   : > { %5503 = dma.hbm_to_vmem [thread:$0]  (!%p6328_p12), %s301_s23, 4096, %s303_s16, [#allocation6], %s6209_s14, %s6209_s14, %s6210_s27  }
  0x35   : > { %s346_s3 = sshll.u32 %s344_s0, 4  ;;  %s341_s1 = scalar_lea.vmem [#allocation10], %s6337_s28  ;;  %s347_s3 = int_to_ptr.hbm [resolvable:$true] %s346_s3 }
  0x36   : > { %s348_s22 = sshll.u32 %s341_s1, 4  ;;  %s6007_s18 = sshra.s32 %s347_s3, 4  ;;  %s349_s22 = int_to_ptr.vmem [resolvable:$true] %s348_s22  ;;  %s6008_s18 = int_to_ptr.hbm [resolvable:$true] %s6007_s18 }
  0x37   : > { %s6009_s21 = scalar_lea.hbm %s6008_s18, 1  ;;  %s6014_s29 = scalar_lea.hbm %s9805_s4, 4 }
  0x38   : > { %p6010_p1 = scmp.ne.s32.totalorder %s6008_s18, %s6009_s21  ;;  %p6015_p12 = scmp.lt.s32.totalorder %s6008_s18, %s9805_s4 }
  0x39   : > { %p6016_p6 = scmp.lt.s32.totalorder %s6014_s29, %s6009_s21 }
  0x3a   : > { %p6012_p3 = pnand %p6010_p1, %p5921_p2 }
  0x3b   : > { %p6017_p7 = por %p6016_p6, %p6015_p12 }
  0x3c   : > { %p6013_p4 = pneg %p6012_p3 }
  0x3e   : > { %p6018_p11 = pnand %p6017_p7, %p6013_p4 }
  0x40   : > { %6021 = shalt.err (!%p6018_p11)
}
  0x41   : > { %5510 = dma.hbm_to_vmem [thread:$0]  (!%p6346_p0), %s347_s3, 16, %s349_s22, %s6353_s30  }
  0x42   : > { %s367_s27 = scalar_lea.hbm %s9807_s6, %s6205_s12  ;;  %s364_s23 = scalar_lea.vmem [#allocation11], %s6337_s28 }
  0x43   : > { %s371_s16 = sshll.u32 %s364_s23, 4  ;;  %s369_s25 = sshll.u32 %s367_s27, 4  ;;  %s372_s16 = int_to_ptr.vmem [resolvable:$true] %s371_s16  ;;  %s370_s25 = int_to_ptr.hbm [resolvable:$true] %s369_s25 }
  0x44   : > { %s362_s1 = scalar_lea.sflag [#allocation12], %s6337_s28  ;;  %s6037_s18 = sshra.s32 %s370_s25, 4  ;;  %s6038_s18 = int_to_ptr.hbm [resolvable:$true] %s6037_s18 }
  0x45   : > { %s6039_s21 = scalar_lea.hbm %s6038_s18, 1  ;;  %s6044_s30 = scalar_lea.hbm %s9807_s6, 4 }
  0x46   : > { %p6040_p13 = scmp.ne.s32.totalorder %s6038_s18, %s6039_s21  ;;  %p6045_p4 = scmp.lt.s32.totalorder %s6038_s18, %s9807_s6 }
  0x47   : > { %p6046_p12 = scmp.lt.s32.totalorder %s6044_s30, %s6039_s21 }
  0x48   : > { %p6042_p1 = pnand %p6040_p13, %p5921_p2 }
  0x49   : > { %p6047_p6 = por %p6046_p12, %p6045_p4 }
  0x4a   : > { %p6043_p3 = pneg %p6042_p1 }
  0x4c   : > { %p6048_p7 = pnand %p6047_p6, %p6043_p3 }
  0x4e   : > { %6051 = shalt.err (!%p6048_p7)
}
  0x4f   : > { %5513 = dma.hbm_to_vmem [thread:$0]  (!%p6346_p0), %s370_s25, 16, %s372_s16, %s362_s1  }
  0x50   : > { %380 = sbr.rel (%p6317_p10) target bundleno = 1915 (0x77b), region = 48 }
  0x55   : > { %6168 = dma.done.wait (%p114_p5), [#allocation3], 128  }
  0x56   : > { %6170 = vsyncadd (%p114_p5), [#allocation3], 4294967168 }
  0x57   : > { %6172 = dma.done.wait (%p114_p5), [#allocation6], 4224  }
  0x58   : > { %6174 = vsyncadd (%p114_p5), [#allocation6], 4294963072  ;;  %s397_s17 = sand.u32 1, %s6288_s13   ;;  %s6422_s28 = sand.u32 1, %s6197_s10  }
  0x59   : > { %s5319_s20 = sshll.u32 %s6422_s28, 5  ;;  %s398_s15 = scalar_lea.sflag [#allocation9], %s397_s17 }
  0x5a   : > { %s6425_s29 = scalar_lea.vmem [#allocation8], %s5319_s20 }
  0x5b   : > { %6176 = dma.done.wait (%p6312_p8), %s398_s15, 528  }
  0x5c   : > { %6178 = vsyncadd (%p6312_p8), %s398_s15, 4294966768  ;;  %s410_s24 = scalar_lea.vmem [#allocation10], %s6422_s28  ;;  %s417_s26 = scalar_lea.sflag [#allocation12], %s6422_s28 }
  0x5d   : > { %s419_s0 = scalar_lea.vmem [#allocation11], %s6422_s28 }
  0x5e   : > { %6180 = dma.done.wait (%p6312_p8), %s417_s26, 16  }
  0x5f   : > { %6182 = vsyncadd (%p6312_p8), %s417_s26, 4294967280  ;;  %p461_p5 = scmp.lt.s32.totalorder %s6288_s13, 3  ;;  %467 = sbr.rel (%p5308_p9) target bundleno = 135 (0x87), region = 76 }
  0x61   : > { %s462_s14 = scalar_select %p461_p5, %s6288_s13, 3 }
  0x63   : > { %s6443_s16 = scalar_lea.vmem %s9806_s5, %s462_s14 }
  0x64   : > { %v468_v0 = vld [vmem:[#allocation2] sm:$0xff]  ;;  %vm469_vm0 = vcmask 261120   ;;  %v471_v1 = vld [vmem:[#allocation5] sm:$0xff]  ;;  %v473_v2 = vld [vmem:[#allocation7] sm:$0xff] }
  0x65   : > { %470 = vst.msk [vmem:[#allocation13] sm:$0xff] %vm469_vm0, %v468_v0  ;;  %v474_v3 = vld [vmem:[#allocation7 + $0x8] sm:$0xff]  ;;  %v475_v4 = vld [vmem:[#allocation7 + $0x10] sm:$0xff]  ;;  %v476_v5 = vld [vmem:[#allocation7 + $0x18] sm:$0xff] }
  0x66   : > { %472 = vst.msk [vmem:[#allocation14] sm:$0xff] %vm469_vm0, %v471_v1  ;;  %v477_v6 = vld [vmem:[#allocation7 + $0x20] sm:$0xff]  ;;  %v478_v7 = vld [vmem:[#allocation7 + $0x28] sm:$0xff]  ;;  %v479_v8 = vld [vmem:[#allocation7 + $0x30] sm:$0xff] }
  0x67   : > { %505 = vst.msk [vmem:[#allocation16] sm:$0xff] %vm469_vm0, %v473_v2  ;;  %v480_v9 = vld [vmem:[#allocation7 + $0x38] sm:$0xff]  ;;  %v481_v10 = vld [vmem:[#allocation7 + $0x40] sm:$0xff]  ;;  %v482_v11 = vld [vmem:[#allocation7 + $0x48] sm:$0xff] }
  0x68   : > { %506 = vst.msk [vmem:[#allocation16 + $0x8] sm:$0xff] %vm469_vm0, %v474_v3  ;;  %v483_v12 = vld [vmem:[#allocation7 + $0x50] sm:$0xff]  ;;  %v484_v13 = vld [vmem:[#allocation7 + $0x58] sm:$0xff]  ;;  %v485_v14 = vld [vmem:[#allocation7 + $0x60] sm:$0xff] }
  0x69   : > { %507 = vst.msk [vmem:[#allocation16 + $0x10] sm:$0xff] %vm469_vm0, %v475_v4  ;;  %v486_v15 = vld [vmem:[#allocation7 + $0x68] sm:$0xff]  ;;  %v487_v16 = vld [vmem:[#allocation7 + $0x70] sm:$0xff]  ;;  %v488_v17 = vld [vmem:[#allocation7 + $0x78] sm:$0xff] }
  0x6a   : > { %508 = vst.msk [vmem:[#allocation16 + $0x18] sm:$0xff] %vm469_vm0, %v476_v5  ;;  %v489_v18 = vld [vmem:[#allocation7 + $0x80] sm:$0xff]  ;;  %v490_v19 = vld [vmem:[#allocation7 + $0x88] sm:$0xff]  ;;  %v491_v20 = vld [vmem:[#allocation7 + $0x90] sm:$0xff] }
  0x6b   : > { %509 = vst.msk [vmem:[#allocation16 + $0x20] sm:$0xff] %vm469_vm0, %v477_v6  ;;  %v492_v21 = vld [vmem:[#allocation7 + $0x98] sm:$0xff]  ;;  %v493_v22 = vld [vmem:[#allocation7 + $0xa0] sm:$0xff]  ;;  %v494_v23 = vld [vmem:[#allocation7 + $0xa8] sm:$0xff] }
  0x6c   : > { %510 = vst.msk [vmem:[#allocation16 + $0x28] sm:$0xff] %vm469_vm0, %v478_v7  ;;  %v495_v24 = vld [vmem:[#allocation7 + $0xb0] sm:$0xff]  ;;  %v496_v25 = vld [vmem:[#allocation7 + $0xb8] sm:$0xff]  ;;  %v497_v26 = vld [vmem:[#allocation7 + $0xc0] sm:$0xff] }
  0x6d   : > { %511 = vst.msk [vmem:[#allocation16 + $0x30] sm:$0xff] %vm469_vm0, %v479_v8  ;;  %v498_v27 = vld [vmem:[#allocation7 + $0xc8] sm:$0xff]  ;;  %v499_v28 = vld [vmem:[#allocation7 + $0xd0] sm:$0xff]  ;;  %v500_v29 = vld [vmem:[#allocation7 + $0xd8] sm:$0xff] }
  0x6e   : > { %512 = vst.msk [vmem:[#allocation16 + $0x38] sm:$0xff] %vm469_vm0, %v480_v9  ;;  %v501_v30 = vld [vmem:[#allocation7 + $0xe0] sm:$0xff]  ;;  %v502_v31 = vld [vmem:[#allocation7 + $0xe8] sm:$0xff]  ;;  %v503_v32 = vld [vmem:[#allocation7 + $0xf0] sm:$0xff] }
  0x6f   : > { %513 = vst.msk [vmem:[#allocation16 + $0x40] sm:$0xff] %vm469_vm0, %v481_v10  ;;  %v504_v33 = vld [vmem:[#allocation7 + $0xf8] sm:$0xff] }
  0x70   : > { %514 = vst.msk [vmem:[#allocation16 + $0x48] sm:$0xff] %vm469_vm0, %v482_v11 }
  0x71   : > { %515 = vst.msk [vmem:[#allocation16 + $0x50] sm:$0xff] %vm469_vm0, %v483_v12 }
  0x72   : > { %516 = vst.msk [vmem:[#allocation16 + $0x58] sm:$0xff] %vm469_vm0, %v484_v13 }
  0x73   : > { %517 = vst.msk [vmem:[#allocation16 + $0x60] sm:$0xff] %vm469_vm0, %v485_v14 }
  0x74   : > { %518 = vst.msk [vmem:[#allocation16 + $0x68] sm:$0xff] %vm469_vm0, %v486_v15 }
  0x75   : > { %519 = vst.msk [vmem:[#allocation16 + $0x70] sm:$0xff] %vm469_vm0, %v487_v16 }
  0x76   : > { %520 = vst.msk [vmem:[#allocation16 + $0x78] sm:$0xff] %vm469_vm0, %v488_v17 }
  0x77   : > { %521 = vst.msk [vmem:[#allocation16 + $0x80] sm:$0xff] %vm469_vm0, %v489_v18 }
  0x78   : > { %522 = vst.msk [vmem:[#allocation16 + $0x88] sm:$0xff] %vm469_vm0, %v490_v19 }
  0x79   : > { %523 = vst.msk [vmem:[#allocation16 + $0x90] sm:$0xff] %vm469_vm0, %v491_v20 }
  0x7a   : > { %524 = vst.msk [vmem:[#allocation16 + $0x98] sm:$0xff] %vm469_vm0, %v492_v21 }
  0x7b   : > { %525 = vst.msk [vmem:[#allocation16 + $0xa0] sm:$0xff] %vm469_vm0, %v493_v22 }
  0x7c   : > { %526 = vst.msk [vmem:[#allocation16 + $0xa8] sm:$0xff] %vm469_vm0, %v494_v23 }
  0x7d   : > { %527 = vst.msk [vmem:[#allocation16 + $0xb0] sm:$0xff] %vm469_vm0, %v495_v24 }
  0x7e   : > { %528 = vst.msk [vmem:[#allocation16 + $0xb8] sm:$0xff] %vm469_vm0, %v496_v25 }
  0x7f   : > { %529 = vst.msk [vmem:[#allocation16 + $0xc0] sm:$0xff] %vm469_vm0, %v497_v26 }
  0x80   : > { %530 = vst.msk [vmem:[#allocation16 + $0xc8] sm:$0xff] %vm469_vm0, %v498_v27 }
  0x81   : > { %531 = vst.msk [vmem:[#allocation16 + $0xd0] sm:$0xff] %vm469_vm0, %v499_v28 }
  0x82   : > { %532 = vst.msk [vmem:[#allocation16 + $0xd8] sm:$0xff] %vm469_vm0, %v500_v29 }
  0x83   : > { %533 = vst.msk [vmem:[#allocation16 + $0xe0] sm:$0xff] %vm469_vm0, %v501_v30 }
  0x84   : > { %534 = vst.msk [vmem:[#allocation16 + $0xe8] sm:$0xff] %vm469_vm0, %v502_v31 }
  0x85   : > { %535 = vst.msk [vmem:[#allocation16 + $0xf0] sm:$0xff] %vm469_vm0, %v503_v32 }
  0x86   : > { %536 = vst.msk [vmem:[#allocation16 + $0xf8] sm:$0xff] %vm469_vm0, %v504_v33 }
  0x87 PF: > { %v542_v34 = vld [vmem:[#allocation16 + $0x18] sm:$0xff]  ;;  %v541_v37 = vld [vmem:[#allocation16 + $0x10] sm:$0xff]  ;;  %v540_v40 = vld [vmem:[#allocation16 + $0x8] sm:$0xff]  ;;  %vm9916_vm1 = vcmask 261120   ;;  %vm1881_vm12 = vcmask 130112   ;;  %p5521_p8 = scmp.eq.s32.totalorder %s6288_s13, 3 }
  0x88   : > { %v546_v35 = vld [vmem:[#allocation16 + $0x38] sm:$0xff]  ;;  %670 = vmatpush.msra.mxu0 %v542_v34  ;;  %v545_v38 = vld [vmem:[#allocation16 + $0x30] sm:$0xff]  ;;  %v544_v41 = vld [vmem:[#allocation16 + $0x28] sm:$0xff]  ;;  %s6214_s19 = smov [#allocation14]   ;;  %s5143_s21 = sshll.u32 %s9809_s8, 4  ;;  %s5144_s21 = int_to_ptr.hbm [resolvable:$true] %s5143_s21 }
  0x89   : > { %v554_v36 = vld [vmem:[#allocation16 + $0x78] sm:$0xff]  ;;  %711 = vmatpush.msra.mxu1 %v546_v35  ;;  %v553_v39 = vld [vmem:[#allocation16 + $0x70] sm:$0xff]  ;;  %v552_v43 = vld [vmem:[#allocation16 + $0x68] sm:$0xff]  ;;  %s5141_s25 = sshll.u32 %s6214_s19, 4  ;;  %s5131_s30 = sshll.u32 %s9808_s7, 4  ;;  %s5142_s25 = int_to_ptr.vmem [resolvable:$true] %s5141_s25  ;;  %s5132_s30 = int_to_ptr.hbm [resolvable:$true] %s5131_s30 }
  0x8a   : > { %793 = vmatpush.msra.mxu3 %v554_v36  ;;  %v550_v42 = vld [vmem:[#allocation16 + $0x58] sm:$0xff]  ;;  %671 = vmatpush.msra.mxu0 %v541_v37  ;;  %v539_v44 = vld [vmem:[#allocation16] sm:$0xff]  ;;  %v549_v46 = vld [vmem:[#allocation16 + $0x50] sm:$0xff]  ;;  %s6215_s22 = smov [#allocation13]   ;;  %s6216_s17 = smov [#allocation16]  }
  0x8b   : > { %712 = vmatpush.msra.mxu1 %v545_v38  ;;  %752 = vmatpush.msra.mxu2 %v550_v42  ;;  %v543_v45 = vld [vmem:[#allocation16 + $0x20] sm:$0xff]  ;;  %v6481_v47 = vld [vmem:[#allocation14] sm:$0xff]  ;;  %v6484_v49 = vld [vmem:[%s6425_s29] sm:$0xff]  ;;  %s5129_s12 = sshll.u32 %s6215_s22, 4  ;;  %s5152_s28 = sshll.u32 %s6216_s17, 4  ;;  %s5130_s12 = int_to_ptr.vmem [resolvable:$true] %s5129_s12  ;;  %s5153_s28 = int_to_ptr.vmem [resolvable:$true] %s5152_s28 }
  0x8c   : > { %794 = vmatpush.msra.mxu3 %v553_v39  ;;  %672 = vmatpush.msra.mxu0 %v540_v40  ;;  %v551_v48 = vld [vmem:[#allocation16 + $0x60] sm:$0xff]  ;;  %v6487_v50 = vperm.slane %v6481_v47, 0  ;;  %v590_v51 = vrot.slane %v6481_v47, 1  ;;  %v592_v52 = vrot.slane %v6481_v47, 3  ;;  %v548_v53 = vld [vmem:[#allocation16 + $0x48] sm:$0xff]  ;;  %v591_v54 = vrot.slane %v6481_v47, 2 }
  0x8d   : > { %713 = vmatpush.msra.mxu1 %v544_v41  ;;  %753 = vmatpush.msra.mxu2 %v549_v46  ;;  %v547_v58 = vld [vmem:[#allocation16 + $0x40] sm:$0xff]  ;;  %v558_v59 = vld [vmem:[#allocation16 + $0x98] sm:$0xff]  ;;  %v557_v0 = vld [vmem:[#allocation16 + $0x90] sm:$0xff]  ;;  %v593_v30 = vrot.slane %v6481_v47, 4  ;;  %v594_v31 = vrot.slane %v6481_v47, 5  ;;  %v596_v32 = vrot.slane %v6481_v47, 7 }
  0x8e   : > { %795 = vmatpush.msra.mxu3 %v552_v43  ;;  %673 = vmatpush.msra.mxu0 %v539_v44  ;;  %v6494_v55 = vmul.f32 %v6487_v50, %v6484_v49  ;;  %v6496_v56 = vperm.slane %v590_v51, 0  ;;  %v6498_v57 = vperm.slane %v592_v52, 0  ;;  %v599_v60 = vperm.slane %v591_v54, 0  ;;  %v6511_v63 = vld [vmem:[%s6425_s29 + $0x8] sm:$0xff]  ;;  %v556_v4 = vld [vmem:[#allocation16 + $0x88] sm:$0xff]  ;;  %v555_v9 = vld [vmem:[#allocation16 + $0x80] sm:$0xff] }
  0x8f   : > { %714 = vmatpush.msra.mxu1 %v543_v45  ;;  %754 = vmatpush.msra.mxu2 %v548_v53  ;;  %v570_v2 = vld [vmem:[#allocation16 + $0xf8] sm:$0xff]  ;;  %v569_v6 = vld [vmem:[#allocation16 + $0xf0] sm:$0xff]  ;;  %v614_v8 = vmul.f32 %v6487_v50, %v6511_v63  ;;  %v560_v11 = vld [vmem:[#allocation16 + $0xa8] sm:$0xff]  ;;  %v595_v33 = vrot.slane %v6481_v47, 6  ;;  %v601_v34 = vperm.slane %v593_v30, 0  ;;  %v602_v35 = vperm.slane %v594_v31, 0 }
  0x90   : > { %796 = vmatpush.msra.mxu3 %v551_v48  ;;  %5321 = vmatmul.msk.f32.vlgmr.msra.gmra.mxu0 %vm9916_vm1, %v6494_v55  ;;  %v6504_v61 = vmul.f32 %v6496_v56, %v6484_v49  ;;  %v6508_v62 = vmul.f32 %v6498_v57, %v6484_v49  ;;  %v6514_v1 = vmul.f32 %v599_v60, %v6484_v49  ;;  %v562_v3 = vld [vmem:[#allocation16 + $0xb8] sm:$0xff]  ;;  %v561_v7 = vld [vmem:[#allocation16 + $0xb0] sm:$0xff]  ;;  %v568_v14 = vld [vmem:[#allocation16 + $0xe8] sm:$0xff]  ;;  %v604_v36 = vperm.slane %v596_v32, 0  ;;  %s6218_s26 = smov 8  }
  0x91   : > { %755 = vmatpush.msra.mxu2 %v547_v58  ;;  %834 = vmatpush.msrb.mxu0 %v558_v59  ;;  %v566_v5 = vld [vmem:[#allocation16 + $0xd8] sm:$0xff]  ;;  %v565_v10 = vld [vmem:[#allocation16 + $0xd0] sm:$0xff]  ;;  %v618_v12 = vmul.f32 %v6496_v56, %v6511_v63  ;;  %v626_v13 = vmul.f32 %v6498_v57, %v6511_v63  ;;  %v622_v15 = vmul.f32 %v599_v60, %v6511_v63  ;;  %v6531_v16 = vld [vmem:[%s6425_s29 + $0x18] sm:$0xff]  ;;  %v603_v37 = vperm.slane %v595_v33, 0 }
  0x92   : > { %5325 = vmatmul.msk.f32.vlgmr.msra.gmra.mxu1 %vm9916_vm1, %v6504_v61  ;;  %5333 = vmatmul.msk.f32.vlgmr.msra.gmra.mxu3 %vm9916_vm1, %v6508_v62  ;;  %v559_v17 = vld [vmem:[#allocation16 + $0xa0] sm:$0xff]  ;;  %v564_v18 = vld [vmem:[#allocation16 + $0xc8] sm:$0xff]  ;;  %v616_v22 = vmul.f32 %v6487_v50, %v6531_v16  ;;  %v628_v23 = vmul.f32 %v6498_v57, %v6531_v16  ;;  %v620_v25 = vmul.f32 %v6496_v56, %v6531_v16  ;;  %v9955_v32 = vmov 0 }
  0x93   : > { %5329 = vmatmul.msk.f32.vlgmr.msra.gmra.mxu2 %vm9916_vm1, %v6514_v1  ;;  %835 = vmatpush.msrb.mxu0 %v557_v0  ;;  %v6534_v19 = vld [vmem:[%s6425_s29 + $0x10] sm:$0xff]  ;;  %v624_v26 = vmul.f32 %v599_v60, %v6531_v16  ;;  %v629_v38 = vmul.f32 %v601_v34, %v6484_v49  ;;  %v633_v39 = vmul.f32 %v602_v35, %v6484_v49  ;;  %s5154_s29 = sshll.u32 %s9810_s9, 4  ;;  %s5155_s29 = int_to_ptr.hbm [resolvable:$true] %s5154_s29 }
  0x94   : > { %957 = vmatpush.msrb.mxu3 %v570_v2  ;;  %875 = vmatpush.msrb.mxu1 %v562_v3  ;;  %v567_v20 = vld [vmem:[#allocation16 + $0xe0] sm:$0xff]  ;;  %v615_v24 = vmul.f32 %v6487_v50, %v6534_v19  ;;  %v627_v27 = vmul.f32 %v6498_v57, %v6534_v19  ;;  %v619_v28 = vmul.f32 %v6496_v56, %v6534_v19  ;;  %v578_v3 = vlaneseq }
  0x95   : > { %836 = vmatpush.msrb.mxu0 %v556_v4  ;;  %916 = vmatpush.msrb.mxu2 %v566_v5  ;;  %v563_v21 = vld [vmem:[#allocation16 + $0xc0] sm:$0xff]  ;;  %v623_v29 = vmul.f32 %v599_v60, %v6534_v19  ;;  %v641_v40 = vmul.f32 %v604_v36, %v6484_v49  ;;  %v637_v41 = vmul.f32 %v603_v37, %v6484_v49 }
  0x96   : > { %958 = vmatpush.msrb.mxu3 %v569_v6  ;;  %876 = vmatpush.msrb.mxu1 %v561_v7  ;;  %v632_v42 = vmul.f32 %v601_v34, %v6531_v16  ;;  %v636_v43 = vmul.f32 %v602_v35, %v6531_v16  ;;  %v640_v44 = vmul.f32 %v603_v37, %v6531_v16  ;;  %v6655_v5 = vshrl.u32 %v578_v3, 7 }
  0x97   : > { %837 = vmatpush.msrb.mxu0 %v555_v9  ;;  %917 = vmatpush.msrb.mxu2 %v565_v10  ;;  %v644_v45 = vmul.f32 %v604_v36, %v6531_v16  ;;  %v631_v46 = vmul.f32 %v601_v34, %v6534_v19  ;;  %v630_v47 = vmul.f32 %v601_v34, %v6511_v63  ;;  %v576_v9 = vld [vmem:[%s6443_s16] sm:$0x1]  ;;  %v6692_v31 = vand.u32 127, %v578_v3 }
  0x98   : > { %5322 = vmatmul.msk.f32.gmra.mxu0 %vm9916_vm1, %v614_v8  ;;  %877 = vmatpush.msrb.mxu1 %v560_v11  ;;  %v635_v48 = vmul.f32 %v602_v35, %v6534_v19  ;;  %v634_v50 = vmul.f32 %v602_v35, %v6511_v63  ;;  %v642_v51 = vmul.f32 %v604_v36, %v6511_v63  ;;  %v2662_v11 = vand.u32 2147483647, %v576_v9 }
  0x99   : > { %959 = vmatpush.msrb.mxu3 %v568_v14  ;;  %918 = vmatpush.msrb.mxu2 %v564_v18  ;;  %v643_v52 = vmul.f32 %v604_v36, %v6534_v19  ;;  %v638_v53 = vmul.f32 %v603_v37, %v6511_v63  ;;  %v639_v54 = vmul.f32 %v603_v37, %v6534_v19 }
  0x9a   : > { %5326 = vmatmul.msk.f32.gmra.mxu1 %vm9916_vm1, %v618_v12  ;;  %5334 = vmatmul.msk.f32.gmra.mxu3 %vm9916_vm1, %v626_v13  ;;  %9950 = vst [vmem:[#allocation26_spill] sm:$0xff] %v6655_v5  ;;  %v2664_v14 = vperm.slane %v2662_v11, 0  ;;  %vm6696_vm2 = vcmp.eq.s32.totalorder %v6655_v5, %v6692_v31 }
  0x9b   : > { %5330 = vmatmul.msk.f32.gmra.mxu2 %vm9916_vm1, %v622_v15  ;;  %878 = vmatpush.msrb.mxu1 %v559_v17  ;;  %9954 = vst [vmem:[#allocation30_spill] sm:$0xff] %v6692_v31  ;;  %v9956_v32 = vsel %vm6696_vm2, 4294967295, %v9955_v32 }
  0x9c   : > { %960 = vmatpush.msrb.mxu3 %v567_v20  ;;  %919 = vmatpush.msrb.mxu2 %v563_v21  ;;  %9957 = vst [vmem:[#allocation31_spill] sm:$0xff] %v9956_v32 }
  0x9d   : > { %5353 = vmatpush.xpose.msk.msra.mxu0 %vm9916_vm1, %v616_v22  ;;  %5361 = vmatpush.xpose.msk.msra.mxu1 %vm9916_vm1, %v620_v25 }
  0x9e   : > { %5377 = vmatpush.xpose.msk.msra.mxu3 %vm9916_vm1, %v628_v23  ;;  %5369 = vmatpush.xpose.msk.msra.mxu2 %vm9916_vm1, %v624_v26 }
  0x9f   : > { %5571 = vset.pattern.permute.xlu2 %v6655_v5 }
  0xa0   : > { %5323 = vmatmul.msk.f32.gmra.mxu0 %vm9916_vm1, %v615_v24 }
  0xa1   : > { %5354 = vmatpush.xpose.msk.msra.mxu0 %vm9916_vm1, %v615_v24  ;;  %5362 = vmatpush.xpose.msk.msra.mxu1 %vm9916_vm1, %v619_v28 }
  0xa2   : > { %5378 = vmatpush.xpose.msk.msra.mxu3 %vm9916_vm1, %v627_v27  ;;  %5327 = vmatmul.msk.f32.gmra.mxu1 %vm9916_vm1, %v619_v28  ;;  %v537_v28 = vld [vmem:[#allocation13] sm:$0xff] }
  0xa3   : > { %5335 = vmatmul.msk.f32.gmra.mxu3 %vm9916_vm1, %v627_v27  ;;  %5331 = vmatmul.msk.f32.gmra.mxu2 %vm9916_vm1, %v623_v29 }
  0xa4   : > { %5370 = vmatpush.xpose.msk.msra.mxu2 %vm9916_vm1, %v623_v29 }
  0xa5   : > { %5355 = vmatpush.xpose.msk.msra.mxu0 %vm9916_vm1, %v614_v8  ;;  %5363 = vmatpush.xpose.msk.msra.mxu1 %vm9916_vm1, %v618_v12  ;;  %v6663_v12 = vadd.s32 8, %v6655_v5 }
  0xa6   : > { %5379 = vmatpush.xpose.msk.msra.mxu3 %vm9916_vm1, %v626_v13  ;;  %v6666_v13 = vadd.s32 16, %v6655_v5 }
  0xa7   : > { %9951 = vst [vmem:[#allocation27_spill] sm:$0xff] %v6663_v12  ;;  %5572 = vset.pattern.permute.xlu0 %v6663_v12  ;;  %2669 = vperm.xlu2 %5571, %v2664_v14   ;;  %vm6714_vm3 = vcmp.eq.s32.totalorder %v6663_v12, %v6692_v31 }
  0xa8   : > { %5324 = vmatmul.msk.f32.gmra.mxu0 %vm9916_vm1, %v616_v22  ;;  %5371 = vmatpush.xpose.msk.msra.mxu2 %vm9916_vm1, %v622_v15  ;;  %9952 = vst [vmem:[#allocation28_spill] sm:$0xff] %v6666_v13  ;;  %vm6734_vm4 = vcmp.eq.s32.totalorder %v6666_v13, %v6692_v31 }
  0xa9   : > { %5356 = vmatpush.xpose.msk.msra.mxu0 %vm9916_vm1, %v6494_v55  ;;  %5364 = vmatpush.xpose.msk.msra.mxu1 %vm9916_vm1, %v6504_v61 }
  0xaa   : > { %5380 = vmatpush.xpose.msk.msra.mxu3 %vm9916_vm1, %v6508_v62  ;;  %5328 = vmatmul.msk.f32.gmra.mxu1 %vm9916_vm1, %v620_v25 }
  0xab   : > { %5336 = vmatmul.msk.f32.gmra.mxu3 %vm9916_vm1, %v628_v23  ;;  %5332 = vmatmul.msk.f32.gmra.mxu2 %vm9916_vm1, %v624_v26 }
  0xac   : > { %5372 = vmatpush.xpose.msk.msra.mxu2 %vm9916_vm1, %v6514_v1  ;;  %5573 = vset.pattern.permute.xlu1 %v6666_v13 }
  0xaf   : > { %2675 = vperm.xlu0 %5572, %v2664_v14  }
  0xb0   : > { %5337 = vmatmul.msk.f32.vlgmr.msrb.gmra.mxu0 %vm9916_vm1, %v629_v38 }
  0xb1   : > { %5385 = vmatpush.xpose.msk.msrb.mxu0 %vm9916_vm1, %v632_v42 }
  0xb2   : > { %5341 = vmatmul.msk.f32.vlgmr.msrb.gmra.mxu1 %vm9916_vm1, %v633_v39 }
  0xb3   : > { %5349 = vmatmul.msk.f32.vlgmr.msrb.gmra.mxu3 %vm9916_vm1, %v641_v40  ;;  %5345 = vmatmul.msk.f32.vlgmr.msrb.gmra.mxu2 %vm9916_vm1, %v637_v41 }
  0xb4   : > { %5393 = vmatpush.xpose.msk.msrb.mxu1 %vm9916_vm1, %v636_v43  ;;  %5409 = vmatpush.xpose.msk.msrb.mxu3 %vm9916_vm1, %v644_v45 }
  0xb5   : > { %5401 = vmatpush.xpose.msk.msrb.mxu2 %vm9916_vm1, %v640_v44  ;;  %5386 = vmatpush.xpose.msk.msrb.mxu0 %vm9916_vm1, %v631_v46 }
  0xb6   : > { %2681 = vperm.xlu1 %5573, %v2664_v14  }
  0xb8   : > { %5394 = vmatpush.xpose.msk.msrb.mxu1 %vm9916_vm1, %v635_v48  ;;  %5338 = vmatmul.msk.f32.gmra.mxu0 %vm9916_vm1, %v630_v47 }
  0xb9   : > { %5410 = vmatpush.xpose.msk.msrb.mxu3 %vm9916_vm1, %v643_v52  ;;  %5387 = vmatpush.xpose.msk.msrb.mxu0 %vm9916_vm1, %v630_v47  ;;  %v9966_v47 = vmov 0 }
  0xba   : > { %5402 = vmatpush.xpose.msk.msrb.mxu2 %vm9916_vm1, %v639_v54  ;;  %5342 = vmatmul.msk.f32.gmra.mxu1 %vm9916_vm1, %v634_v50  ;;  %v9967_v47 = vsel %vm6734_vm4, 4294967295, %v9966_v47 }
  0xbb   : > { %5350 = vmatmul.msk.f32.gmra.mxu3 %vm9916_vm1, %v642_v51  ;;  %5346 = vmatmul.msk.f32.gmra.mxu2 %vm9916_vm1, %v638_v53  ;;  %9968 = vst [vmem:[#allocation38_spill] sm:$0xff] %v9967_v47 }
  0xbc   : > { %5395 = vmatpush.xpose.msk.msrb.mxu1 %vm9916_vm1, %v634_v50 }
  0xbd   : > { %5411 = vmatpush.xpose.msk.msrb.mxu3 %vm9916_vm1, %v642_v51  ;;  %5388 = vmatpush.xpose.msk.msrb.mxu0 %vm9916_vm1, %v629_v38 }
  0xbe   : > { %5403 = vmatpush.xpose.msk.msrb.mxu2 %vm9916_vm1, %v638_v53  ;;  %5576 = vset.pattern.permute.xlu1 %v6663_v12 }
  0xc0   : > { %5396 = vmatpush.xpose.msk.msrb.mxu1 %vm9916_vm1, %v633_v39  ;;  %5339 = vmatmul.msk.f32.gmra.mxu0 %vm9916_vm1, %v631_v46  ;;  %v9960_v39 = vmov 0 }
  0xc1   : > { %5412 = vmatpush.xpose.msk.msrb.mxu3 %vm9916_vm1, %v641_v40  ;;  %v9961_v39 = vsel %vm6714_vm3, 4294967295, %v9960_v39 }
  0xc2   : > { %5404 = vmatpush.xpose.msk.msrb.mxu2 %vm9916_vm1, %v637_v41  ;;  %5343 = vmatmul.msk.f32.gmra.mxu1 %vm9916_vm1, %v635_v48  ;;  %9962 = vst [vmem:[#allocation34_spill] sm:$0xff] %v9961_v39 }
  0xc3   : > { %5351 = vmatmul.msk.f32.gmra.mxu3 %vm9916_vm1, %v643_v52  ;;  %5347 = vmatmul.msk.f32.gmra.mxu2 %vm9916_vm1, %v639_v54 }
  0xc8   : > { %5340 = vmatmul.msk.f32.gmra.mxu0 %vm9916_vm1, %v632_v42 }
  0xca   : > { %5344 = vmatmul.msk.f32.gmra.mxu1 %vm9916_vm1, %v636_v43 }
  0xcb   : > { %5352 = vmatmul.msk.f32.gmra.mxu3 %vm9916_vm1, %v644_v45  ;;  %5348 = vmatmul.msk.f32.gmra.mxu2 %vm9916_vm1, %v640_v44 }
 0x10d   : > { %v675_v55 = vpop.f32.mrf.mxu0 }
 0x10e   : > { %5357 = vmatmul.msk.f32.vlgmr.msra.gmra.mxu0 %vm9916_vm1, %v675_v55 }
 0x10f   : > { %v716_v56 = vpop.f32.mrf.mxu1  ;;  %5417 = vmatpush.xpose.msk.msra.mxu0 %vm9916_vm1, %v6531_v16 }
 0x110   : > { %5365 = vmatmul.msk.f32.vlgmr.msra.gmra.mxu1 %vm9916_vm1, %v716_v56 }
 0x113   : > { %5418 = vmatpush.xpose.msk.msra.mxu0 %vm9916_vm1, %v6534_v19  ;;  %v6675_v19 = vadd.s32 24, %v6655_v5 }
 0x115   : > { %v798_v57 = vpop.f32.mrf.mxu3  ;;  %v678_v58 = vpop.f32.mrf.mxu0  ;;  %9953 = vst [vmem:[#allocation29_spill] sm:$0xff] %v6675_v19  ;;  %5574 = vset.pattern.permute.xlu2 %v6675_v19  ;;  %vm6774_vm5 = vcmp.eq.s32.totalorder %v6675_v19, %v6692_v31 }
 0x116   : > { %5381 = vmatmul.msk.f32.vlgmr.msra.gmra.mxu3 %vm9916_vm1, %v798_v57  ;;  %5358 = vmatmul.msk.f32.gmra.mxu0 %vm9916_vm1, %v678_v58  ;;  %v757_v59 = vpop.f32.mrf.mxu2 }
 0x117   : > { %v719_v60 = vpop.f32.mrf.mxu1  ;;  %5373 = vmatmul.msk.f32.vlgmr.msra.gmra.mxu2 %vm9916_vm1, %v757_v59  ;;  %5419 = vmatpush.xpose.msk.msra.mxu0 %vm9916_vm1, %v6511_v63 }
 0x118   : > { %5366 = vmatmul.msk.f32.gmra.mxu1 %vm9916_vm1, %v719_v60 }
 0x11b   : > { %5420 = vmatpush.xpose.msk.msra.mxu0 %vm9916_vm1, %v6484_v49 }
 0x11d   : > { %v801_v61 = vpop.f32.mrf.mxu3  ;;  %v681_v62 = vpop.f32.mrf.mxu0  ;;  %2687 = vperm.xlu2 %5574, %v2664_v14  }
 0x11e   : > { %5382 = vmatmul.msk.f32.gmra.mxu3 %vm9916_vm1, %v801_v61  ;;  %5359 = vmatmul.msk.f32.gmra.mxu0 %vm9916_vm1, %v681_v62  ;;  %v760_v0 = vpop.f32.mrf.mxu2 }
 0x11f   : > { %v722_v1 = vpop.f32.mrf.mxu1  ;;  %5374 = vmatmul.msk.f32.gmra.mxu2 %vm9916_vm1, %v760_v0 }
 0x120   : > { %5367 = vmatmul.msk.f32.gmra.mxu1 %vm9916_vm1, %v722_v1 }
 0x125   : > { %v684_v63 = vpop.f32.mrf.mxu0  ;;  %5575 = vset.pattern.permute.xlu2 %v6655_v5 }
 0x126   : > { %v804_v2 = vpop.f32.mrf.mxu3  ;;  %5360 = vmatmul.msk.f32.gmra.mxu0 %vm9916_vm1, %v684_v63  ;;  %v763_v49 = vpop.f32.mrf.mxu2  ;;  %v9976_v63 = vmov 0 }
 0x127   : > { %5383 = vmatmul.msk.f32.gmra.mxu3 %vm9916_vm1, %v804_v2  ;;  %v725_v4 = vpop.f32.mrf.mxu1  ;;  %5375 = vmatmul.msk.f32.gmra.mxu2 %vm9916_vm1, %v763_v49  ;;  %v9977_v63 = vsel %vm6774_vm5, 4294967295, %v9976_v63 }
 0x128   : > { %5368 = vmatmul.msk.f32.gmra.mxu1 %vm9916_vm1, %v725_v4  ;;  %9978 = vst [vmem:[#allocation46_spill] sm:$0xff] %v9977_v63 }
 0x12d   : > { %v839_v6 = vpop.f32.mrf.mxu0 }
 0x12e   : > { %v807_v7 = vpop.f32.mrf.mxu3  ;;  %5389 = vmatmul.msk.f32.vlgmr.msrb.gmra.mxu0 %vm9916_vm1, %v839_v6  ;;  %v766_v8 = vpop.f32.mrf.mxu2 }
 0x12f   : > { %5384 = vmatmul.msk.f32.gmra.mxu3 %vm9916_vm1, %v807_v7  ;;  %v880_v10 = vpop.f32.mrf.mxu1  ;;  %5376 = vmatmul.msk.f32.gmra.mxu2 %vm9916_vm1, %v766_v8 }
 0x130   : > { %5397 = vmatmul.msk.f32.vlgmr.msrb.gmra.mxu1 %vm9916_vm1, %v880_v10 }
 0x135   : > { %v842_v15 = vpop.f32.mrf.mxu0 }
 0x136   : > { %v962_v16 = vpop.f32.mrf.mxu3  ;;  %5390 = vmatmul.msk.f32.gmra.mxu0 %vm9916_vm1, %v842_v15  ;;  %v921_v17 = vpop.f32.mrf.mxu2 }
 0x137   : > { %5413 = vmatmul.msk.f32.vlgmr.msrb.gmra.mxu3 %vm9916_vm1, %v962_v16  ;;  %v883_v18 = vpop.f32.mrf.mxu1  ;;  %5405 = vmatmul.msk.f32.vlgmr.msrb.gmra.mxu2 %vm9916_vm1, %v921_v17 }
 0x138   : > { %5398 = vmatmul.msk.f32.gmra.mxu1 %vm9916_vm1, %v883_v18 }
 0x13d   : > { %v845_v20 = vpop.f32.mrf.mxu0 }
 0x13e   : > { %v965_v21 = vpop.f32.mrf.mxu3  ;;  %5391 = vmatmul.msk.f32.gmra.mxu0 %vm9916_vm1, %v845_v20  ;;  %v924_v22 = vpop.f32.mrf.mxu2 }
 0x13f   : > { %5414 = vmatmul.msk.f32.gmra.mxu3 %vm9916_vm1, %v965_v21  ;;  %5406 = vmatmul.msk.f32.gmra.mxu2 %vm9916_vm1, %v924_v22  ;;  %v886_v23 = vpop.f32.mrf.mxu1 }
 0x140   : > { %5399 = vmatmul.msk.f32.gmra.mxu1 %vm9916_vm1, %v886_v23 }
 0x145   : > { %v848_v24 = vpop.f32.mrf.mxu0 }
 0x146   : > { %v968_v25 = vpop.f32.mrf.mxu3  ;;  %5392 = vmatmul.msk.f32.gmra.mxu0 %vm9916_vm1, %v848_v24  ;;  %v927_v26 = vpop.f32.mrf.mxu2 }
 0x147   : > { %5415 = vmatmul.msk.f32.gmra.mxu3 %vm9916_vm1, %v968_v25  ;;  %5407 = vmatmul.msk.f32.gmra.mxu2 %vm9916_vm1, %v927_v26  ;;  %v889_v27 = vpop.f32.mrf.mxu1 }
 0x148   : > { %5400 = vmatmul.msk.f32.gmra.mxu1 %vm9916_vm1, %v889_v27 }
 0x14e   : > { %v971_v29 = vpop.f32.mrf.mxu3  ;;  %5421 = vmatmul.msk.f32.vlgmr.msra.gmra.mxu0 %vm9916_vm1, %v537_v28  ;;  %v930_v30 = vpop.f32.mrf.mxu2 }
 0x14f   : > { %5416 = vmatmul.msk.f32.gmra.mxu3 %vm9916_vm1, %v971_v29  ;;  %5408 = vmatmul.msk.f32.gmra.mxu2 %vm9916_vm1, %v930_v30 }
 0x18b   : > { %v6700_v33 = vpop.f32.mrf.mxu0 }
 0x18c   : > { %9958 = vst [vmem:[#allocation32_spill] sm:$0xff] %v6700_v33  ;;  %v1302_v34 = vsel %vm6696_vm2, %v6700_v33, 0.0 }
 0x18d   : > { %v6705_v35 = vpop.f32.mrf.mxu1  ;;  %v1334_v36 = vsel %vm9916_vm1, %v1302_v34, 0.0 }
 0x18e   : > { %9959 = vst [vmem:[#allocation33_spill] sm:$0xff] %v6705_v35  ;;  %1335 = vadd.xlane.f32.xlu0 %v1334_v36  ;;  %v1306_v37 = vsel %vm6696_vm2, %v6705_v35, 0.0 }
 0x18f   : > { %v1346_v38 = vsel %vm9916_vm1, %v1306_v37, 0.0 }
 0x190   : > { %1347 = vadd.xlane.f32.xlu2 %v1346_v38 }
 0x193   : > { %v6718_v40 = vpop.f32.mrf.mxu0 }
 0x194   : > { %9963 = vst [vmem:[#allocation35_spill] sm:$0xff] %v6718_v40  ;;  %v1303_v41 = vsel %vm6714_vm3, %v6718_v40, 0.0 }
 0x195   : > { %v6723_v42 = vpop.f32.mrf.mxu1  ;;  %v1337_v43 = vsel %vm9916_vm1, %v1303_v41, 0.0  ;;  %v6212_v41 = vmov 8.0  }
 0x196   : > { %9964 = vst [vmem:[#allocation36_spill] sm:$0xff] %v6723_v42  ;;  %1338 = vadd.xlane.f32.xlu0 %v1337_v43  ;;  %v1307_v44 = vsel %vm6714_vm3, %v6723_v42, 0.0  ;;  %5683 = vrcp.f32 %v6212_v41 }
 0x197   : > { %v1349_v45 = vsel %vm9916_vm1, %v1307_v44, 0.0 }
 0x198   : > { %1350 = vadd.xlane.f32.xlu2 %v1349_v45 }
 0x199   : > { %v6730_v46 = vpop.f32.mrf.mxu3 }
 0x19a   : > { %9965 = vst [vmem:[#allocation37_spill] sm:$0xff] %v6730_v46  ;;  %v6738_v48 = vpop.f32.mrf.mxu2  ;;  %v1314_v50 = vsel %vm6696_vm2, %v6730_v46, 0.0 }
 0x19b   : > { %9969 = vst [vmem:[#allocation39_spill] sm:$0xff] %v6738_v48  ;;  %v6743_v51 = vpop.f32.mrf.mxu0  ;;  %v1370_v52 = vsel %vm9916_vm1, %v1314_v50, 0.0  ;;  %v1310_v53 = vsel %vm6696_vm2, %v6738_v48, 0.0 }
 0x19c   : > { %9970 = vst [vmem:[#allocation40_spill] sm:$0xff] %v6743_v51  ;;  %v1304_v54 = vsel %vm6734_vm4, %v6743_v51, 0.0  ;;  %v1358_v56 = vsel %vm9916_vm1, %v1310_v53, 0.0 }
 0x19d   : > { %v1340_v55 = vsel %vm9916_vm1, %v1304_v54, 0.0  ;;  %v6754_v57 = vpop.f32.mrf.mxu1 }
 0x19e   : > { %9971 = vst [vmem:[#allocation41_spill] sm:$0xff] %v6754_v57  ;;  %1341 = vadd.xlane.f32.xlu1 %v1340_v55  ;;  %1371 = vadd.xlane.f32.xlu0 %v1370_v52  ;;  %v1308_v58 = vsel %vm6734_vm4, %v6754_v57, 0.0 }
 0x19f   : > { %v1352_v1 = vsel %vm9916_vm1, %v1308_v58, 0.0  ;;  %v5684_v58 = vpop.eup %5683 }
 0x1a0   : > { %1359 = vadd.xlane.f32.xlu2 %v1358_v56  ;;  %vm2629_vm6 = vweird.f32 %v5684_v58 }
 0x1a1   : > { %v6759_v59 = vpop.f32.mrf.mxu3 }
 0x1a2   : > { %9972 = vst [vmem:[#allocation42_spill] sm:$0xff] %v6759_v59  ;;  %v1315_v60 = vsel %vm6714_vm3, %v6759_v59, 0.0  ;;  %v6764_v61 = vpop.f32.mrf.mxu2 }
 0x1a3   : > { %9973 = vst [vmem:[#allocation43_spill] sm:$0xff] %v6764_v61  ;;  %v6766_v62 = vpop.f32.mrf.mxu0  ;;  %v1373_v0 = vsel %vm9916_vm1, %v1315_v60, 0.0  ;;  %v1311_v49 = vsel %vm6714_vm3, %v6764_v61, 0.0 }
 0x1a4   : > { %9974 = vst [vmem:[#allocation44_spill] sm:$0xff] %v6766_v62  ;;  %v1305_v6 = vsel %vm6774_vm5, %v6766_v62, 0.0  ;;  %v1361_v10 = vsel %vm9916_vm1, %v1311_v49, 0.0  ;;  %v2625_v49 = vmul.f32 8.0, %v5684_v58 }
 0x1a5   : > { %v6770_v2 = vpop.f32.mrf.mxu1  ;;  %v1343_v11 = vsel %vm9916_vm1, %v1305_v6, 0.0 }
 0x1a6   : > { %9975 = vst [vmem:[#allocation45_spill] sm:$0xff] %v6770_v2  ;;  %1374 = vadd.xlane.f32.xlu1 %v1373_v0  ;;  %1353 = vadd.xlane.f32.xlu0 %v1352_v1  ;;  %v1309_v16 = vsel %vm6774_vm5, %v6770_v2, 0.0  ;;  %v5680_v1 = vld [vmem:[%s410_s24] ss:$0 sm:$0xff]  ;;  %s6217_s24 = smov 128  }
 0x1a7   : > { %v1355_v24 = vsel %vm9916_vm1, %v1309_v16, 0.0 }
 0x1aa   : > { %v6781_v3 = vpop.f32.mrf.mxu3  ;;  %v6789_v7 = vpop.f32.mrf.mxu2 }
 0x1ab   : > { %9979 = vst [vmem:[#allocation47_spill] sm:$0xff] %v6781_v3  ;;  %v1316_v4 = vsel %vm6734_vm4, %v6781_v3, 0.0  ;;  %v6792_v9 = vpop.f32.mrf.mxu0  ;;  %v1312_v27 = vsel %vm6734_vm4, %v6789_v7, 0.0 }
 0x1ac   : > { %9980 = vst [vmem:[#allocation48_spill] sm:$0xff] %v6789_v7  ;;  %v1376_v8 = vsel %vm9916_vm1, %v1316_v4, 0.0  ;;  %v1364_v37 = vsel %vm9916_vm1, %v1312_v27, 0.0  ;;  %v1318_v50 = vsel %vm6696_vm2, %v6792_v9, 0.0 }
 0x1ad   : > { %9981 = vst [vmem:[#allocation49_spill] sm:$0xff] %v6792_v9  ;;  %1377 = vadd.xlane.f32.xlu2 %v1376_v8  ;;  %v6796_v14 = vpop.f32.mrf.mxu1  ;;  %v1382_v60 = vsel %vm9916_vm1, %v1318_v50, 0.0 }
 0x1ae   : > { %9982 = vst [vmem:[#allocation50_spill] sm:$0xff] %v6796_v14  ;;  %1344 = vadd.xlane.f32.xlu1 %v1343_v11  ;;  %1362 = vadd.xlane.f32.xlu0 %v1361_v10  ;;  %v1322_v15 = vsel %vm6696_vm2, %v6796_v14, 0.0 }
 0x1af   : > { %v1394_v17 = vsel %vm9916_vm1, %v1322_v15, 0.0 }
 0x1b2   : > { %v6805_v18 = vpop.f32.mrf.mxu3  ;;  %v6810_v21 = vpop.f32.mrf.mxu2 }
 0x1b3   : > { %9983 = vst [vmem:[#allocation51_spill] sm:$0xff] %v6805_v18  ;;  %v1317_v20 = vsel %vm6774_vm5, %v6805_v18, 0.0  ;;  %v6812_v22 = vpop.f32.mrf.mxu0  ;;  %v1313_v26 = vsel %vm6774_vm5, %v6810_v21, 0.0 }
 0x1b4   : > { %9984 = vst [vmem:[#allocation52_spill] sm:$0xff] %v6810_v21  ;;  %v1379_v23 = vsel %vm9916_vm1, %v1317_v20, 0.0  ;;  %v1367_v29 = vsel %vm9916_vm1, %v1313_v26, 0.0  ;;  %v1319_v43 = vsel %vm6714_vm3, %v6812_v22, 0.0  ;;  %v2626_v20 = vsub.f32 1.0, %v2625_v49 }
 0x1b5   : > { %9985 = vst [vmem:[#allocation53_spill] sm:$0xff] %v6812_v22  ;;  %1395 = vadd.xlane.f32.xlu2 %v1394_v17  ;;  %v6816_v25 = vpop.f32.mrf.mxu1  ;;  %v1385_v53 = vsel %vm9916_vm1, %v1319_v43, 0.0  ;;  %v9847_v22 = vmov 0  }
 0x1b6   : > { %9986 = vst [vmem:[#allocation54_spill] sm:$0xff] %v6816_v25  ;;  %1380 = vadd.xlane.f32.xlu0 %v1379_v23  ;;  %1356 = vadd.xlane.f32.xlu1 %v1355_v24  ;;  %v1323_v28 = vsel %vm6714_vm3, %v6816_v25, 0.0 }
 0x1b7   : > { %v1397_v38 = vsel %vm9916_vm1, %v1323_v28, 0.0  ;;  %5580 = vset.pattern.permute.xlu0 %v9847_v22 }
 0x1ba   : > { %v6828_v30 = vpop.f32.mrf.mxu3  ;;  %v6830_v34 = vpop.f32.mrf.mxu2 }
 0x1bb   : > { %9987 = vst [vmem:[#allocation55_spill] sm:$0xff] %v6828_v30  ;;  %v6832_v36 = vpop.f32.mrf.mxu0  ;;  %v1326_v44 = vsel %vm6696_vm2, %v6830_v34, 0.0  ;;  %v1330_v4 = vsel %vm6696_vm2, %v6828_v30, 0.0 }
 0x1bc   : > { %9988 = vst [vmem:[#allocation56_spill] sm:$0xff] %v6830_v34  ;;  %v1406_v55 = vsel %vm9916_vm1, %v1326_v44, 0.0  ;;  %v1320_v8 = vsel %vm6734_vm4, %v6832_v36, 0.0  ;;  %v1418_v15 = vsel %vm9916_vm1, %v1330_v4, 0.0 }
 0x1bd   : > { %9989 = vst [vmem:[#allocation57_spill] sm:$0xff] %v6832_v36  ;;  %1368 = vadd.xlane.f32.xlu2 %v1367_v29  ;;  %v6842_v45 = vpop.f32.mrf.mxu1  ;;  %v1388_v23 = vsel %vm9916_vm1, %v1320_v8, 0.0  ;;  %v2627_v29 = vmul.f32 %v5684_v58, %v2626_v20 }
 0x1be   : > { %1365 = vadd.xlane.f32.xlu1 %v1364_v37  ;;  %1398 = vadd.xlane.f32.xlu0 %v1397_v38  ;;  %9990 = vst [vmem:[#allocation58_spill] sm:$0xff] %v6842_v45  ;;  %v1324_v38 = vsel %vm6734_vm4, %v6842_v45, 0.0 }
 0x1c2   : > { %v6847_v52 = vpop.f32.mrf.mxu2  ;;  %v6853_v56 = vpop.f32.mrf.mxu3 }
 0x1c3   : > { %9991 = vst [vmem:[#allocation59_spill] sm:$0xff] %v6847_v52  ;;  %v6850_v54 = vpop.f32.mrf.mxu0  ;;  %v1331_v0 = vsel %vm6714_vm3, %v6853_v56, 0.0  ;;  %v1327_v8 = vsel %vm6714_vm3, %v6847_v52, 0.0 }
 0x1c4   : > { %9992 = vst [vmem:[#allocation60_spill] sm:$0xff] %v6850_v54  ;;  %v1421_v6 = vsel %vm9916_vm1, %v1331_v0, 0.0 }
 0x1c5   : > { %9993 = vst [vmem:[#allocation61_spill] sm:$0xff] %v6853_v56  ;;  %1386 = vadd.xlane.f32.xlu2 %v1385_v53  ;;  %v6868_v10 = vpop.f32.mrf.mxu1  ;;  %v1400_v53 = vsel %vm9916_vm1, %v1324_v38, 0.0 }
 0x1c6   : > { %1383 = vadd.xlane.f32.xlu1 %v1382_v60  ;;  %1407 = vadd.xlane.f32.xlu0 %v1406_v55  ;;  %9994 = vst [vmem:[#allocation62_spill] sm:$0xff] %v6868_v10  ;;  %v1325_v27 = vsel %vm6774_vm5, %v6868_v10, 0.0  ;;  %v2628_v55 = vadd.f32 %v5684_v58, %v2627_v29 }
 0x1c7   : > { %v1403_v43 = vsel %vm9916_vm1, %v1325_v27, 0.0 }
 0x1c8   : > { %v2630_v4 = vsel %vm2629_vm6, %v5684_v58, %v2628_v55 }
 0x1ca   : > { %v6871_v16 = vpop.f32.mrf.mxu2  ;;  %v6874_v24 = vpop.f32.mrf.mxu3 }
 0x1cb   : > { %v2614_v11 = vpop.f32.mrf.mxu0  ;;  %9995 = vst [vmem:[#allocation63_spill] sm:$0xff] %v6871_v16  ;;  %v1332_v37 = vsel %vm6734_vm4, %v6874_v24, 0.0 }
 0x1cc   : > { %v2615_v17 = vadd.f32 %v5680_v1, %v2614_v11  ;;  %9996 = vst [vmem:[#allocation64_spill] sm:$0xff] %v6874_v24  ;;  %v1424_v50 = vsel %vm9916_vm1, %v1332_v37, 0.0  ;;  %v1328_v1 = vsel %vm6734_vm4, %v6871_v16, 0.0  ;;  %v1321_v37 = vsel %vm6774_vm5, %v6850_v54, 0.0 }
 0x1cd   : > { %1422 = vadd.xlane.f32.xlu2 %v1421_v6 }
 0x1ce   : > { %v2617_v26 = vsel %vm9916_vm1, %v2615_v17, 0.0  ;;  %1419 = vadd.xlane.f32.xlu1 %v1418_v15  ;;  %1389 = vadd.xlane.f32.xlu0 %v1388_v23  ;;  %v1412_v15 = vsel %vm9916_vm1, %v1328_v1, 0.0 }
 0x1cf   : > { %v2618_v28 = vrot.slane %v2617_v26, 4 }
 0x1d1   : > { %v2619_v41 = vadd.f32 %v2618_v28, %v2617_v26  ;;  %v1409_v26 = vsel %vm9916_vm1, %v1327_v8, 0.0  ;;  %v6916_v8 = vpop.permute.xlu0 %2675 }
 0x1d2   : > { %v6889_v0 = vpop.f32.mrf.mxu2 }
 0x1d3   : > { %v2620_v44 = vrot.slane %v2619_v41, 2  ;;  %9997 = vst [vmem:[#allocation65_spill] sm:$0xff] %v6889_v0  ;;  %v1329_v6 = vsel %vm6774_vm5, %v6889_v0, 0.0 }
 0x1d4   : > { %v1415_v23 = vsel %vm9916_vm1, %v1329_v6, 0.0  ;;  %v6914_v6 = vpop.permute.xlu2 %2669 }
 0x1d5   : > { %1404 = vadd.xlane.f32.xlu2 %v1403_v43  ;;  %v2621_v60 = vadd.f32 %v2620_v44, %v2619_v41  ;;  %v1391_v41 = vsel %vm9916_vm1, %v1321_v37, 0.0  ;;  %v6908_v43 = vpop.f32.mrf.mxu3 }
 0x1d6   : > { %1425 = vadd.xlane.f32.xlu0 %v1424_v50  ;;  %1401 = vadd.xlane.f32.xlu1 %v1400_v53  ;;  %9998 = vst [vmem:[#allocation66_spill] sm:$0xff] %v6908_v43 }
 0x1d7   : > { %v2622_v49 = vrot.slane %v2621_v60, 1 }
 0x1d9   : > { %v2623_v11 = vadd.f32 %v2622_v49, %v2621_v60 }
 0x1db   : > { %v2631_v20 = vmul.f32 %v2630_v4, %v2623_v11 }
 0x1dd   : > { %1413 = vadd.xlane.f32.xlu2 %v1412_v15  ;;  %v2632_v27 = vsub.f32 %v2615_v17, %v2631_v20  ;;  %v1333_v17 = vsel %vm6774_vm5, %v6908_v43, 0.0  ;;  %v6918_v20 = vpop.permute.xlu2 %2687 }
 0x1de   : > { %1416 = vadd.xlane.f32.xlu0 %v1415_v23  ;;  %1410 = vadd.xlane.f32.xlu1 %v1409_v26  ;;  %v1427_v55 = vsel %vm9916_vm1, %v1333_v17, 0.0 }
 0x1df   : > { %v2633_v58 = vmul.f32 %v2632_v27, %v2632_v27 }
 0x1e1   : > { %v2634_v28 = vsel %vm9916_vm1, %v2633_v58, 0.0  ;;  %v5681_v58 = vld [vmem:[%s6443_s16] ss:$0 sm:$0xff] }
 0x1e2   : > { %v2635_v29 = vrot.slane %v2634_v28, 4 }
 0x1e4   : > { %v2636_v38 = vadd.f32 %v2635_v29, %v2634_v28 }
 0x1e6   : > { %v2637_v44 = vrot.slane %v2636_v38, 2  ;;  %1392 = vadd.xlane.f32.xlu1 %v1391_v41 }
 0x1e8   : > { %v2638_v50 = vadd.f32 %v2637_v44, %v2636_v38 }
 0x1ea   : > { %v2639_v53 = vrot.slane %v2638_v50, 1 }
 0x1ec   : > { %v2640_v60 = vadd.f32 %v2639_v53, %v2638_v50  ;;  %v6929_v53 = vpop.permute.xlu1 %2681 }
 0x1ee   : > { %v2641_v1 = vmul.f32 %v2640_v60, %v2630_v4  ;;  %1428 = vadd.xlane.f32.xlu1 %v1427_v55  ;;  %v2656_v4 = vmul.f32 %v5681_v58, %v2632_v27 }
 0x1f0   : > { %v2642_v49 = vadd.f32 1e-05, %v2641_v1 }
 0x1f2   : > { %5685 = vrsqrt.f32 %v2642_v49  ;;  %vm2649_vm8 = vweird.f32 %v2642_v49 }
 0x1f8   : > { %v5686_v11 = vpop.eup %5685 }
 0x1f9   : > { %v2644_v15 = vmul.f32 %v5686_v11, %v2642_v49  ;;  %vm2650_vm7 = vweird.f32 %v5686_v11 }
 0x1fa   : > { %vm2651_vm9 = vmor %vm2649_vm8, %vm2650_vm7 }
 0x1fb   : > { %v2645_v23 = vmul.f32 %v5686_v11, %v2644_v15 }
 0x1fd   : > { %v2646_v26 = vmul.f32 0.5, %v2645_v23 }
 0x1ff   : > { %v2647_v28 = vsub.f32 1.5, %v2646_v26 }
 0x201   : > { %v1336_v29 = vpop.xlane.xlu0 %1335  ;;  %v2648_v37 = vmul.f32 %v5686_v11, %v2647_v28 }
 0x202   : > { %v6921_v38 = vmax.f32 %v1336_v29, 0.0 }
 0x203   : > { %v1348_v41 = vpop.xlane.xlu2 %1347  ;;  %v2652_v44 = vsel %vm2651_vm9, %v5686_v11, %v2648_v37 }
 0x204   : > { %5687 = vrsqrt.f32 %v6921_v38  ;;  %v6924_v50 = vmax.f32 %v1348_v41, 0.0  ;;  %2730 = vperm.xlu2 %5575, %v2652_v44   ;;  %v6926_v17 = vmul.f32 %v2656_v4, %v2652_v44  ;;  %vm1469_vm10 = vcmp.eq.f32.partialorder %v6921_v38, inf }
 0x205   : > { %vm1471_vm11 = vcmp.eq.f32.partialorder %v6921_v38, 0.0 }
 0x206   : > { %9999 = vst [vmem:[#allocation67_spill] sm:$0xff] %v6926_v17  ;;  %5689 = vrsqrt.f32 %v6924_v50  ;;  %vm1517_vm13 = vcmp.eq.f32.partialorder %v6924_v50, inf  ;;  %vm1519_vm14 = vcmp.eq.f32.partialorder %v6924_v50, 0.0 }
 0x207   : > { %2736 = vperm.xlu1 %5576, %v2652_v44  }
 0x209   : > { %v1339_v55 = vpop.xlane.xlu0 %1338 }
 0x20a   : > { %v5688_v60 = vpop.eup %5687  ;;  %v6931_v27 = vmax.f32 %v1339_v55, 0.0 }
 0x20b   : > { %v1351_v1 = vpop.xlane.xlu2 %1350  ;;  %v1463_v49 = vmul.f32 %v5688_v60, %v6921_v38 }
 0x20c   : > { %v5690_v11 = vpop.eup %5689  ;;  %5691 = vrsqrt.f32 %v6931_v27  ;;  %v6935_v15 = vmax.f32 %v1351_v1, 0.0  ;;  %5577 = vset.pattern.permute.xlu2 %v6666_v13  ;;  %vm1481_vm15 = vcmp.eq.f32.partialorder %v6931_v27, inf  ;;  %vm1483_vm0 = vcmp.eq.f32.partialorder %v6931_v27, 0.0 }
 0x20d   : > { %v1464_v23 = vmul.f32 %v5688_v60, %v1463_v49  ;;  %v1511_v26 = vmul.f32 %v5690_v11, %v6924_v50 }
 0x20e   : > { %5693 = vrsqrt.f32 %v6935_v15  ;;  %vm1529_vm6 = vcmp.eq.f32.partialorder %v6935_v15, inf  ;;  %vm1531_vm7 = vcmp.eq.f32.partialorder %v6935_v15, 0.0 }
 0x20f   : > { %5578 = vset.pattern.permute.xlu1 %v6675_v19  ;;  %v1465_v58 = vmul.f32 0.5, %v1464_v23  ;;  %v1512_v28 = vmul.f32 %v5690_v11, %v1511_v26 }
 0x211   : > { %v1342_v29 = vpop.xlane.xlu1 %1341  ;;  %v6941_v37 = vpop.xlane.xlu0 %1371  ;;  %v1466_v4 = vsub.f32 1.5, %v1465_v58  ;;  %v1513_v41 = vmul.f32 0.5, %v1512_v28 }
 0x212   : > { %v5692_v55 = vpop.eup %5691  ;;  %v6943_v43 = vmax.f32 %v1342_v29, 0.0  ;;  %v7049_v61 = vmax.f32 %v6941_v37, 0.0 }
 0x213   : > { %v1467_v1 = vmul.f32 %v5688_v60, %v1466_v4  ;;  %v1475_v24 = vmul.f32 %v5692_v55, %v6931_v27  ;;  %v1514_v49 = vsub.f32 1.5, %v1513_v41  ;;  %v1360_v56 = vpop.xlane.xlu2 %1359 }
 0x214   : > { %v5694_v30 = vpop.eup %5693  ;;  %5695 = vrsqrt.f32 %v6943_v43  ;;  %2742 = vperm.xlu2 %5577, %v2652_v44   ;;  %v6949_v16 = vmax.f32 %v1360_v56, 0.0  ;;  %vm1493_vm8 = vcmp.eq.f32.partialorder %v6943_v43, inf  ;;  %vm1495_vm9 = vcmp.eq.f32.partialorder %v6943_v43, 0.0 }
 0x215   : > { %v1476_v52 = vmul.f32 %v5692_v55, %v1475_v24  ;;  %v1523_v23 = vmul.f32 %v5694_v30, %v6935_v15  ;;  %v1515_v26 = vmul.f32 %v5690_v11, %v1514_v49  ;;  %v1468_v58 = vmul.f32 %v1467_v1, %v6921_v38 }
 0x216   : > { %v6956_v24 = vadd.s32 4294967288, %v6692_v31  ;;  %5697 = vrsqrt.f32 %v6949_v16 }
 0x217   : > { %2748 = vperm.xlu1 %5578, %v2652_v44   ;;  %v1477_v28 = vmul.f32 0.5, %v1476_v52  ;;  %v1524_v29 = vmul.f32 %v5694_v30, %v1523_v23  ;;  %v1472_v44 = vand.u32 2147483648, %v6921_v38  ;;  %v1516_v56 = vmul.f32 %v1515_v26, %v6924_v50 }
 0x218   : > { %10000 = vst [vmem:[#allocation68_spill] sm:$0xff] %v6956_v24  ;;  %v1470_v1 = vsel %vm1469_vm10, %v6921_v38, %v1468_v58  ;;  %v1532_v38 = vand.u32 2147483648, %v6935_v15  ;;  %vm1885_vm10 = vcmask 195712  }
 0x219   : > { %v6951_v60 = vpop.xlane.xlu1 %1374  ;;  %v1354_v4 = vpop.xlane.xlu0 %1353  ;;  %v1478_v41 = vsub.f32 1.5, %v1477_v28  ;;  %v1525_v52 = vmul.f32 0.5, %v1524_v29  ;;  %v6972_v26 = vsel %vm1471_vm11, %v1472_v44, %v1470_v1 }
 0x21a   : > { %v5696_v10 = vpop.eup %5695  ;;  %v6958_v11 = vmax.f32 %v1354_v4, 0.0 }
 0x21b   : > { %v1487_v49 = vmul.f32 %v5696_v10, %v6943_v43  ;;  %v1479_v23 = vmul.f32 %v5692_v55, %v1478_v41  ;;  %v1526_v28 = vsub.f32 1.5, %v1525_v52  ;;  %v1484_v55 = vand.u32 2147483648, %v6931_v27 }
 0x21c   : > { %5699 = vrsqrt.f32 %v6958_v11  ;;  %v1518_v41 = vsel %vm1517_vm13, %v6924_v50, %v1516_v56  ;;  %vm1541_vm11 = vcmp.eq.f32.partialorder %v6958_v11, inf  ;;  %vm1543_vm13 = vcmp.eq.f32.partialorder %v6958_v11, 0.0  ;;  %5581 = vset.pattern.permute.xlu2 %v9847_v22 }
 0x21d   : > { %v1488_v4 = vmul.f32 %v5696_v10, %v1487_v49  ;;  %v1480_v29 = vmul.f32 %v1479_v23, %v6931_v27  ;;  %v1527_v58 = vmul.f32 %v5694_v30, %v1526_v28  ;;  %v1520_v49 = vand.u32 2147483648, %v6924_v50 }
 0x21e   : > { %v1878_v30 = vperm.slane %v6972_v26, %v6692_v31 }
 0x21f   : > { %v1489_v34 = vmul.f32 0.5, %v1488_v4  ;;  %v1482_v14 = vsel %vm1481_vm15, %v6931_v27, %v1480_v29  ;;  %v1528_v25 = vmul.f32 %v1527_v58, %v6935_v15  ;;  %v6990_v27 = vsel %vm1519_vm14, %v1520_v49, %v1518_v41  ;;  %5579 = vset.pattern.permute.xlu1 %v9847_v22 }
 0x220   : > { %v1378_v52 = vpop.xlane.xlu2 %1377  ;;  %v6979_v23 = vsel %vm1483_vm0, %v1484_v55, %v1482_v14  ;;  %v6992_v14 = vpop.eup %5697  ;;  %v1891_v41 = vperm.slane %v6990_v27, %v6692_v31  ;;  %vm1889_vm0 = vcmask 261312  }
 0x221   : > { %v1345_v44 = vpop.xlane.xlu1 %1344  ;;  %v1490_v56 = vsub.f32 1.5, %v1489_v34  ;;  %v1880_v1 = vperm.slane %v6979_v23, %v6956_v24  ;;  %v1530_v4 = vsel %vm1529_vm6, %v6935_v15, %v1528_v25  ;;  %v1363_v49 = vpop.xlane.xlu0 %1362  ;;  %v7008_v25 = vadd.s32 4294967280, %v6692_v31 }
 0x222   : > { %v6994_v28 = vmax.f32 %v1345_v44, 0.0  ;;  %v5700_v29 = vpop.eup %5699  ;;  %v6999_v34 = vsel %vm1531_vm7, %v1532_v38, %v1530_v4  ;;  %v1496_v15 = vand.u32 2147483648, %v6943_v43  ;;  %vm1565_vm6 = vcmp.eq.f32.partialorder %v6949_v16, inf }
 0x223   : > { %v1491_v55 = vmul.f32 %v5696_v10, %v1490_v56  ;;  %v1882_v58 = vsel %vm1881_vm12, %v1880_v1, %v1878_v30  ;;  %v1892_v50 = vperm.slane %v6999_v34, %v6956_v24  ;;  %10001 = vst [vmem:[#allocation69_spill] sm:$0xff] %v7008_v25  ;;  %v1559_v10 = vmul.f32 %v6992_v14, %v6949_v16 }
 0x224   : > { %5701 = vrsqrt.f32 %v6994_v28  ;;  %v1535_v30 = vmul.f32 %v5700_v29, %v6958_v11  ;;  %v7018_v56 = vmax.f32 %v1378_v52, 0.0  ;;  %vm1505_vm14 = vcmp.eq.f32.partialorder %v6994_v28, inf }
 0x225   : > { %v1492_v44 = vmul.f32 %v1491_v55, %v6943_v43  ;;  %v7015_v38 = vsel %vm1881_vm12, %v1892_v50, %v1891_v41  ;;  %v7024_v55 = vmax.f32 %v1363_v49, 0.0  ;;  %v1560_v41 = vmul.f32 %v6992_v14, %v1559_v10 }
 0x226   : > { %v1536_v18 = vmul.f32 %v5700_v29, %v1535_v30  ;;  %5703 = vrsqrt.f32 %v7018_v56  ;;  %v7037_v49 = vmax.f32 %v6951_v60, 0.0  ;;  %vm1507_vm15 = vcmp.eq.f32.partialorder %v6994_v28, 0.0 }
 0x227   : > { %v1494_v4 = vsel %vm1493_vm8, %v6943_v43, %v1492_v44  ;;  %5705 = vrsqrt.f32 %v7024_v55 }
 0x228   : > { %v7020_v1 = vpop.xlane.xlu2 %1395  ;;  %v7026_v36 = vsel %vm1495_vm9, %v1496_v15, %v1494_v4  ;;  %v1561_v15 = vmul.f32 0.5, %v1560_v41  ;;  %v1537_v10 = vmul.f32 0.5, %v1536_v18  ;;  %v7055_v41 = vadd.s32 4294967272, %v6692_v31 }
 0x229   : > { %v1357_v54 = vpop.xlane.xlu1 %1356  ;;  %v1884_v50 = vperm.slane %v7026_v36, %v7008_v25  ;;  %v7094_v0 = vmax.f32 %v7020_v1, 0.0  ;;  %vm1567_vm9 = vcmp.eq.f32.partialorder %v6949_v16, 0.0 }
 0x22a   : > { %v5702_v52 = vpop.eup %5701  ;;  %v7031_v9 = vmax.f32 %v1357_v54, 0.0  ;;  %v1538_v54 = vsub.f32 1.5, %v1537_v10 }
 0x22b   : > { %v1499_v44 = vmul.f32 %v5702_v52, %v6994_v28  ;;  %v1886_v43 = vsel %vm1885_vm10, %v1884_v50, %v1882_v58  ;;  %v1562_v50 = vsub.f32 1.5, %v1561_v15 }
 0x22c   : > { %5707 = vrsqrt.f32 %v7031_v9  ;;  %v7043_v7 = vpop.eup %5703  ;;  %v1539_v21 = vmul.f32 %v5700_v29, %v1538_v54  ;;  %v1544_v29 = vand.u32 2147483648, %v6958_v11  ;;  %vm1553_vm7 = vcmp.eq.f32.partialorder %v7031_v9, inf }
 0x22d   : > { %v1500_v4 = vmul.f32 %v5702_v52, %v1499_v44  ;;  %5709 = vrsqrt.f32 %v7037_v49  ;;  %v7046_v48 = vpop.eup %5705  ;;  %v1563_v15 = vmul.f32 %v6992_v14, %v1562_v50  ;;  %v1631_v42 = vmul.f32 %v7043_v7, %v7018_v56 }
 0x22e   : > { %v1540_v10 = vmul.f32 %v1539_v21, %v6958_v11  ;;  %vm1555_vm8 = vcmp.eq.f32.partialorder %v7031_v9, 0.0 }
 0x22f   : > { %v1501_v59 = vmul.f32 0.5, %v1500_v4 }
 0x230   : > { %v1369_v30 = vpop.xlane.xlu2 %1368  ;;  %v1542_v21 = vsel %vm1541_vm11, %v6958_v11, %v1540_v10  ;;  %vm1637_vm11 = vcmp.eq.f32.partialorder %v7018_v56, inf }
 0x231   : > { %v7041_v3 = vmax.f32 %v1369_v30, 0.0  ;;  %v1366_v58 = vpop.xlane.xlu1 %1365  ;;  %v1502_v60 = vsub.f32 1.5, %v1501_v59  ;;  %v7060_v59 = vpop.xlane.xlu0 %1380  ;;  %v1571_v30 = vmul.f32 %v7046_v48, %v7024_v55 }
 0x232   : > { %v7052_v18 = vmax.f32 %v1366_v58, 0.0  ;;  %v5708_v44 = vpop.eup %5707  ;;  %v1508_v58 = vand.u32 2147483648, %v6994_v28 }
 0x233   : > { %5711 = vrsqrt.f32 %v7041_v3  ;;  %v1503_v4 = vmul.f32 %v5702_v52, %v1502_v60  ;;  %v1547_v37 = vmul.f32 %v5708_v44, %v7031_v9  ;;  %v7072_v60 = vsel %vm1543_vm13, %v1544_v29, %v1542_v21  ;;  %v7076_v57 = vpop.eup %5709 }
 0x234   : > { %5713 = vrsqrt.f32 %v7052_v18  ;;  %v1894_v11 = vperm.slane %v7072_v60, %v7008_v25  ;;  %vm1601_vm13 = vcmp.eq.f32.partialorder %v7041_v3, inf }
 0x235   : > { %v1504_v52 = vmul.f32 %v1503_v4, %v6994_v28  ;;  %v1548_v54 = vmul.f32 %v5708_v44, %v1547_v37  ;;  %5715 = vrsqrt.f32 %v7049_v61 }
 0x237   : > { %v1506_v50 = vsel %vm1505_vm14, %v6994_v28, %v1504_v52  ;;  %v1549_v37 = vmul.f32 0.5, %v1548_v54  ;;  %v1895_v52 = vsel %vm1885_vm10, %v1894_v11, %v7015_v38  ;;  %v1572_v28 = vmul.f32 %v7046_v48, %v1571_v30 }
 0x238   : > { %v1387_v14 = vpop.xlane.xlu2 %1386  ;;  %v7085_v29 = vsel %vm1507_vm15, %v1508_v58, %v1506_v50  ;;  %v1632_v58 = vmul.f32 %v7043_v7, %v1631_v42  ;;  %v1619_v38 = vmul.f32 %v7076_v57, %v7037_v49  ;;  %vm1603_vm14 = vcmp.eq.f32.partialorder %v7041_v3, 0.0 }
 0x239   : > { %v5712_v4 = vpop.eup %5711  ;;  %v7083_v10 = vmax.f32 %v1387_v14, 0.0  ;;  %v1888_v21 = vperm.slane %v7085_v29, %v7055_v41  ;;  %v1564_v14 = vmul.f32 %v1563_v15, %v6949_v16  ;;  %v1550_v54 = vsub.f32 1.5, %v1549_v37  ;;  %v1384_v42 = vpop.xlane.xlu1 %1383 }
 0x23a   : > { %v1595_v62 = vmul.f32 %v5712_v4, %v7041_v3  ;;  %v5714_v35 = vpop.eup %5713  ;;  %v7118_v45 = vpop.xlane.xlu0 %1398  ;;  %v1633_v39 = vmul.f32 0.5, %v1632_v58  ;;  %vm1589_vm15 = vcmp.eq.f32.partialorder %v7052_v18, inf }
 0x23b   : > { %v1890_v50 = vsel %vm1889_vm0, %v1888_v21, %v1886_v43  ;;  %v1583_v40 = vmul.f32 %v5714_v35, %v7052_v18  ;;  %5717 = vrsqrt.f32 %v7083_v10  ;;  %v1551_v30 = vmul.f32 %v5708_v44, %v1550_v54  ;;  %v7110_v11 = vpop.eup %5715 }
 0x23c   : > { %v1596_v33 = vmul.f32 %v5712_v4, %v1595_v62  ;;  %v7105_v1 = vmul.f32 %v1890_v50, %v6972_v26  ;;  %v7108_v15 = vmul.f32 %v1890_v50, %v6979_v23  ;;  %v7113_v43 = vmul.f32 %v1890_v50, %v7026_v36 }
 0x23d   : > { %v7116_v62 = vmul.f32 %v1890_v50, %v7085_v29  ;;  %v1573_v21 = vmul.f32 0.5, %v1572_v28  ;;  %v1552_v44 = vmul.f32 %v1551_v30, %v7031_v9  ;;  %v1584_v54 = vmul.f32 %v5714_v35, %v1583_v40 }
 0x23e   : > { %10002 = vst [vmem:[#allocation70_spill] sm:$0xff] %v7105_v1  ;;  %v1597_v37 = vmul.f32 0.5, %v1596_v33  ;;  %v1556_v1 = vand.u32 2147483648, %v7031_v9  ;;  %v1620_v50 = vmul.f32 %v7076_v57, %v1619_v38  ;;  %v7126_v33 = vmax.f32 %v1384_v42, 0.0 }
 0x23f   : > { %10003 = vst [vmem:[#allocation71_spill] sm:$0xff] %v7108_v15  ;;  %v1554_v28 = vsel %vm1553_vm7, %v7031_v9, %v1552_v44  ;;  %v1585_v40 = vmul.f32 0.5, %v1584_v54  ;;  %v7140_v38 = vmul.f32 %v6914_v6, %v6972_v26  ;;  %v1568_v42 = vand.u32 2147483648, %v6949_v16 }
 0x240   : > { %10004 = vst [vmem:[#allocation72_spill] sm:$0xff] %v7113_v43  ;;  %v1598_v15 = vsub.f32 1.5, %v1597_v37  ;;  %v7132_v58 = vsel %vm1555_vm8, %v1556_v1, %v1554_v28  ;;  %v7136_v37 = vpop.xlane.xlu2 %1422  ;;  %v1634_v44 = vsub.f32 1.5, %v1633_v39  ;;  %5719 = vrsqrt.f32 %v7094_v0 }
 0x241   : > { %10005 = vst [vmem:[#allocation73_spill] sm:$0xff] %v7116_v62  ;;  %v1574_v62 = vsub.f32 1.5, %v1573_v21  ;;  %v7134_v32 = vpop.eup %5717  ;;  %v1896_v9 = vperm.slane %v7132_v58, %v7055_v41  ;;  %v1586_v1 = vsub.f32 1.5, %v1585_v40  ;;  %v7151_v21 = vmax.f32 %v7060_v59, 0.0 }
 0x242   : > { %10006 = vst [vmem:[#allocation74_spill] sm:$0xff] %v7132_v58  ;;  %v1599_v30 = vmul.f32 %v5712_v4, %v1598_v15  ;;  %v1566_v4 = vsel %vm1565_vm6, %v6949_v16, %v1564_v14  ;;  %v1621_v15 = vmul.f32 0.5, %v1620_v50  ;;  %5721 = vrsqrt.f32 %v7126_v33  ;;  %v1420_v16 = vpop.xlane.xlu1 %1419 }
 0x243   : > { %v7156_v54 = vsel %vm1889_vm0, %v1896_v9, %v1895_v52  ;;  %v1587_v39 = vmul.f32 %v5714_v35, %v1586_v1  ;;  %v1575_v14 = vmul.f32 %v7046_v48, %v1574_v62  ;;  %v1667_v50 = vmul.f32 %v7134_v32, %v7083_v10 }
 0x244   : > { %v1600_v26 = vmul.f32 %v1599_v30, %v7041_v3  ;;  %10007 = vst [vmem:[#allocation75_spill] sm:$0xff] %v7156_v54  ;;  %v7160_v28 = vmul.f32 %v7156_v54, %v6990_v27  ;;  %v7168_v59 = vmul.f32 %v7156_v54, %v6999_v34  ;;  %v7172_v52 = vmul.f32 %v7156_v54, %v7072_v60  ;;  %v7181_v30 = vpop.xlane.xlu0 %1407 }
 0x245   : > { %v1635_v35 = vmul.f32 %v7043_v7, %v1634_v44  ;;  %v7177_v40 = vsel %vm1567_vm9, %v1568_v42, %v1566_v4  ;;  %v1588_v48 = vmul.f32 %v1587_v39, %v7052_v18  ;;  %v1622_v62 = vsub.f32 1.5, %v1621_v15 }
 0x246   : > { %10008 = vst [vmem:[#allocation76_spill] sm:$0xff] %v7160_v28  ;;  %v1604_v9 = vand.u32 2147483648, %v7041_v3  ;;  %vm1591_vm6 = vcmp.eq.f32.partialorder %v7052_v18, 0.0  ;;  %v1592_v1 = vand.u32 2147483648, %v7052_v18  ;;  %v7187_v7 = vpop.eup %5719  ;;  %v1602_v42 = vsel %vm1601_vm13, %v7041_v3, %v1600_v26 }
 0x247   : > { %10009 = vst [vmem:[#allocation77_spill] sm:$0xff] %v7168_v59  ;;  %v1590_v44 = vsel %vm1589_vm15, %v7052_v18, %v1588_v48  ;;  %v1576_v4 = vmul.f32 %v1575_v14, %v7024_v55  ;;  %v1668_v15 = vmul.f32 %v7134_v32, %v1667_v50  ;;  %v1636_v59 = vmul.f32 %v1635_v35, %v7018_v56 }
 0x248   : > { %10010 = vst [vmem:[#allocation78_spill] sm:$0xff] %v7172_v52  ;;  %v5722_v39 = vpop.eup %5721  ;;  %v7193_v22 = vsel %vm1591_vm6, %v1592_v1, %v1590_v44  ;;  %vm1577_vm7 = vcmp.eq.f32.partialorder %v7024_v55, inf  ;;  %v1580_v52 = vand.u32 2147483648, %v7024_v55  ;;  %5723 = vrsqrt.f32 %v7151_v21  ;;  %v7202_v18 = vpop.xlane.xlu2 %1404 }
 0x249   : > { %10011 = vst [vmem:[#allocation79_spill] sm:$0xff] %v7193_v22  ;;  %v1623_v28 = vmul.f32 %v7076_v57, %v1622_v62  ;;  %v1578_v26 = vsel %vm1577_vm7, %v7024_v55, %v1576_v4  ;;  %vm1579_vm8 = vcmp.eq.f32.partialorder %v7024_v55, 0.0  ;;  %v7206_v14 = vsel %vm1603_vm14, %v1604_v9, %v1602_v42 }
 0x24a   : > { %10012 = vst [vmem:[#allocation80_spill] sm:$0xff] %v7206_v14  ;;  %v1901_v50 = vperm.slane %v7193_v22, %v7008_v25  ;;  %v7210_v35 = vsel %vm1579_vm8, %v1580_v52, %v1578_v26  ;;  %v1669_v48 = vmul.f32 0.5, %v1668_v15  ;;  %v1898_v1 = vperm.slane %v7177_v40, %v6692_v31 }
 0x24b   : > { %vm1639_vm9 = vcmp.eq.f32.partialorder %v7018_v56, 0.0  ;;  %v1640_v57 = vand.u32 2147483648, %v7018_v56  ;;  %v1899_v55 = vperm.slane %v7210_v35, %v6956_v24  ;;  %v7219_v3 = vmax.f32 %v7118_v45, 0.0 }
 0x24c   : > { %v1638_v62 = vsel %vm1637_vm11, %v7018_v56, %v1636_v59  ;;  %v1670_v52 = vsub.f32 1.5, %v1669_v48  ;;  %v1655_v9 = vmul.f32 %v5722_v39, %v7126_v33  ;;  %v1903_v42 = vperm.slane %v7206_v14, %v7055_v41 }
 0x24d   : > { %vm1625_vm13 = vcmp.eq.f32.partialorder %v7037_v49, inf  ;;  %v1900_v44 = vsel %vm1881_vm12, %v1899_v55, %v1898_v1  ;;  %v1607_v4 = vmul.f32 %v7110_v11, %v7049_v61  ;;  %v1624_v45 = vmul.f32 %v1623_v28, %v7037_v49  ;;  %v1390_v28 = vpop.xlane.xlu0 %1389 }
 0x24e   : > { %v1902_v15 = vsel %vm1885_vm10, %v1901_v50, %v1900_v44  ;;  %v1671_v26 = vmul.f32 %v7134_v32, %v1670_v52  ;;  %v1656_v59 = vmul.f32 %v5722_v39, %v1655_v9  ;;  %v5724_v48 = vpop.eup %5723  ;;  %v7235_v46 = vmax.f32 %v7136_v37, 0.0  ;;  %v1402_v50 = vpop.xlane.xlu1 %1401 }
 0x24f   : > { %v7239_v63 = vsel %vm1639_vm9, %v1640_v57, %v1638_v62  ;;  %v7242_v1 = vsel %vm1889_vm0, %v1903_v42, %v1902_v15  ;;  %v1608_v55 = vmul.f32 %v7110_v11, %v1607_v4  ;;  %5725 = vrsqrt.f32 %v7219_v3 }
 0x250   : > { %10013 = vst [vmem:[#allocation81_spill] sm:$0xff] %v7242_v1  ;;  %vm1627_vm11 = vcmp.eq.f32.partialorder %v7037_v49, 0.0  ;;  %v1628_v32 = vand.u32 2147483648, %v7037_v49  ;;  %v7250_v37 = vmul.f32 %v7242_v1, %v7177_v40  ;;  %v7254_v56 = vmul.f32 %v7242_v1, %v7210_v35 }
 0x251   : > { %v1672_v57 = vmul.f32 %v1671_v26, %v7083_v10  ;;  %v1657_v62 = vmul.f32 0.5, %v1656_v59  ;;  %v1609_v52 = vmul.f32 0.5, %v1608_v55  ;;  %v1908_v9 = vperm.slane %v7239_v63, %v7008_v25  ;;  %v7270_v59 = vpop.xlane.xlu2 %1413 }
 0x252   : > { %10014 = vst [vmem:[#allocation82_spill] sm:$0xff] %v7250_v37  ;;  %v1626_v42 = vsel %vm1625_vm13, %v7037_v49, %v1624_v45  ;;  %v1703_v44 = vmul.f32 %v7187_v7, %v7094_v0  ;;  %v1643_v4 = vmul.f32 %v5724_v48, %v7151_v21  ;;  %5727 = vrsqrt.f32 %v7235_v46 }
 0x253   : > { %10015 = vst [vmem:[#allocation83_spill] sm:$0xff] %v7254_v56  ;;  %v7266_v15 = vmax.f32 %v1420_v16, 0.0  ;;  %v7268_v1 = vmax.f32 %v1390_v28, 0.0  ;;  %v1658_v26 = vsub.f32 1.5, %v1657_v62  ;;  %vm1673_vm14 = vcmp.eq.f32.partialorder %v7083_v10, inf }
 0x254   : > { %v1610_v55 = vsub.f32 1.5, %v1609_v52  ;;  %v1704_v37 = vmul.f32 %v7187_v7, %v1703_v44  ;;  %v1644_v45 = vmul.f32 %v5724_v48, %v1643_v4  ;;  %v7276_v56 = vsel %vm1627_vm11, %v1628_v32, %v1626_v42 }
 0x255   : > { %v1674_v2 = vsel %vm1673_vm14, %v7083_v10, %v1672_v57  ;;  %vm1675_vm15 = vcmp.eq.f32.partialorder %v7083_v10, 0.0  ;;  %v1659_v16 = vmul.f32 %v5722_v39, %v1658_v26  ;;  %v7280_v28 = vpop.eup %5725  ;;  %v1676_v62 = vand.u32 2147483648, %v7083_v10 }
 0x256   : > { %vm1661_vm6 = vcmp.eq.f32.partialorder %v7126_v33, inf  ;;  %v1611_v52 = vmul.f32 %v7110_v11, %v1610_v55  ;;  %v1705_v47 = vmul.f32 0.5, %v1704_v37  ;;  %vm1663_vm7 = vcmp.eq.f32.partialorder %v7126_v33, 0.0 }
 0x257   : > { %v1660_v44 = vmul.f32 %v1659_v16, %v7126_v33  ;;  %v1664_v49 = vand.u32 2147483648, %v7126_v33  ;;  %v1645_v32 = vmul.f32 0.5, %v1644_v45  ;;  %v7288_v57 = vsel %vm1675_vm15, %v1676_v62, %v1674_v2 }
 0x258   : > { %v1612_v39 = vmul.f32 %v1611_v52, %v7049_v61  ;;  %vm1613_vm8 = vcmp.eq.f32.partialorder %v7049_v61, inf  ;;  %v1706_v42 = vsub.f32 1.5, %v1705_v47  ;;  %v7292_v10 = vpop.eup %5727  ;;  %v1616_v11 = vand.u32 2147483648, %v7049_v61  ;;  %v7304_v47 = vpop.xlane.xlu1 %1410 }
 0x259   : > { %v1662_v4 = vsel %vm1661_vm6, %v7126_v33, %v1660_v44  ;;  %v1646_v37 = vsub.f32 1.5, %v1645_v32  ;;  %v1715_v26 = vmul.f32 %v7280_v28, %v7219_v3  ;;  %v1906_v55 = vperm.slane %v7276_v56, %v6956_v24 }
 0x25a   : > { %v7300_v2 = vsel %vm1663_vm7, %v1664_v49, %v1662_v4  ;;  %v1614_v45 = vsel %vm1613_vm8, %v7049_v61, %v1612_v39  ;;  %vm1615_vm9 = vcmp.eq.f32.partialorder %v7049_v61, 0.0  ;;  %v1913_v33 = vperm.slane %v7288_v57, %v6956_v24 }
 0x25b   : > { %v1912_v16 = vperm.slane %v7300_v2, %v6692_v31  ;;  %v7310_v62 = vsel %vm1615_vm9, %v1616_v11, %v1614_v45  ;;  %v1647_v52 = vmul.f32 %v5724_v48, %v1646_v37  ;;  %5729 = vrsqrt.f32 %v7268_v1 }
 0x25c   : > { %v1905_v49 = vperm.slane %v7310_v62, %v6692_v31  ;;  %v1707_v61 = vmul.f32 %v7187_v7, %v1706_v42  ;;  %v7319_v32 = vmax.f32 %v7202_v18, 0.0  ;;  %v1716_v48 = vmul.f32 %v7280_v28, %v1715_v26 }
 0x25d   : > { %v7326_v4 = vsel %vm1881_vm12, %v1913_v33, %v1912_v16  ;;  %v7330_v11 = vmax.f32 %v7181_v30, 0.0  ;;  %5731 = vrsqrt.f32 %v7266_v15  ;;  %v1648_v7 = vmul.f32 %v1647_v52, %v7151_v21  ;;  %v7349_v33 = vpop.xlane.xlu0 %1425 }
 0x25e   : > { %v7313_v44 = vpop.permute.xlu2 %2730  ;;  %v1907_v37 = vsel %vm1881_vm12, %v1906_v55, %v1905_v49  ;;  %v7335_v18 = vmax.f32 %v1402_v50, 0.0  ;;  %vm1649_vm13 = vcmp.eq.f32.partialorder %v7151_v21, inf  ;;  %v1708_v26 = vmul.f32 %v1707_v61, %v7094_v0 }
 0x25f   : > { %v7323_v39 = vmul.f32 %v7313_v44, %v7140_v38  ;;  %v1652_v38 = vand.u32 2147483648, %v7151_v21  ;;  %v1909_v42 = vsel %vm1885_vm10, %v1908_v9, %v1907_v37  ;;  %v1650_v30 = vsel %vm1649_vm13, %v7151_v21, %v1648_v7 }
 0x260   : > { %vm1651_vm11 = vcmp.eq.f32.partialorder %v7151_v21, 0.0  ;;  %5733 = vrsqrt.f32 %v7319_v32  ;;  %vm1709_vm14 = vcmp.eq.f32.partialorder %v7094_v0, inf  ;;  %v1717_v55 = vmul.f32 0.5, %v1716_v48  ;;  %v1393_v7 = vpop.xlane.xlu1 %1392 }
 0x261   : > { %10016 = vst [vmem:[#allocation84_spill] sm:$0xff] %v7323_v39  ;;  %3759 = vperm.xlu1 %5579, %v7323_v39   ;;  %v7346_v50 = vsel %vm1651_vm11, %v1652_v38, %v1650_v30  ;;  %v5730_v45 = vpop.eup %5729  ;;  %5735 = vrsqrt.f32 %v7330_v11  ;;  %v7355_v16 = vmax.f32 %v7270_v59, 0.0  ;;  %v1811_v52 = vmul.f32 %v7292_v10, %v7235_v46 }
 0x262   : > { %10017 = vst [vmem:[#allocation85_spill] sm:$0xff] %v7346_v50  ;;  %v1910_v9 = vperm.slane %v7346_v50, %v7055_v41  ;;  %5737 = vrsqrt.f32 %v7335_v18  ;;  %v1718_v21 = vsub.f32 1.5, %v1717_v55  ;;  %v1710_v61 = vsel %vm1709_vm14, %v7094_v0, %v1708_v26 }
 0x263   : > { %v7359_v49 = vpop.eup %5731  ;;  %vm1711_vm15 = vcmp.eq.f32.partialorder %v7094_v0, 0.0  ;;  %v1712_v48 = vand.u32 2147483648, %v7094_v0  ;;  %v7379_v26 = vmul.f32 %v6914_v6, %v6990_v27  ;;  %v1679_v51 = vmul.f32 %v5730_v45, %v7268_v1 }
 0x264   : > { %v1911_v37 = vsel %vm1889_vm0, %v1910_v9, %v1909_v42  ;;  %v1719_v42 = vmul.f32 %v7280_v28, %v1718_v21  ;;  %5739 = vrsqrt.f32 %v7355_v16  ;;  %vm1721_vm6 = vcmp.eq.f32.partialorder %v7219_v3, inf }
 0x265   : > { %v7366_v38 = vmul.f32 %v1911_v37, %v7310_v62  ;;  %v7369_v59 = vmul.f32 %v1911_v37, %v7276_v56  ;;  %v7372_v30 = vmul.f32 %v1911_v37, %v7239_v63  ;;  %v7375_v55 = vmul.f32 %v1911_v37, %v7346_v50  ;;  %v1417_v43 = vpop.xlane.xlu0 %1416 }
 0x266   : > { %v5734_v9 = vpop.eup %5733  ;;  %v7391_v37 = vmul.f32 %v6916_v8, %v6999_v34  ;;  %v1680_v28 = vmul.f32 %v5730_v45, %v1679_v51  ;;  %v1720_v21 = vmul.f32 %v1719_v42, %v7219_v3  ;;  %v7406_v34 = vmul.f32 %v6914_v6, %v7177_v40 }
 0x267   : > { %10018 = vst [vmem:[#allocation86_spill] sm:$0xff] %v7366_v38  ;;  %v2695_v38 = vmul.f32 %v6929_v53, %v7026_v36  ;;  %v7394_v27 = vpop.eup %5735  ;;  %v1799_v36 = vmul.f32 %v7359_v49, %v7266_v15  ;;  %v1739_v0 = vmul.f32 %v5734_v9, %v7319_v32  ;;  %vm1723_vm7 = vcmp.eq.f32.partialorder %v7219_v3, 0.0 }
 0x268   : > { %10019 = vst [vmem:[#allocation87_spill] sm:$0xff] %v7369_v59  ;;  %v7387_v59 = vmul.f32 %v6916_v8, %v6979_v23  ;;  %v5738_v23 = vpop.eup %5737  ;;  %v1722_v51 = vsel %vm1721_vm6, %v7219_v3, %v1720_v21  ;;  %v7444_v5 = vmax.f32 %v1417_v43, 0.0  ;;  %vm1685_vm8 = vcmp.eq.f32.partialorder %v7268_v1, inf }
 0x269   : > { %10020 = vst [vmem:[#allocation88_spill] sm:$0xff] %v7372_v30  ;;  %v7398_v30 = vsel %vm1711_vm15, %v1712_v48, %v1710_v61  ;;  %v1681_v61 = vmul.f32 0.5, %v1680_v28  ;;  %v7414_v48 = vmax.f32 %v7304_v47, 0.0  ;;  %v1740_v17 = vmul.f32 %v5734_v9, %v1739_v0 }
 0x26a   : > { %10021 = vst [vmem:[#allocation89_spill] sm:$0xff] %v7375_v55  ;;  %v1812_v55 = vmul.f32 %v7292_v10, %v1811_v52  ;;  %v1724_v52 = vand.u32 2147483648, %v7219_v3  ;;  %v1919_v42 = vperm.slane %v7398_v30, %v6692_v31  ;;  %v1800_v21 = vmul.f32 %v7359_v49, %v1799_v36 }
 0x26b   : > { %v1682_v13 = vsub.f32 1.5, %v1681_v61  ;;  %v7430_v47 = vmul.f32 %v6918_v20, %v7132_v58  ;;  %v1741_v0 = vmul.f32 0.5, %v1740_v17  ;;  %v1727_v61 = vmul.f32 %v5738_v23, %v7335_v18 }
 0x26c   : > { %v7418_v54 = vsel %vm1723_vm7, %v1724_v52, %v1722_v51  ;;  %v1813_v40 = vmul.f32 0.5, %v1812_v55  ;;  %v7434_v55 = vmul.f32 %v6918_v20, %v7085_v29  ;;  %v1751_v52 = vmul.f32 %v7394_v27, %v7330_v11  ;;  %v7449_v29 = vpop.xlane.xlu1 %1428 }
 0x26d   : > { %v1920_v28 = vperm.slane %v7418_v54, %v6956_v24  ;;  %v1683_v51 = vmul.f32 %v5730_v45, %v1682_v13  ;;  %5741 = vrsqrt.f32 %v7414_v48  ;;  %v7447_v58 = vmax.f32 %v1393_v7, 0.0 }
 0x26e   : > { %v7420_v19 = vpop.permute.xlu2 %2742  ;;  %v1814_v12 = vsub.f32 1.5, %v1813_v40  ;;  %v1742_v17 = vsub.f32 1.5, %v1741_v0  ;;  %v1728_v39 = vmul.f32 %v5738_v23, %v1727_v61  ;;  %v1801_v45 = vmul.f32 0.5, %v1800_v21 }
 0x26f   : > { %v7426_v3 = vmul.f32 %v7420_v19, %v2695_v38  ;;  %v7440_v36 = vsel %vm1881_vm12, %v1920_v28, %v1919_v42  ;;  %v7442_v38 = vpop.eup %5739  ;;  %v1684_v13 = vmul.f32 %v1683_v51, %v7268_v1  ;;  %vm1687_vm9 = vcmp.eq.f32.partialorder %v7268_v1, 0.0 }
 0x270   : > { %v1688_v43 = vand.u32 2147483648, %v7268_v1  ;;  %v1752_v42 = vmul.f32 %v7394_v27, %v1751_v52  ;;  %v1743_v7 = vmul.f32 %v5734_v9, %v1742_v17  ;;  %v1729_v28 = vmul.f32 0.5, %v1728_v39 }
 0x271   : > { %10022 = vst [vmem:[#allocation90_spill] sm:$0xff] %v7426_v3  ;;  %3765 = vperm.xlu2 %5581, %v7426_v3   ;;  %v1686_v50 = vsel %vm1685_vm8, %v7268_v1, %v1684_v13  ;;  %v1775_v40 = vmul.f32 %v7442_v38, %v7355_v16  ;;  %v7461_v0 = vmax.f32 %v7349_v33, 0.0  ;;  %v7465_v21 = vmul.f32 %v6918_v20, %v7206_v14 }
 0x272   : > { %v7467_v61 = vsel %vm1687_vm9, %v1688_v43, %v1686_v50  ;;  %v1815_v51 = vmul.f32 %v7292_v10, %v1814_v12  ;;  %5743 = vrsqrt.f32 %v7444_v5  ;;  %v1730_v9 = vsub.f32 1.5, %v1729_v28 }
 0x273   : > { %v1915_v1 = vperm.slane %v7467_v61, %v7008_v25  ;;  %v1802_v39 = vsub.f32 1.5, %v1801_v45  ;;  %v7473_v52 = vpop.eup %5741  ;;  %5745 = vrsqrt.f32 %v7447_v58  ;;  %v7478_v33 = vmul.f32 %v7313_v44, %v7379_v26 }
 0x274   : > { %v1744_v50 = vmul.f32 %v1743_v7, %v7319_v32  ;;  %v1776_v17 = vmul.f32 %v7442_v38, %v1775_v40  ;;  %vm1745_vm13 = vcmp.eq.f32.partialorder %v7319_v32, inf  ;;  %v1731_v12 = vmul.f32 %v5738_v23, %v1730_v9 }
 0x275   : > { %10023 = vst [vmem:[#allocation91_spill] sm:$0xff] %v7478_v33  ;;  %v7485_v10 = vsel %vm1885_vm10, %v1915_v1, %v7326_v4  ;;  %v1753_v13 = vmul.f32 0.5, %v1752_v42  ;;  %vm1733_vm11 = vcmp.eq.f32.partialorder %v7335_v18, inf  ;;  %vm1735_vm14 = vcmp.eq.f32.partialorder %v7335_v18, 0.0 }
 0x276   : > { %v1816_v26 = vmul.f32 %v1815_v51, %v7235_v46  ;;  %vm1817_vm15 = vcmp.eq.f32.partialorder %v7235_v46, inf  ;;  %v1748_v4 = vand.u32 2147483648, %v7319_v32  ;;  %v1803_v42 = vmul.f32 %v7359_v49, %v1802_v39 }
 0x277   : > { %v1746_v7 = vsel %vm1745_vm13, %v7319_v32, %v1744_v50  ;;  %vm1747_vm6 = vcmp.eq.f32.partialorder %v7319_v32, 0.0  ;;  %v1732_v28 = vmul.f32 %v1731_v12, %v7335_v18  ;;  %v1777_v40 = vmul.f32 0.5, %v1776_v17 }
 0x278   : > { %v7506_v51 = vpop.eup %5743  ;;  %v1820_v49 = vand.u32 2147483648, %v7235_v46  ;;  %v1754_v9 = vsub.f32 1.5, %v1753_v13  ;;  %v1818_v50 = vsel %vm1817_vm15, %v7235_v46, %v1816_v26  ;;  %vm1819_vm7 = vcmp.eq.f32.partialorder %v7235_v46, 0.0 }
 0x279   : > { %v7487_v45 = vpop.permute.xlu1 %2736  ;;  %v5746_v1 = vpop.eup %5745  ;;  %v1734_v32 = vsel %vm1733_vm11, %v7335_v18, %v1732_v28  ;;  %v1778_v39 = vsub.f32 1.5, %v1777_v40  ;;  %v7521_v17 = vsel %vm1747_vm6, %v1748_v4, %v1746_v7  ;;  %v1804_v14 = vmul.f32 %v1803_v42, %v7266_v15 }
 0x27a   : > { %v7495_v43 = vmul.f32 %v7487_v45, %v7387_v59  ;;  %v7499_v23 = vmul.f32 %v7487_v45, %v7391_v37  ;;  %v1736_v59 = vand.u32 2147483648, %v7335_v18  ;;  %v1763_v37 = vmul.f32 %v7473_v52, %v7414_v48  ;;  %10026 = vst [vmem:[#allocation94_spill] sm:$0xff] %v7521_v17 }
 0x27b   : > { %v1924_v28 = vperm.slane %v7521_v17, %v7055_v41  ;;  %vm1805_vm8 = vcmp.eq.f32.partialorder %v7266_v15, inf  ;;  %vm1807_vm9 = vcmp.eq.f32.partialorder %v7266_v15, 0.0  ;;  %v1691_v46 = vmul.f32 %v5746_v1, %v7447_v58 }
 0x27c   : > { %10024 = vst [vmem:[#allocation92_spill] sm:$0xff] %v7495_v43  ;;  %3762 = vperm.xlu0 %5580, %v7495_v43   ;;  %3774 = vperm.xlu2 %5581, %v7499_v23   ;;  %v7525_v12 = vsel %vm1735_vm14, %v1736_v59, %v1734_v32  ;;  %v1764_v13 = vmul.f32 %v7473_v52, %v1763_v37  ;;  %v1808_v18 = vand.u32 2147483648, %v7266_v15  ;;  %5747 = vrsqrt.f32 %v7461_v0 }
 0x27d   : > { %10025 = vst [vmem:[#allocation93_spill] sm:$0xff] %v7499_v23  ;;  %v1922_v40 = vperm.slane %v7525_v12, %v7008_v25  ;;  %v7536_v26 = vsel %vm1819_vm7, %v1820_v49, %v1818_v50  ;;  %v1755_v4 = vmul.f32 %v7394_v27, %v1754_v9  ;;  %v1779_v42 = vmul.f32 %v7442_v38, %v1778_v39 }
 0x27e   : > { %10027 = vst [vmem:[#allocation95_spill] sm:$0xff] %v7536_v26  ;;  %v1765_v7 = vmul.f32 0.5, %v1764_v13  ;;  %v1806_v37 = vsel %vm1805_vm8, %v7266_v15, %v1804_v14  ;;  %v7546_v32 = vmul.f32 %v7313_v44, %v7406_v34  ;;  %v1692_v3 = vmul.f32 %v5746_v1, %v1691_v46 }
 0x27f   : > { %v1923_v59 = vsel %vm1885_vm10, %v1922_v40, %v7440_v36  ;;  %v7551_v50 = vsel %vm1807_vm9, %v1808_v18, %v1806_v37  ;;  %v1934_v34 = vperm.slane %v7536_v26, %v6956_v24  ;;  %v1756_v9 = vmul.f32 %v1755_v4, %v7330_v11 }
 0x280   : > { %10028 = vst [vmem:[#allocation96_spill] sm:$0xff] %v7546_v32  ;;  %v7549_v49 = vsel %vm1889_vm0, %v1924_v28, %v1923_v59  ;;  %v1766_v27 = vsub.f32 1.5, %v1765_v7  ;;  %v1693_v15 = vmul.f32 0.5, %v1692_v3  ;;  %v1933_v36 = vperm.slane %v7551_v50, %v6692_v31 }
 0x281   : > { %10029 = vst [vmem:[#allocation97_spill] sm:$0xff] %v7549_v49  ;;  %v7556_v38 = vmul.f32 %v7549_v49, %v7398_v30  ;;  %v7560_v14 = vmul.f32 %v7549_v49, %v7418_v54  ;;  %v1780_v39 = vmul.f32 %v1779_v42, %v7355_v16  ;;  %vm1757_vm13 = vcmp.eq.f32.partialorder %v7330_v11, inf }
 0x282   : > { %10030 = vst [vmem:[#allocation98_spill] sm:$0xff] %v7551_v50  ;;  %v1767_v13 = vmul.f32 %v7473_v52, %v1766_v27  ;;  %vm1759_vm11 = vcmp.eq.f32.partialorder %v7330_v11, 0.0  ;;  %v1694_v28 = vsub.f32 1.5, %v1693_v15  ;;  %vm1781_vm14 = vcmp.eq.f32.partialorder %v7355_v16, inf  ;;  %v5748_v42 = vpop.eup %5747 }
 0x283   : > { %10031 = vst [vmem:[#allocation99_spill] sm:$0xff] %v7556_v38  ;;  %v7575_v3 = vsel %vm1881_vm12, %v1934_v34, %v1933_v36  ;;  %v1760_v40 = vand.u32 2147483648, %v7330_v11  ;;  %vm1769_vm15 = vcmp.eq.f32.partialorder %v7414_v48, inf  ;;  %vm1771_vm6 = vcmp.eq.f32.partialorder %v7414_v48, 0.0 }
 0x284   : > { %10032 = vst [vmem:[#allocation100_spill] sm:$0xff] %v7560_v14  ;;  %3771 = vperm.xlu0 %5580, %v7478_v33   ;;  %3783 = vperm.xlu2 %5581, %v7546_v32   ;;  %v1768_v46 = vmul.f32 %v1767_v13, %v7414_v48  ;;  %v1772_v52 = vand.u32 2147483648, %v7414_v48  ;;  %v1695_v18 = vmul.f32 %v5746_v1, %v1694_v28  ;;  %vm1697_vm7 = vcmp.eq.f32.partialorder %v7447_v58, inf }
 0x285   : > { %vm1783_vm8 = vcmp.eq.f32.partialorder %v7355_v16, 0.0  ;;  %v1758_v4 = vsel %vm1757_vm13, %v7330_v11, %v1756_v9  ;;  %v1782_v59 = vsel %vm1781_vm14, %v7355_v16, %v1780_v39  ;;  %v1784_v37 = vand.u32 2147483648, %v7355_v16 }
 0x286   : > { %v1770_v27 = vsel %vm1769_vm15, %v7414_v48, %v1768_v46  ;;  %v1787_v15 = vmul.f32 %v7506_v51, %v7444_v5  ;;  %v1696_v9 = vmul.f32 %v1695_v18, %v7447_v58  ;;  %v1700_v39 = vand.u32 2147483648, %v7447_v58 }
 0x287   : > { %v7608_v13 = vsel %vm1771_vm6, %v1772_v52, %v1770_v27  ;;  %vm1699_vm9 = vcmp.eq.f32.partialorder %v7447_v58, 0.0  ;;  %v7626_v11 = vsel %vm1783_vm8, %v1784_v37, %v1782_v59  ;;  %v2703_v52 = vmul.f32 %v6929_v53, %v7193_v22 }
 0x288   : > { %v1788_v28 = vmul.f32 %v7506_v51, %v1787_v15  ;;  %v1927_v46 = vperm.slane %v7608_v13, %v6956_v24  ;;  %v2699_v16 = vmul.f32 %v6929_v53, %v7072_v60  ;;  %vm1793_vm13 = vcmp.eq.f32.partialorder %v7444_v5, inf }
 0x289   : > { %v7585_v7 = vpop.permute.xlu1 %2748  ;;  %v7648_v27 = vmul.f32 %v7420_v19, %v2703_v52  ;;  %vm1829_vm14 = vcmp.eq.f32.partialorder %v7461_v0, inf  ;;  %vm1831_vm15 = vcmp.eq.f32.partialorder %v7461_v0, 0.0  ;;  %vm1940_vm8 = vcmask 1041409  }
 0x28a   : > { %v7594_v1 = vmul.f32 %v7585_v7, %v7430_v47  ;;  %v7598_v34 = vmul.f32 %v7585_v7, %v7434_v55  ;;  %v7602_v36 = vmul.f32 %v7585_v7, %v7465_v21  ;;  %v7612_v47 = vsel %vm1759_vm11, %v1760_v40, %v1758_v4 }
 0x28b   : > { %v1698_v55 = vsel %vm1697_vm7, %v7447_v58, %v1696_v9  ;;  %v1929_v40 = vperm.slane %v7626_v11, %v7008_v25  ;;  %v1926_v58 = vperm.slane %v7612_v47, %v6692_v31  ;;  %v1789_v18 = vmul.f32 0.5, %v1788_v28  ;;  %10038 = vst [vmem:[#allocation106_spill] sm:$0xff] %v7648_v27 }
 0x28c   : > { %10033 = vst [vmem:[#allocation101_spill] sm:$0xff] %v7594_v1  ;;  %3780 = vperm.xlu0 %5580, %v7594_v1   ;;  %3768 = vperm.xlu1 %5579, %v7598_v34   ;;  %v7622_v48 = vsel %vm1699_vm9, %v1700_v39, %v1698_v55  ;;  %v2707_v4 = vmul.f32 %v6929_v53, %v7239_v63  ;;  %vm1795_vm11 = vcmp.eq.f32.partialorder %v7444_v5, 0.0  ;;  %vm9932_vm9 = vcmask 1042434  }
 0x28d   : > { %10034 = vst [vmem:[#allocation102_spill] sm:$0xff] %v7598_v34  ;;  %3792 = vperm.xlu2 %5581, %v7602_v36   ;;  %v1917_v21 = vperm.slane %v7622_v48, %v7055_v41  ;;  %v1928_v37 = vsel %vm1881_vm12, %v1927_v46, %v1926_v58  ;;  %v7663_v60 = vmul.f32 %v7420_v19, %v2699_v16  ;;  %v1796_v58 = vand.u32 2147483648, %v7444_v5 }
 0x28e   : > { %10035 = vst [vmem:[#allocation103_spill] sm:$0xff] %v7602_v36  ;;  %v1930_v39 = vsel %vm1885_vm10, %v1929_v40, %v1928_v37  ;;  %v1823_v28 = vmul.f32 %v5748_v42, %v7461_v0  ;;  %v7668_v55 = vmul.f32 %v7420_v19, %v2707_v4  ;;  %v2702_v16 = vmul.f32 %v6916_v8, %v7210_v35 }
 0x28f   : > { %10036 = vst [vmem:[#allocation104_spill] sm:$0xff] %v7622_v48  ;;  %v7644_v59 = vsel %vm1889_vm0, %v1917_v21, %v7485_v10  ;;  %v1790_v10 = vsub.f32 1.5, %v1789_v18  ;;  %v2706_v18 = vmul.f32 %v6916_v8, %v7276_v56  ;;  %v2710_v37 = vmul.f32 %v6916_v8, %v7288_v57 }
 0x290   : > { %10037 = vst [vmem:[#allocation105_spill] sm:$0xff] %v7644_v59  ;;  %v7652_v15 = vmul.f32 %v7644_v59, %v7300_v2  ;;  %v7656_v9 = vmul.f32 %v7644_v59, %v7288_v57  ;;  %v7660_v63 = vmul.f32 %v7644_v59, %v7467_v61  ;;  %v1824_v46 = vmul.f32 %v5748_v42, %v1823_v28 }
 0x291   : > { %10042 = vst [vmem:[#allocation110_spill] sm:$0xff] %v7663_v60  ;;  %v1791_v21 = vmul.f32 %v7506_v51, %v1790_v10  ;;  %v7688_v28 = vmul.f32 %v7487_v45, %v2706_v18  ;;  %v7696_v35 = vmax.f32 %v7449_v29, 0.0 }
 0x292   : > { %10039 = vst [vmem:[#allocation107_spill] sm:$0xff] %v7652_v15  ;;  %v1825_v52 = vmul.f32 0.5, %v1824_v46 }
 0x293   : > { %10040 = vst [vmem:[#allocation108_spill] sm:$0xff] %v7656_v9  ;;  %v1792_v40 = vmul.f32 %v1791_v21, %v7444_v5  ;;  %v7691_v21 = vmul.f32 %v7487_v45, %v2702_v16  ;;  %5749 = vrsqrt.f32 %v7696_v35  ;;  %vm1841_vm6 = vcmp.eq.f32.partialorder %v7696_v35, inf }
 0x294   : > { %10041 = vst [vmem:[#allocation109_spill] sm:$0xff] %v7660_v63  ;;  %3789 = vperm.xlu0 %5580, %v7648_v27   ;;  %3777 = vperm.xlu1 %5579, %v7663_v60   ;;  %v1826_v4 = vsub.f32 1.5, %v1825_v52  ;;  %vm1843_vm7 = vcmp.eq.f32.partialorder %v7696_v35, 0.0 }
 0x295   : > { %10043 = vst [vmem:[#allocation111_spill] sm:$0xff] %v7668_v55  ;;  %3801 = vperm.xlu2 %5581, %v7668_v55   ;;  %v1794_v51 = vsel %vm1793_vm13, %v7444_v5, %v1792_v40  ;;  %v7699_v5 = vmul.f32 %v7487_v45, %v2710_v37  ;;  %v1832_v40 = vand.u32 2147483648, %v7461_v0  ;;  %vm9931_vm13 = vcmask 1043459  }
 0x296   : > { %v7685_v10 = vsel %vm1795_vm11, %v1796_v58, %v1794_v51  ;;  %10044 = vst [vmem:[#allocation112_spill] sm:$0xff] %v7688_v28  ;;  %v1827_v46 = vmul.f32 %v5748_v42, %v1826_v4  ;;  %v2709_v51 = vmul.f32 %v6914_v6, %v7300_v2  ;;  %v2705_v4 = vmul.f32 %v6914_v6, %v7310_v62 }
 0x297   : > { %10045 = vst [vmem:[#allocation113_spill] sm:$0xff] %v7691_v21  ;;  %v1931_v56 = vperm.slane %v7685_v10, %v7055_v41  ;;  %vm9930_vm11 = vcmask 1044484  }
 0x298   : > { %10046 = vst [vmem:[#allocation114_spill] sm:$0xff] %v7699_v5  ;;  %v1828_v58 = vmul.f32 %v1827_v46, %v7461_v0  ;;  %v7734_v46 = vmul.f32 %v7313_v44, %v2709_v51 }
 0x299   : > { %v1932_v57 = vsel %vm1889_vm0, %v1931_v56, %v1930_v39  ;;  %v2713_v56 = vmul.f32 %v6914_v6, %v7398_v30  ;;  %v5750_v30 = vpop.eup %5749 }
 0x29a   : > { %v7709_v29 = vmul.f32 %v1932_v57, %v7612_v47  ;;  %v7712_v42 = vmul.f32 %v1932_v57, %v7608_v13  ;;  %v7715_v52 = vmul.f32 %v1932_v57, %v7626_v11  ;;  %v7718_v18 = vmul.f32 %v1932_v57, %v7685_v10  ;;  %10052 = vst [vmem:[#allocation120_spill] sm:$0xff] %v7734_v46 }
 0x29b   : > { %v1830_v39 = vsel %vm1829_vm14, %v7461_v0, %v1828_v58  ;;  %v7737_v0 = vmul.f32 %v7313_v44, %v2705_v4  ;;  %v7744_v62 = vmul.f32 %v7313_v44, %v2713_v56  ;;  %v2712_v57 = vmul.f32 %v6918_v20, %v7622_v48  ;;  %v10056_v58 = vld [vmem:[#allocation85_spill] sm:$0xff] }
 0x29c   : > { %3798 = vperm.xlu0 %5580, %v7688_v28   ;;  %3786 = vperm.xlu1 %5579, %v7691_v21   ;;  %10047 = vst [vmem:[#allocation115_spill] sm:$0xff] %v7709_v29  ;;  %v7722_v16 = vsel %vm1831_vm15, %v1832_v40, %v1830_v39  ;;  %v2708_v40 = vmul.f32 %v6918_v20, %v10056_v58  ;;  %vm9929_vm14 = vcmask 1045509   ;;  %vm9918_vm15 = vcmask 1046534  }
 0x29d   : > { %3810 = vperm.xlu2 %5581, %v7699_v5   ;;  %10048 = vst [vmem:[#allocation116_spill] sm:$0xff] %v7712_v42  ;;  %v1936_v37 = vperm.slane %v7722_v16, %v7008_v25  ;;  %v7756_v39 = vmul.f32 %v7585_v7, %v2712_v57  ;;  %v1835_v4 = vmul.f32 %v5750_v30, %v7696_v35 }
 0x29e   : > { %10049 = vst [vmem:[#allocation117_spill] sm:$0xff] %v7715_v52  ;;  %v7759_v51 = vmul.f32 %v7585_v7, %v2708_v40  ;;  %v2715_v58 = vmul.f32 %v6929_v53, %v7525_v12  ;;  %v2711_v57 = vmul.f32 %v6929_v53, %v7467_v61  ;;  %v2719_v40 = vmul.f32 %v6929_v53, %v7626_v11 }
 0x29f   : > { %10050 = vst [vmem:[#allocation118_spill] sm:$0xff] %v7718_v18  ;;  %v7741_v2 = vsel %vm1885_vm10, %v1936_v37, %v7575_v3  ;;  %v2716_v3 = vmul.f32 %v6918_v20, %v7521_v17  ;;  %v1836_v56 = vmul.f32 %v5750_v30, %v1835_v4  ;;  %v7787_v61 = vmul.f32 %v7549_v49, %v7525_v12 }
 0x2a0   : > { %10051 = vst [vmem:[#allocation119_spill] sm:$0xff] %v7722_v16  ;;  %v7781_v52 = vmul.f32 %v7420_v19, %v2719_v40  ;;  %v2718_v4 = vmul.f32 %v6916_v8, %v7608_v13  ;;  %v2717_v13 = vmul.f32 %v6914_v6, %v7612_v47  ;;  %v2802_v49 = vadd.f32 1e-06, %v7734_v46 }
 0x2a1   : > { %10053 = vst [vmem:[#allocation121_spill] sm:$0xff] %v7737_v0  ;;  %v7763_v37 = vmul.f32 %v7585_v7, %v2716_v3  ;;  %v7778_v3 = vmul.f32 %v7420_v19, %v2711_v57  ;;  %v1837_v42 = vmul.f32 0.5, %v1836_v56  ;;  %v2714_v56 = vmul.f32 %v6916_v8, %v7418_v54 }
 0x2a2   : > { %10054 = vst [vmem:[#allocation122_spill] sm:$0xff] %v7741_v2  ;;  %v7775_v2 = vmul.f32 %v7420_v19, %v2715_v58  ;;  %v2722_v58 = vmul.f32 %v6916_v8, %v7536_v26  ;;  %v7797_v57 = vmul.f32 %v7487_v45, %v2718_v4  ;;  %v2721_v8 = vmul.f32 %v6914_v6, %v7551_v50 }
 0x2a3   : > { %10055 = vst [vmem:[#allocation123_spill] sm:$0xff] %v7744_v62  ;;  %v1838_v11 = vsub.f32 1.5, %v1837_v42  ;;  %v7800_v40 = vmul.f32 %v7487_v45, %v2714_v56  ;;  %v1844_v4 = vand.u32 2147483648, %v7696_v35  ;;  %v2805_v14 = vadd.f32 1e-06, %v7756_v39 }
 0x2a4   : > { %3807 = vperm.xlu0 %5580, %v7734_v46   ;;  %3795 = vperm.xlu1 %5579, %v7737_v0   ;;  %10057 = vst [vmem:[#allocation85_spill] sm:$0xff] %v7756_v39  ;;  %v7803_v29 = vmul.f32 %v7487_v45, %v2722_v58  ;;  %v7815_v42 = vmul.f32 %v7313_v44, %v2721_v8  ;;  %v10072_v8 = vld [vmem:[#allocation84_spill] sm:$0xff]  ;;  %v2808_v48 = vadd.f32 1e-06, %v7775_v2  ;;  %v2811_v18 = vadd.f32 1e-06, %v7797_v57 }
 0x2a5   : > { %3819 = vperm.xlu2 %5581, %v7744_v62   ;;  %10058 = vst [vmem:[#allocation124_spill] sm:$0xff] %v7759_v51  ;;  %v1839_v12 = vmul.f32 %v5750_v30, %v1838_v11  ;;  %v7818_v45 = vmul.f32 %v7313_v44, %v2717_v13  ;;  %v2787_v11 = vadd.f32 1e-06, %v7495_v43  ;;  %v2720_v44 = vmul.f32 %v6918_v20, %v7685_v10 }
 0x2a6   : > { %10059 = vst [vmem:[#allocation125_spill] sm:$0xff] %v7763_v37  ;;  %v2807_v26 = vadd.f32 1e-06, %v7800_v40 }
 0x2a7   : > { %10060 = vst [vmem:[#allocation126_spill] sm:$0xff] %v7775_v2  ;;  %v1840_v54 = vmul.f32 %v1839_v12, %v7696_v35  ;;  %v7836_v58 = vmul.f32 %v7585_v7, %v2720_v44  ;;  %v2789_v12 = vadd.f32 1e-06, %v7598_v34  ;;  %v2790_v44 = vadd.f32 1e-06, %v7478_v33 }
 0x2a8   : > { %10061 = vst [vmem:[#allocation127_spill] sm:$0xff] %v7778_v3  ;;  %v2810_v17 = vadd.f32 1e-06, %v7818_v45 }
 0x2a9   : > { %10062 = vst [vmem:[#allocation128_spill] sm:$0xff] %v7781_v52  ;;  %v1842_v30 = vsel %vm1841_vm6, %v7696_v35, %v1840_v54  ;;  %v2723_v54 = vmul.f32 %v6929_v53, %v7722_v16  ;;  %v2800_v16 = vadd.f32 1e-06, %v7668_v55  ;;  %v2813_v63 = vadd.f32 1e-06, %v7836_v58 }
 0x2aa   : > { %10063 = vst [vmem:[#allocation129_spill] sm:$0xff] %v7787_v61  ;;  %v7826_v6 = vsel %vm1843_vm7, %v1844_v4, %v1842_v30  ;;  %v2791_v30 = vadd.f32 1e-06, %v7499_v23  ;;  %v3501_v61 = vmul.f32 %v7495_v43, %v7495_v43  ;;  %vm9917_vm6 = vcmask 1047559  }
 0x2ab   : > { %10064 = vst [vmem:[#allocation130_spill] sm:$0xff] %v7797_v57  ;;  %v2724_v47 = vmul.f32 %v6918_v20, %v7826_v6  ;;  %v2786_v20 = vadd.f32 1e-06, %v10072_v8  ;;  %v7847_v10 = vmul.f32 %v7420_v19, %v2723_v54  ;;  %v2794_v19 = vadd.f32 1e-06, %v7546_v32 }
 0x2ac   : > { %3816 = vperm.xlu0 %5580, %v7756_v39   ;;  %3804 = vperm.xlu1 %5579, %v7759_v51   ;;  %10065 = vst [vmem:[#allocation131_spill] sm:$0xff] %v7800_v40 }
 0x2ad   : > { %3828 = vperm.xlu2 %5581, %v7763_v37   ;;  %10066 = vst [vmem:[#allocation132_spill] sm:$0xff] %v7803_v29  ;;  %v7833_v56 = vmul.f32 %v7585_v7, %v2724_v47  ;;  %v2792_v7 = vadd.f32 1e-06, %v7663_v60  ;;  %v2795_v47 = vadd.f32 1e-06, %v7691_v21 }
 0x2ae   : > { %10067 = vst [vmem:[#allocation133_spill] sm:$0xff] %v7815_v42  ;;  %v2816_v15 = vadd.f32 1e-06, %v7847_v10 }
 0x2af   : > { %10068 = vst [vmem:[#allocation134_spill] sm:$0xff] %v7818_v45  ;;  %v2817_v43 = vadd.f32 1e-06, %v7833_v56 }
 0x2b0   : > { %10069 = vst [vmem:[#allocation135_spill] sm:$0xff] %v7826_v6 }
 0x2b1   : > { %10070 = vst [vmem:[#allocation136_spill] sm:$0xff] %v7833_v56 }
 0x2b2   : > { %10071 = vst [vmem:[#allocation137_spill] sm:$0xff] %v7836_v58 }
 0x2b3   : > { %10073 = vst [vmem:[#allocation138_spill] sm:$0xff] %v7847_v10 }
 0x2b4   : > { %3825 = vperm.xlu0 %5580, %v7775_v2   ;;  %3813 = vperm.xlu1 %5579, %v7778_v3  }
 0x2b5   : > { %3837 = vperm.xlu2 %5581, %v7781_v52  }
 0x2bc   : > { %3834 = vperm.xlu0 %5580, %v7797_v57   ;;  %3822 = vperm.xlu1 %5579, %v7800_v40  }
 0x2bd   : > { %3846 = vperm.xlu2 %5581, %v7803_v29  }
 0x2c4   : > { %3843 = vperm.xlu0 %5580, %v7815_v42   ;;  %3831 = vperm.xlu1 %5579, %v7818_v45  }
 0x2c5   : > { %2854 = vperm.xlu2 %5581, %v2787_v11   ;;  %v10074_v11 = vld [vmem:[#allocation90_spill] sm:$0xff] }
 0x2c6   : > { %v2788_v4 = vadd.f32 1e-06, %v10074_v11 }
 0x2cb   : > { %v7841_v35 = vpop.permute.xlu2 %3765 }
 0x2cc   : > { %3852 = vperm.xlu0 %5580, %v7833_v56   ;;  %3840 = vperm.xlu1 %5579, %v7836_v58  }
 0x2cd   : > { %2860 = vperm.xlu2 %5581, %v2789_v12   ;;  %v2798_v12 = vadd.f32 1e-06, %v7737_v0 }
 0x2d4   : > { %2851 = vperm.xlu0 %5580, %v2786_v20   ;;  %3849 = vperm.xlu1 %5579, %v7847_v10   ;;  %v2797_v20 = vadd.f32 1e-06, %v7602_v36 }
 0x2d5   : > { %2869 = vperm.xlu2 %5581, %v2792_v7   ;;  %v2793_v7 = vadd.f32 1e-06, %v7594_v1 }
 0x2d6   : > { %v7851_v13 = vpop.permute.xlu2 %3774 }
 0x2dc   : > { %2866 = vperm.xlu0 %5580, %v2791_v30   ;;  %2857 = vperm.xlu1 %5579, %v2788_v4   ;;  %v2801_v30 = vadd.f32 1e-06, %v7759_v51 }
 0x2dd   : > { %2878 = vperm.xlu2 %5581, %v2795_v47  }
 0x2de   : > { %v7856_v53 = vpop.permute.xlu2 %3783 }
 0x2e4   : > { %2875 = vperm.xlu0 %5580, %v2794_v19   ;;  %2863 = vperm.xlu1 %5579, %v2790_v44   ;;  %v2796_v19 = vadd.f32 1e-06, %v7648_v27  ;;  %v2804_v44 = vadd.f32 1e-06, %v7778_v3 }
 0x2e5   : > { %2887 = vperm.xlu2 %5581, %v2798_v12   ;;  %v7873_v12 = vpop.permute.xlu1 %3759 }
 0x2e7   : > { %v7861_v54 = vpop.permute.xlu2 %3792 }
 0x2ec   : > { %2884 = vperm.xlu0 %5580, %v2797_v20   ;;  %2872 = vperm.xlu1 %5579, %v2793_v7   ;;  %v2803_v7 = vadd.f32 1e-06, %v7699_v5 }
 0x2ed   : > { %2896 = vperm.xlu2 %5581, %v2801_v30   ;;  %v2799_v30 = vadd.f32 1e-06, %v7688_v28 }
 0x2ee   : > { %v7866_v4 = vpop.permute.xlu0 %3762 }
 0x2ef   : > { %v7868_v47 = vpop.permute.xlu2 %3801 }
 0x2f4   : > { %2893 = vperm.xlu0 %5580, %v2800_v16   ;;  %2881 = vperm.xlu1 %5579, %v2796_v19  }
 0x2f5   : > { %2905 = vperm.xlu2 %5581, %v2804_v44   ;;  %v2806_v44 = vadd.f32 1e-06, %v7744_v62 }
 0x2f6   : > { %v7875_v50 = vpop.permute.xlu0 %3771 }
 0x2f7   : > { %v7877_v20 = vpop.permute.xlu2 %3810 }
 0x2fc   : > { %2902 = vperm.xlu0 %5580, %v2803_v7   ;;  %2890 = vperm.xlu1 %5579, %v2799_v30   ;;  %v2809_v30 = vadd.f32 1e-06, %v7763_v37 }
 0x2fd   : > { %2914 = vperm.xlu2 %5581, %v2807_v26  }
 0x2fe   : > { %v7882_v6 = vpop.permute.xlu0 %3780  ;;  %v7884_v16 = vpop.permute.xlu1 %3768 }
 0x2ff   : > { %v7886_v19 = vpop.permute.xlu2 %3819 }
 0x300   : > { %10075 = vst [vmem:[#allocation139_spill] sm:$0xff] %v7886_v19 }
 0x304   : > { %2911 = vperm.xlu0 %5580, %v2806_v44   ;;  %2899 = vperm.xlu1 %5579, %v2802_v49   ;;  %v2812_v49 = vadd.f32 1e-06, %v7781_v52 }
 0x305   : > { %2923 = vperm.xlu2 %5581, %v2810_v17  }
 0x306   : > { %v7891_v38 = vpop.permute.xlu0 %3789  ;;  %v7893_v7 = vpop.permute.xlu1 %3777 }
 0x307   : > { %v7895_v26 = vpop.permute.xlu2 %3828 }
 0x308   : > { %10076 = vst [vmem:[#allocation140_spill] sm:$0xff] %v7895_v26 }
 0x30c   : > { %2920 = vperm.xlu0 %5580, %v2809_v30   ;;  %2908 = vperm.xlu1 %5579, %v2805_v14  }
 0x30d   : > { %2932 = vperm.xlu2 %5581, %v2813_v63   ;;  %v2815_v63 = vadd.f32 1e-06, %v7803_v29 }
 0x30e   : > { %v7900_v59 = vpop.permute.xlu0 %3798  ;;  %v7902_v44 = vpop.permute.xlu1 %3786 }
 0x30f   : > { %10077 = vst [vmem:[#allocation141_spill] sm:$0xff] %v7900_v59  ;;  %v7904_v17 = vpop.permute.xlu2 %3837 }
 0x310   : > { %10078 = vst [vmem:[#allocation142_spill] sm:$0xff] %v7904_v17 }
 0x314   : > { %2929 = vperm.xlu0 %5580, %v2812_v49   ;;  %2917 = vperm.xlu1 %5579, %v2808_v48   ;;  %v2814_v49 = vadd.f32 1e-06, %v7815_v42 }
 0x315   : > { %2941 = vperm.xlu2 %5581, %v2816_v15   ;;  %v3500_v15 = vmul.f32 %v10072_v8, %v10072_v8  ;;  %v3507_v8 = vmul.f32 %v7594_v1, %v7594_v1  ;;  %v3509_v1 = vmul.f32 %v7691_v21, %v7691_v21  ;;  %v3508_v21 = vmul.f32 %v7546_v32, %v7546_v32 }
 0x316   : > { %v7909_v22 = vpop.permute.xlu0 %3807  ;;  %v7911_v30 = vpop.permute.xlu1 %3795  ;;  %v3519_v32 = vmul.f32 %v7756_v39, %v7756_v39  ;;  %v3525_v39 = vmul.f32 %v7797_v57, %v7797_v57  ;;  %v3527_v57 = vmul.f32 %v7836_v58, %v7836_v58  ;;  %v10090_v58 = vld [vmem:[#allocation27_spill] sm:$0xff] }
 0x317   : > { %v7913_v14 = vpop.permute.xlu2 %3846 }
 0x318   : > { %10079 = vst [vmem:[#allocation143_spill] sm:$0xff] %v7913_v14  ;;  %v3504_v14 = vmul.f32 %v7478_v33, %v7478_v33  ;;  %v3502_v33 = vmul.f32 %v10074_v11, %v10074_v11  ;;  %v3513_v11 = vmul.f32 %v7688_v28, %v7688_v28  ;;  %v3511_v28 = vmul.f32 %v7602_v36, %v7602_v36 }
 0x31c   : > { %2938 = vperm.xlu0 %5580, %v2815_v63   ;;  %2926 = vperm.xlu1 %5579, %v2811_v18  }
 0x31d   : > { %3568 = vperm.xlu2 %5581, %v3501_v61   ;;  %v3503_v61 = vmul.f32 %v7598_v34, %v7598_v34  ;;  %v3510_v34 = vmul.f32 %v7648_v27, %v7648_v27  ;;  %v3512_v27 = vmul.f32 %v7737_v0, %v7737_v0 }
 0x31e   : > { %v7919_v9 = vpop.permute.xlu0 %3816  ;;  %v7921_v48 = vpop.permute.xlu1 %3804 }
 0x31f   : > { %10080 = vst [vmem:[#allocation144_spill] sm:$0xff] %v7919_v9  ;;  %v7926_v17 = vpop.permute.xlu2 %2854 }
 0x320   : > { %10081 = vst [vmem:[#allocation145_spill] sm:$0xff] %v7921_v48 }
 0x324   : > { %3565 = vperm.xlu0 %5580, %v3500_v15   ;;  %2935 = vperm.xlu1 %5579, %v2814_v49   ;;  %v3506_v49 = vmul.f32 %v7663_v60, %v7663_v60  ;;  %v3505_v60 = vmul.f32 %v7499_v23, %v7499_v23  ;;  %v3516_v23 = vmul.f32 %v7734_v46, %v7734_v46 }
 0x325   : > { %3577 = vperm.xlu2 %5581, %v3504_v14   ;;  %v3522_v46 = vmul.f32 %v7775_v2, %v7775_v2  ;;  %v3524_v2 = vmul.f32 %v7818_v45, %v7818_v45  ;;  %v3523_v45 = vmul.f32 %v7763_v37, %v7763_v37 }
 0x326   : > { %v7930_v63 = vpop.permute.xlu0 %3825  ;;  %v7932_v18 = vpop.permute.xlu1 %3813 }
 0x327   : > { %10082 = vst [vmem:[#allocation146_spill] sm:$0xff] %v7930_v63  ;;  %v7939_v9 = vpop.permute.xlu2 %2860 }
 0x328   : > { %10083 = vst [vmem:[#allocation147_spill] sm:$0xff] %v7932_v18  ;;  %v2951_v48 = vperm.slane %v7939_v9, %v7055_v41 }
 0x32c   : > { %3574 = vperm.xlu0 %5580, %v3503_v61   ;;  %2944 = vperm.xlu1 %5579, %v2817_v43  }
 0x32d   : > { %3586 = vperm.xlu2 %5581, %v3507_v8  }
 0x32e   : > { %v7941_v15 = vpop.permute.xlu0 %3834  ;;  %v7943_v14 = vpop.permute.xlu1 %3822 }
 0x32f   : > { %10084 = vst [vmem:[#allocation148_spill] sm:$0xff] %v7941_v15  ;;  %v7955_v8 = vpop.permute.xlu2 %2869 }
 0x334   : > { %3583 = vperm.xlu0 %5580, %v3506_v49   ;;  %3571 = vperm.xlu1 %5579, %v3502_v33  }
 0x335   : > { %3595 = vperm.xlu2 %5581, %v3510_v34  }
 0x336   : > { %v7951_v43 = vpop.permute.xlu0 %3843  ;;  %v7953_v61 = vpop.permute.xlu1 %3831 }
 0x337   : > { %10085 = vst [vmem:[#allocation149_spill] sm:$0xff] %v7951_v43  ;;  %v7967_v49 = vpop.permute.xlu2 %2878  ;;  %v2947_v43 = vperm.slane %v7926_v17, %v6956_v24 }
 0x338   : > { %10086 = vst [vmem:[#allocation150_spill] sm:$0xff] %v7953_v61  ;;  %v2956_v61 = vperm.slane %v7955_v8, %v7008_v25 }
 0x33c   : > { %3592 = vperm.xlu0 %5580, %v3509_v1   ;;  %3580 = vperm.xlu1 %5579, %v3505_v60  }
 0x33d   : > { %3604 = vperm.xlu2 %5581, %v3513_v11   ;;  %v3515_v11 = vmul.f32 %v7759_v51, %v7759_v51  ;;  %v3514_v51 = vmul.f32 %v7668_v55, %v7668_v55 }
 0x33e   : > { %v7963_v33 = vpop.permute.xlu0 %3852  ;;  %v7965_v34 = vpop.permute.xlu1 %3840 }
 0x33f   : > { %10087 = vst [vmem:[#allocation151_spill] sm:$0xff] %v7963_v33  ;;  %v7983_v0 = vpop.permute.xlu2 %2887 }
 0x340   : > { %10088 = vst [vmem:[#allocation152_spill] sm:$0xff] %v7965_v34 }
 0x344   : > { %3601 = vperm.xlu0 %5580, %v3512_v27   ;;  %3589 = vperm.xlu1 %5579, %v3508_v21   ;;  %v3518_v21 = vmul.f32 %v7778_v3, %v7778_v3  ;;  %v3517_v3 = vmul.f32 %v7699_v5, %v7699_v5  ;;  %v3528_v5 = vmul.f32 %v7815_v42, %v7815_v42 }
 0x345   : > { %3613 = vperm.xlu2 %5581, %v3516_v23   ;;  %v3526_v42 = vmul.f32 %v7781_v52, %v7781_v52  ;;  %v10092_v52 = vld [vmem:[#allocation28_spill] sm:$0xff] }
 0x346   : > { %v7975_v1 = vpop.permute.xlu0 %2851  ;;  %v7977_v60 = vpop.permute.xlu1 %3849 }
 0x347   : > { %10089 = vst [vmem:[#allocation153_spill] sm:$0xff] %v7977_v60  ;;  %v7997_v36 = vpop.permute.xlu2 %2896 }
 0x34c   : > { %3610 = vperm.xlu0 %5580, %v3515_v11   ;;  %3598 = vperm.xlu1 %5579, %v3511_v28   ;;  %v3521_v11 = vmul.f32 %v7800_v40, %v7800_v40  ;;  %v3520_v40 = vmul.f32 %v7744_v62, %v7744_v62  ;;  %v3531_v62 = vmul.f32 %v7833_v56, %v7833_v56 }
 0x34d   : > { %3622 = vperm.xlu2 %5581, %v3519_v32  }
 0x34e   : > { %v7987_v27 = vpop.permute.xlu0 %2866  ;;  %v7989_v23 = vpop.permute.xlu1 %2857 }
 0x34f   : > { %v2949_v18 = vperm.slane %v7989_v23, %v7008_v25  ;;  %v2954_v17 = vperm.slane %v7987_v27, %v6956_v24  ;;  %v2972_v23 = vperm.slane %v7997_v36, %v7055_v41 }
 0x354   : > { %3619 = vperm.xlu0 %5580, %v3518_v21   ;;  %3607 = vperm.xlu1 %5579, %v3514_v51  }
 0x355   : > { %3631 = vperm.xlu2 %5581, %v3522_v46   ;;  %v8013_v46 = vpop.permute.xlu2 %2905 }
 0x356   : > { %v7999_v28 = vpop.permute.xlu0 %2875  ;;  %v8001_v32 = vpop.permute.xlu1 %2863 }
 0x357   : > { %v2960_v9 = vperm.slane %v7999_v28, %v6692_v31 }
 0x35c   : > { %3628 = vperm.xlu0 %5580, %v3521_v11   ;;  %3616 = vperm.xlu1 %5579, %v3517_v3  }
 0x35d   : > { %3640 = vperm.xlu2 %5581, %v3525_v39   ;;  %v8025_v11 = vpop.permute.xlu2 %2914 }
 0x35e   : > { %v8009_v51 = vpop.permute.xlu0 %2884  ;;  %v8011_v21 = vpop.permute.xlu1 %2872 }
 0x364   : > { %3637 = vperm.xlu0 %5580, %v3524_v2   ;;  %3625 = vperm.xlu1 %5579, %v3520_v40   ;;  %v3530_v40 = vmul.f32 %v7847_v10, %v7847_v10 }
 0x365   : > { %3649 = vperm.xlu2 %5581, %v3528_v5   ;;  %v2924_v55 = vpop.permute.xlu2 %2923 }
 0x366   : > { %v8021_v3 = vpop.permute.xlu0 %2893  ;;  %v8023_v39 = vpop.permute.xlu1 %2881 }
 0x367   : > { %v2970_v36 = vperm.slane %v8021_v3, %v7008_v25 }
 0x36c   : > { %3646 = vperm.xlu0 %5580, %v3527_v57   ;;  %3634 = vperm.xlu1 %5579, %v3523_v45   ;;  %v3529_v57 = vmul.f32 %v7803_v29, %v7803_v29  ;;  %v2953_v29 = vperm.slane %v8001_v32, %v6692_v31  ;;  %v2967_v32 = vperm.slane %v7983_v0, %v6692_v31 }
 0x36d   : > { %3658 = vperm.xlu2 %5581, %v3531_v62   ;;  %v10091_v62 = vld [vmem:[#allocation26_spill] sm:$0xff]  ;;  %v8041_v45 = vpop.permute.xlu2 %2932 }
 0x36e   : > { %v2903_v2 = vpop.permute.xlu0 %2902  ;;  %v2891_v5 = vpop.permute.xlu1 %2890  ;;  %v2955_v0 = vsel %vm1881_vm12, %v2954_v17, %v2953_v29  ;;  %v2988_v29 = vperm.slane %v2924_v55, %v6692_v31 }
 0x36f   : > { %v2968_v63 = vperm.slane %v2891_v5, %v6956_v24  ;;  %v2977_v5 = vperm.slane %v8013_v46, %v7008_v25 }
 0x371   : > { %v2969_v19 = vsel %vm1881_vm12, %v2968_v63, %v2967_v32  ;;  %v2975_v63 = vperm.slane %v2903_v2, %v6956_v24 }
 0x372   : > { %v2971_v3 = vsel %vm1885_vm10, %v2970_v36, %v2969_v19 }
 0x374   : > { %3655 = vperm.xlu0 %5580, %v3530_v40   ;;  %3643 = vperm.xlu1 %5579, %v3526_v42  }
 0x375   : > { %5583 = vset.pattern.permute.xlu2 %v10090_v58  ;;  %v8048_v34 = vpop.permute.xlu2 %2941 }
 0x376   : > { %v2912_v37 = vpop.permute.xlu0 %2911  ;;  %v2900_v33 = vpop.permute.xlu1 %2899 }
 0x377   : > { %v2974_v27 = vperm.slane %v2900_v33, %v6692_v31  ;;  %v2981_v46 = vperm.slane %v2912_v37, %v6692_v31  ;;  %v2965_v37 = vperm.slane %v8009_v51, %v7055_v41  ;;  %v2973_v51 = vsel %vm1889_vm0, %v2972_v23, %v2971_v3 }
 0x379   : > { %v2976_v55 = vsel %vm1881_vm12, %v2975_v63, %v2974_v27 }
 0x37c   : > { %3652 = vperm.xlu1 %5579, %v3529_v57   ;;  %5582 = vset.pattern.permute.xlu0 %v10091_v62  ;;  %v2946_v57 = vperm.slane %v7975_v1, %v6692_v31  ;;  %v2961_v1 = vperm.slane %v7967_v49, %v6956_v24  ;;  %v2963_v49 = vperm.slane %v8023_v39, %v7008_v25 }
 0x37d   : > { %v8065_v26 = vpop.permute.xlu2 %3568 }
 0x37e   : > { %v8043_v56 = vpop.permute.xlu0 %2920  ;;  %v8045_v10 = vpop.permute.xlu1 %2908  ;;  %v2948_v8 = vsel %vm1881_vm12, %v2947_v43, %v2946_v57  ;;  %v2958_v43 = vperm.slane %v8011_v21, %v7055_v41  ;;  %v2962_v39 = vsel %vm1881_vm12, %v2961_v1, %v2960_v9  ;;  %v2957_v21 = vsel %vm1885_vm10, %v2956_v61, %v2955_v0 }
 0x37f   : > { %v2950_v59 = vsel %vm1885_vm10, %v2949_v18, %v2948_v8  ;;  %v2982_v18 = vperm.slane %v8025_v11, %v6956_v24  ;;  %v2964_v32 = vsel %vm1885_vm10, %v2963_v49, %v2962_v39  ;;  %v2979_v2 = vperm.slane %v8045_v10, %v7055_v41 }
 0x380   : > { %v2959_v1 = vsel %vm1889_vm0, %v2958_v43, %v2957_v21  ;;  %v2952_v19 = vsel %vm1889_vm0, %v2951_v48, %v2950_v59  ;;  %v2966_v9 = vsel %vm1889_vm0, %v2965_v37, %v2964_v32  ;;  %v2986_v10 = vperm.slane %v8043_v56, %v7055_v41 }
 0x381   : > { %v2983_v11 = vsel %vm1881_vm12, %v2982_v18, %v2981_v46  ;;  %v2978_v0 = vsel %vm1885_vm10, %v2977_v5, %v2976_v55  ;;  %v3002_v59 = vsel %vm1940_vm8, %v2959_v1, %v2952_v19  ;;  %v2993_v48 = vperm.slane %v8041_v45, %v7055_v41 }
 0x382   : > { %v2980_v23 = vsel %vm1889_vm0, %v2979_v2, %v2978_v0  ;;  %v3661_v3 = vperm.slane %v8065_v26, %v6956_v24 }
 0x384   : > { %5584 = vset.pattern.permute.xlu1 %v10092_v52 }
 0x385   : > { %v3578_v49 = vpop.permute.xlu2 %3577 }
 0x386   : > { %v2930_v40 = vpop.permute.xlu0 %2929  ;;  %v2918_v42 = vpop.permute.xlu1 %2917 }
 0x387   : > { %v2984_v33 = vperm.slane %v2918_v42, %v7008_v25  ;;  %v2991_v61 = vperm.slane %v2930_v40, %v7008_v25 }
 0x389   : > { %v2985_v8 = vsel %vm1885_vm10, %v2984_v33, %v2983_v11 }
 0x38a   : > { %v2987_v56 = vsel %vm1889_vm0, %v2986_v10, %v2985_v8 }
 0x38d   : > { %v3587_v32 = vpop.permute.xlu2 %3586 }
 0x38e   : > { %v8050_v60 = vpop.permute.xlu0 %2938  ;;  %v2927_v15 = vpop.permute.xlu1 %2926 }
 0x38f   : > { %v2989_v28 = vperm.slane %v2927_v15, %v6956_v24  ;;  %v2996_v27 = vperm.slane %v8050_v60, %v6956_v24  ;;  %v2998_v60 = vperm.slane %v8048_v34, %v7008_v25 }
 0x391   : > { %v2990_v42 = vsel %vm1881_vm12, %v2989_v28, %v2988_v29  ;;  %v3003_v28 = vsel %vm9932_vm9, %v2966_v9, %v3002_v59 }
 0x392   : > { %v2992_v40 = vsel %vm1885_vm10, %v2991_v61, %v2990_v42  ;;  %v3004_v43 = vsel %vm9931_vm13, %v2973_v51, %v3003_v28  ;;  %v5682_v51 = vld [vmem:[%s419_s0] ss:$0 sm:$0xff]  ;;  %v3672_v28 = vperm.slane %v3587_v32, %v7055_v41 }
 0x393   : > { %v2994_v36 = vsel %vm1889_vm0, %v2993_v48, %v2992_v40  ;;  %v3005_v45 = vsel %vm9930_vm11, %v2980_v23, %v3004_v43 }
 0x394   : > { %v3006_v63 = vsel %vm9929_vm14, %v2987_v56, %v3005_v45 }
 0x395   : > { %v3596_v59 = vpop.permute.xlu2 %3595 }
 0x396   : > { %v3566_v57 = vpop.permute.xlu0 %3565  ;;  %v2936_v15 = vpop.permute.xlu1 %2935 }
 0x397   : > { %v2995_v17 = vperm.slane %v2936_v15, %v6692_v31  ;;  %v3007_v15 = vsel %vm9918_vm15, %v2994_v36, %v3006_v63  ;;  %v3660_v21 = vperm.slane %v3566_v57, %v6692_v31 }
 0x399   : > { %v2997_v5 = vsel %vm1881_vm12, %v2996_v27, %v2995_v17  ;;  %v3662_v42 = vsel %vm1881_vm12, %v3661_v3, %v3660_v21  ;;  %v3667_v27 = vperm.slane %v3578_v49, %v6692_v31 }
 0x39a   : > { %v2999_v33 = vsel %vm1885_vm10, %v2998_v60, %v2997_v5  ;;  %v10093_v60 = vld [vmem:[#allocation67_spill] sm:$0xff] }
 0x39b   : > { %v8155_v43 = vadd.f32 %v5682_v51, %v10093_v60 }
 0x39d   : > { %10094 = vst [vmem:[#allocation27_spill] sm:$0xff] %v8155_v43  ;;  %v3605_v21 = vpop.permute.xlu2 %3604 }
 0x39e   : > { %v3575_v46 = vpop.permute.xlu0 %3574  ;;  %v2945_v39 = vpop.permute.xlu1 %2944 }
 0x39f   : > { %v3000_v29 = vperm.slane %v2945_v39, %v7055_v41  ;;  %v3665_v1 = vperm.slane %v3575_v46, %v7055_v41 }
 0x3a1   : > { %v3001_v34 = vsel %vm1889_vm0, %v3000_v29, %v2999_v33 }
 0x3a2   : > { %v3008_v18 = vsel %vm9917_vm6, %v3001_v34, %v3007_v15 }
 0x3a3   : > { %5751 = vrcp.f32 %v3008_v18  ;;  %v3021_v57 = vand.u32 2147483648, %v3008_v18  ;;  %v3019_v26 = vand.u32 2147483647, %v3008_v18  ;;  %vm3015_vm1 = vweird.f32 %v3008_v18 }
 0x3a5   : > { %v3022_v56 = vor.u32 1.1754944e-38, %v3021_v57  ;;  %vm3020_vm15 = vcmp.eq.f32.partialorder %v3019_v26, 8.507059e+37  ;;  %v3614_v57 = vpop.permute.xlu2 %3613  ;;  %v3682_v26 = vperm.slane %v3605_v21, %v6956_v24 }
 0x3a6   : > { %v3584_v37 = vpop.permute.xlu0 %3583  ;;  %v3572_v55 = vpop.permute.xlu1 %3571 }
 0x3a7   : > { %v3663_v2 = vperm.slane %v3572_v55, %v7008_v25  ;;  %v3670_v23 = vperm.slane %v3584_v37, %v7008_v25 }
 0x3a9   : > { %v5752_v11 = vpop.eup %5751  ;;  %v3664_v61 = vsel %vm1885_vm10, %v3663_v2, %v3662_v42  ;;  %v3677_v2 = vperm.slane %v3596_v59, %v7008_v25 }
 0x3aa   : > { %v3011_v17 = vmul.f32 %v5752_v11, %v3008_v18  ;;  %v3666_v19 = vsel %vm1889_vm0, %v3665_v1, %v3664_v61  ;;  %vm3016_vm7 = vweird.f32 %v5752_v11 }
 0x3ab   : > { %vm3017_vm6 = vmor %vm3015_vm1, %vm3016_vm7  ;;  %vm10097_vm1 = vcmask 1046534  }
 0x3ac   : > { %v3012_v9 = vsub.f32 1.0, %v3011_v17 }
 0x3ae   : > { %v3013_v8 = vmul.f32 %v5752_v11, %v3012_v9  ;;  %v3593_v10 = vpop.permute.xlu0 %3592  ;;  %v3581_v0 = vpop.permute.xlu1 %3580 }
 0x3af   : > { %v3668_v40 = vperm.slane %v3581_v0, %v6956_v24  ;;  %v3675_v3 = vperm.slane %v3593_v10, %v6956_v24 }
 0x3b0   : > { %v3014_v48 = vadd.f32 %v5752_v11, %v3013_v8 }
 0x3b1   : > { %v3669_v5 = vsel %vm1881_vm12, %v3668_v40, %v3667_v27 }
 0x3b2   : > { %v3018_v36 = vsel %vm3017_vm6, %v5752_v11, %v3014_v48  ;;  %v3671_v49 = vsel %vm1885_vm10, %v3670_v23, %v3669_v5  ;;  %v3623_v5 = vpop.permute.xlu2 %3622  ;;  %vm10116_vm6 = vcmask 1047559  }
 0x3b3   : > { %v3023_v46 = vsel %vm3020_vm15, %v3022_v56, %v3018_v36  ;;  %v3673_v39 = vsel %vm1889_vm0, %v3672_v28, %v3671_v49  ;;  %v3688_v36 = vperm.slane %v3614_v57, %v6692_v31  ;;  %vm10115_vm15 = vmmov %vm10097_vm1 }
 0x3b4   : > { %v3024_v45 = vmul.f32 %v3023_v46, %v8155_v43  ;;  %v3716_v29 = vsel %vm1940_vm8, %v3673_v39, %v3666_v19  ;;  %v3693_v39 = vperm.slane %v3623_v5, %v7055_v41 }
 0x3b6   : > { %v8161_v63 = vclamps-f32 %v3024_v45, 30.0  ;;  %v3602_v33 = vpop.permute.xlu0 %3601  ;;  %v3590_v15 = vpop.permute.xlu1 %3589 }
 0x3b7   : > { %v3674_v18 = vperm.slane %v3590_v15, %v6692_v31  ;;  %v3681_v51 = vperm.slane %v3602_v33, %v6692_v31  ;;  %v10096_v33 = vld [vmem:[#allocation29_spill] sm:$0xff] }
 0x3b8   : > { %v3035_v34 = vmul.f32 -0.5, %v8161_v63 }
 0x3b9   : > { %v3676_v55 = vsel %vm1881_vm12, %v3675_v3, %v3674_v18  ;;  %v3683_v59 = vsel %vm1881_vm12, %v3682_v26, %v3681_v51 }
 0x3ba   : > { %v3036_v32 = vmul.f32 %v8161_v63, %v3035_v34  ;;  %v3678_v61 = vsel %vm1885_vm10, %v3677_v2, %v3676_v55  ;;  %v3632_v3 = vpop.permute.xlu2 %3631 }
 0x3bc   : > { %v3037_v37 = vmul.f32 1.442695, %v3036_v32 }
 0x3be   : > { %5753 = vpow2.f32 %v3037_v37  ;;  %v3611_v42 = vpop.permute.xlu0 %3610  ;;  %v3599_v1 = vpop.permute.xlu1 %3598 }
 0x3bf   : > { %v3679_v11 = vperm.slane %v3599_v1, %v7055_v41  ;;  %v3686_v48 = vperm.slane %v3611_v42, %v7055_v41  ;;  %v3698_v1 = vperm.slane %v3632_v3, %v7008_v25  ;;  %v3859_v3 = vperm.slane %v7884_v16, %v7055_v41 }
 0x3c0   : > { %v3890_v16 = vperm.slane %v7943_v14, %v6956_v24 }
 0x3c1   : > { %v3680_v17 = vsel %vm1889_vm0, %v3679_v11, %v3678_v61 }
 0x3c2   : > { %v3717_v19 = vsel %vm9932_vm9, %v3680_v17, %v3716_v29  ;;  %v3641_v57 = vpop.permute.xlu2 %3640 }
 0x3c4   : > { %v5754_v9 = vpop.eup %5753 }
 0x3c5   : > { %v8174_v8 = vmul.f32 0.3989423, %v5754_v9 }
 0x3c6   : > { %v3608_v10 = vpop.permute.xlu1 %3607  ;;  %v3620_v0 = vpop.permute.xlu0 %3619 }
 0x3c7   : > { %10095 = vst [vmem:[#allocation26_spill] sm:$0xff] %v8174_v8  ;;  %v3684_v27 = vperm.slane %v3608_v10, %v7008_v25  ;;  %v3042_v40 = vperm.slane %v8174_v8, 0  ;;  %v3691_v46 = vperm.slane %v3620_v0, %v7008_v25  ;;  %v3067_v32 = vperm.slane %v8174_v8, 1 }
 0x3c8   : > { %v3703_v10 = vperm.slane %v3641_v57, %v6956_v24  ;;  %v3117_v5 = vperm.slane %v8174_v8, 3  ;;  %v10103_v57 = vld [vmem:[#allocation150_spill] sm:$0xff] }
 0x3c9   : > { %v3685_v23 = vsel %vm1885_vm10, %v3684_v27, %v3683_v59  ;;  %3059 = vperm.xlu1 %5584, %v3042_v40   ;;  %3053 = vperm.xlu2 %5583, %v3042_v40  }
 0x3ca   : > { %v3687_v28 = vsel %vm1889_vm0, %v3686_v48, %v3685_v23  ;;  %3047 = vperm.xlu0 %5582, %v3042_v40   ;;  %v3092_v48 = vperm.slane %v8174_v8, 2 }
 0x3cb   : > { %v3718_v56 = vsel %vm9931_vm13, %v3687_v28, %v3717_v19 }
 0x3ce   : > { %v3617_v60 = vpop.permute.xlu1 %3616  ;;  %v3629_v45 = vpop.permute.xlu0 %3628 }
 0x3cf   : > { %v3689_v49 = vperm.slane %v3617_v60, %v6956_v24  ;;  %v3696_v55 = vperm.slane %v3629_v45, %v6956_v24  ;;  %v3027_v60 = vmul.f32 0.044715, %v8161_v63  ;;  %v3855_v45 = vperm.slane %v7866_v4, %v6956_v24 }
 0x3d0   : > { %v3857_v4 = vperm.slane %v7841_v35, %v7008_v25 }
 0x3d1   : > { %v3690_v29 = vsel %vm1881_vm12, %v3689_v49, %v3688_v36  ;;  %5586 = vset.pattern.permute.xlu1 %v10091_v62  ;;  %5585 = vset.pattern.permute.xlu2 %v10096_v33  ;;  %v8227_v36 = vperm.slane %v8174_v8, 5  ;;  %v3028_v49 = vmul.f32 %v8161_v63, %v3027_v60 }
 0x3d2   : > { %v3692_v15 = vsel %vm1885_vm10, %v3691_v46, %v3690_v29  ;;  %5587 = vset.pattern.permute.xlu0 %v10090_v58  ;;  %v3854_v29 = vperm.slane %v7873_v12, %v6692_v31  ;;  %v3862_v12 = vperm.slane %v7851_v13, %v6956_v24 }
 0x3d3   : > { %v3694_v34 = vsel %vm1889_vm0, %v3693_v39, %v3692_v15  ;;  %v3029_v46 = vmul.f32 %v8161_v63, %v3028_v49  ;;  %v3861_v15 = vperm.slane %v7875_v50, %v6692_v31  ;;  %v3868_v50 = vperm.slane %v7856_v53, %v6692_v31  ;;  %v10108_v49 = vld [vmem:[#allocation153_spill] sm:$0xff] }
 0x3d4   : > { %v3719_v18 = vsel %vm9930_vm11, %v3694_v34, %v3718_v56 }
 0x3d5   : > { %v3030_v39 = vadd.f32 %v8161_v63, %v3029_v46  ;;  %v8248_v63 = vperm.slane %v8174_v8, 6  ;;  %v3863_v35 = vsel %vm1881_vm12, %v3862_v12, %v3861_v15  ;;  %v3906_v46 = vperm.slane %v10108_v49, %v7008_v25  ;;  %v10111_v12 = vld [vmem:[#allocation152_spill] sm:$0xff] }
 0x3d6   : > { %v3626_v21 = vpop.permute.xlu1 %3625  ;;  %v3638_v2 = vpop.permute.xlu0 %3637 }
 0x3d7   : > { %v3695_v37 = vperm.slane %v3626_v21, %v6692_v31  ;;  %v3702_v51 = vperm.slane %v3638_v2, %v6692_v31  ;;  %v3031_v34 = vmul.f32 0.7978846, %v3030_v39  ;;  %v3864_v21 = vperm.slane %v7893_v7, %v7008_v25 }
 0x3d8   : > { %v3873_v7 = vperm.slane %v7861_v54, %v7055_v41  ;;  %v3866_v2 = vperm.slane %v7882_v6, %v7055_v41 }
 0x3d9   : > { %3072 = vperm.xlu1 %5586, %v3067_v32   ;;  %3065 = vperm.xlu2 %5585, %v3042_v40   ;;  %v3697_v42 = vsel %vm1881_vm12, %v3696_v55, %v3695_v37  ;;  %v3704_v40 = vsel %vm1881_vm12, %v3703_v10, %v3702_v51  ;;  %v3875_v37 = vperm.slane %v7911_v30, %v6692_v31  ;;  %5755 = vtanh.f32 %v3031_v34  ;;  %v10104_v10 = vld [vmem:[#allocation145_spill] sm:$0xff] }
 0x3da   : > { %3078 = vperm.xlu0 %5587, %v3067_v32   ;;  %v3699_v17 = vsel %vm1885_vm10, %v3698_v1, %v3697_v42  ;;  %v3865_v53 = vsel %vm1885_vm10, %v3864_v21, %v3863_v35  ;;  %v3883_v55 = vperm.slane %v7877_v20, %v6956_v24  ;;  %v3871_v30 = vperm.slane %v7891_v38, %v7008_v25  ;;  %v10099_v42 = vld [vmem:[#allocation141_spill] sm:$0xff] }
 0x3db   : > { %v3876_v1 = vperm.slane %v10099_v42, %v6956_v24  ;;  %v3896_v51 = vperm.slane %v10103_v57, %v6692_v31 }
 0x3dd   : > { %v3877_v38 = vsel %vm1881_vm12, %v3876_v1, %v3875_v37 }
 0x3de   : > { %v3635_v11 = vpop.permute.xlu1 %3634  ;;  %v3647_v26 = vpop.permute.xlu0 %3646 }
 0x3df   : > { %v3700_v61 = vperm.slane %v3635_v11, %v7055_v41  ;;  %v3707_v59 = vperm.slane %v3647_v26, %v7055_v41 }
 0x3e1   : > { %v3701_v19 = vsel %vm1889_vm0, %v3700_v61, %v3699_v17  ;;  %5589 = vset.pattern.permute.xlu1 %v10096_v33  ;;  %5588 = vset.pattern.permute.xlu2 %v10092_v52  ;;  %v10100_v61 = vld [vmem:[#allocation139_spill] sm:$0xff]  ;;  %v10101_v17 = vld [vmem:[#allocation140_spill] sm:$0xff] }
 0x3e2   : > { %v3720_v9 = vsel %vm9929_vm14, %v3701_v19, %v3719_v18  ;;  %5592 = vset.pattern.permute.xlu0 %v10092_v52  ;;  %v3856_v18 = vsel %vm1881_vm12, %v3855_v45, %v3854_v29  ;;  %v3894_v14 = vperm.slane %v10101_v17, %v7055_v41  ;;  %v10102_v19 = vld [vmem:[#allocation147_spill] sm:$0xff] }
 0x3e3   : > { %v3858_v13 = vsel %vm1885_vm10, %v3857_v4, %v3856_v18  ;;  %v3885_v20 = vperm.slane %v10102_v19, %v7008_v25  ;;  %v10109_v45 = vld [vmem:[#allocation143_spill] sm:$0xff]  ;;  %v10110_v18 = vld [vmem:[#allocation144_spill] sm:$0xff]  ;;  %v8339_v19 = vperm.slane %v8174_v8, 7 }
 0x3e4   : > { %v3860_v11 = vsel %vm1889_vm0, %v3859_v3, %v3858_v13  ;;  %v3904_v29 = vperm.slane %v10109_v45, %v6956_v24  ;;  %v3887_v21 = vperm.slane %v10110_v18, %v7055_v41 }
 0x3e6   : > { %v3644_v0 = vpop.permute.xlu1 %3643 }
 0x3e7   : > { %v3705_v27 = vperm.slane %v3644_v0, %v7008_v25  ;;  %v3880_v0 = vperm.slane %v10104_v10, %v7055_v41 }
 0x3e9   : > { %v3706_v23 = vsel %vm1885_vm10, %v3705_v27, %v3704_v40  ;;  %3090 = vperm.xlu1 %5589, %v3067_v32   ;;  %3084 = vperm.xlu2 %5588, %v3067_v32   ;;  %v3869_v32 = vperm.slane %v7902_v44, %v6956_v24  ;;  %v3878_v44 = vperm.slane %v7868_v47, %v7008_v25  ;;  %v10105_v40 = vld [vmem:[#allocation149_spill] sm:$0xff] }
 0x3ea   : > { %v3708_v28 = vsel %vm1889_vm0, %v3707_v59, %v3706_v23  ;;  %3109 = vperm.xlu0 %5592, %v3092_v48   ;;  %v3882_v47 = vperm.slane %v7909_v22, %v6692_v31  ;;  %v3889_v22 = vperm.slane %v10100_v61, %v6692_v31  ;;  %v3903_v59 = vperm.slane %v10105_v40, %v6692_v31  ;;  %v10106_v23 = vld [vmem:[#allocation146_spill] sm:$0xff] }
 0x3eb   : > { %v8216_v56 = vsel %vm10097_vm1, %v3708_v28, %v3720_v9  ;;  %v3870_v54 = vsel %vm1881_vm12, %v3869_v32, %v3868_v50  ;;  %v3867_v9 = vsel %vm1889_vm0, %v3866_v2, %v3865_v53  ;;  %v3892_v28 = vperm.slane %v10106_v23, %v7008_v25 }
 0x3ec   : > { %10098 = vst [vmem:[#allocation28_spill] sm:$0xff] %v8216_v56  ;;  %v3872_v6 = vsel %vm1885_vm10, %v3871_v30, %v3870_v54  ;;  %v3884_v26 = vsel %vm1881_vm12, %v3883_v55, %v3882_v47  ;;  %v3891_v27 = vsel %vm1881_vm12, %v3890_v16, %v3889_v22  ;;  %v3879_v15 = vsel %vm1885_vm10, %v3878_v44, %v3877_v38  ;;  %v10113_v55 = vld [vmem:[#allocation151_spill] sm:$0xff] }
 0x3ed   : > { %v3874_v39 = vsel %vm1889_vm0, %v3873_v7, %v3872_v6  ;;  %v3886_v34 = vsel %vm1885_vm10, %v3885_v20, %v3884_v26  ;;  %v3893_v32 = vsel %vm1885_vm10, %v3892_v28, %v3891_v27  ;;  %v3901_v50 = vperm.slane %v10111_v12, %v7055_v41  ;;  %v10112_v7 = vld [vmem:[#allocation142_spill] sm:$0xff]  ;;  %v8376_v26 = vpop.permute.xlu2 %3649 }
 0x3ee   : > { %v3899_v3 = vperm.slane %v10112_v7, %v7008_v25  ;;  %v3881_v35 = vsel %vm1889_vm0, %v3880_v0, %v3879_v15  ;;  %v3905_v44 = vsel %vm1881_vm12, %v3904_v29, %v3903_v59  ;;  %v3910_v37 = vsel %vm1940_vm8, %v3867_v9, %v3860_v11  ;;  %10118 = vst [vmem:[#allocation141_spill] sm:$0xff] %v8376_v26  ;;  %v8384_v0 = vpop.permute.xlu0 %3655  ;;  %v8393_v40 = vpop.permute.xlu1 %3652  ;;  %v10125_v12 = vld [vmem:[#allocation74_spill] sm:$0xff] }
 0x3ef   : > { %v3888_v53 = vsel %vm1889_vm0, %v3887_v21, %v3886_v34  ;;  %v3907_v54 = vsel %vm1885_vm10, %v3906_v46, %v3905_v44  ;;  %v3911_v47 = vsel %vm9932_vm9, %v3874_v39, %v3910_v37  ;;  %v3895_v16 = vsel %vm1889_vm0, %v3894_v14, %v3893_v32  ;;  %10119 = vst [vmem:[#allocation139_spill] sm:$0xff] %v8384_v0  ;;  %v10122_v46 = vld [vmem:[#allocation72_spill] sm:$0xff]  ;;  %v10123_v21 = vld [vmem:[#allocation102_spill] sm:$0xff] }
 0x3f0   : > { %v3908_v2 = vperm.slane %v10113_v55, %v7055_v41  ;;  %v3912_v42 = vsel %vm9931_vm13, %v3881_v35, %v3911_v47  ;;  %v3142_v61 = vperm.slane %v8174_v8, 4  ;;  %10121 = vst [vmem:[#allocation147_spill] sm:$0xff] %v8393_v40  ;;  %v2037_v39 = vadd.f32 1e-08, %v10122_v46 }
 0x3f1   : > { %5591 = vset.pattern.permute.xlu1 %v10090_v58  ;;  %5590 = vset.pattern.permute.xlu2 %v10091_v62  ;;  %v3913_v11 = vsel %vm9930_vm11, %v3888_v53, %v3912_v42 }
 0x3f2   : > { %5597 = vset.pattern.permute.xlu0 %v10096_v33  ;;  %v3909_v22 = vsel %vm1889_vm0, %v3908_v2, %v3907_v54  ;;  %v3914_v14 = vsel %vm9929_vm14, %v3895_v16, %v3913_v11  ;;  %5757 = vrcp.f32 %v2037_v39  ;;  %v10127_v54 = vld [vmem:[#allocation96_spill] sm:$0xff]  ;;  %vm2102_vm1 = vweird.f32 %v2037_v39 }
 0x3f5   : > { %v8386_v27 = vpop.permute.xlu2 %3658 }
 0x3f6   : > { %10120 = vst [vmem:[#allocation140_spill] sm:$0xff] %v8386_v27  ;;  %v10159_v27 = vld [vmem:[#allocation76_spill] sm:$0xff] }
 0x3f9   : > { %3103 = vperm.xlu1 %5591, %v3092_v48   ;;  %3097 = vperm.xlu2 %5590, %v3092_v48  }
 0x3fa   : > { %3140 = vperm.xlu0 %5597, %v3117_v5  }
 0x401   : > { %5594 = vset.pattern.permute.xlu1 %v10091_v62  ;;  %5593 = vset.pattern.permute.xlu2 %v10096_v33 }
 0x402   : > { %5602 = vset.pattern.permute.xlu0 %v10091_v62 }
 0x409   : > { %3122 = vperm.xlu1 %5594, %v3117_v5   ;;  %3115 = vperm.xlu2 %5593, %v3092_v48   ;;  %v5756_v48 = vpop.eup %5755 }
 0x40a   : > { %3172 = vperm.xlu0 %5602, %v8227_v36   ;;  %v3033_v13 = vadd.f32 1.0, %v5756_v48  ;;  %v5758_v18 = vpop.eup %5757 }
 0x40b   : > { %v2098_v35 = vmul.f32 %v5758_v18, %v2037_v39  ;;  %vm2103_vm7 = vweird.f32 %v5758_v18 }
 0x40c   : > { %v8336_v17 = vmul.f32 0.5, %v3033_v13 }
 0x40d   : > { %v2099_v53 = vsub.f32 1.0, %v2098_v35  ;;  %v10132_v35 = vld [vmem:[#allocation111_spill] sm:$0xff] }
 0x40e   : > { %10114 = vst [vmem:[#allocation67_spill] sm:$0xff] %v8336_v17 }
 0x40f   : > { %v2100_v55 = vmul.f32 %v5758_v18, %v2099_v53 }
 0x411   : > { %5596 = vset.pattern.permute.xlu1 %v10092_v52  ;;  %5595 = vset.pattern.permute.xlu2 %v10090_v58  ;;  %v2101_v42 = vadd.f32 %v5758_v18, %v2100_v55 }
 0x412   : > { %5607 = vset.pattern.permute.xlu0 %v10090_v58 }
 0x419   : > { %3134 = vperm.xlu1 %5596, %v3117_v5   ;;  %3128 = vperm.xlu2 %5595, %v3117_v5   ;;  %v10107_v5 = vld [vmem:[#allocation148_spill] sm:$0xff] }
 0x41a   : > { %3203 = vperm.xlu0 %5607, %v8248_v63   ;;  %v3897_v60 = vperm.slane %v10107_v5, %v6956_v24 }
 0x41c   : > { %v3898_v4 = vsel %vm1881_vm12, %v3897_v60, %v3896_v51 }
 0x41d   : > { %v3900_v30 = vsel %vm1885_vm10, %v3899_v3, %v3898_v4  ;;  %v10124_v4 = vmov 0  }
 0x41e   : > { %v3902_v1 = vsel %vm1889_vm0, %v3901_v50, %v3900_v30  ;;  %v10126_v50 = vld [vmem:[#allocation75_spill] sm:$0xff] }
 0x41f   : > { %v3915_v20 = vsel %vm10115_vm15, %v3902_v1, %v3914_v14  ;;  %v2010_v7 = vmul.f32 %v10126_v50, %v10125_v12  ;;  %vm2104_vm15 = vmor %vm2102_vm1, %vm2103_vm7  ;;  %v10131_v12 = vld [vmem:[#allocation86_spill] sm:$0xff] }
 0x420   : > { %v8345_v9 = vsel %vm10116_vm6, %v3909_v22, %v3915_v20  ;;  %v2108_v22 = vand.u32 2147483648, %v2037_v39  ;;  %v2105_v20 = vsel %vm2104_vm15, %v5758_v18, %v2101_v42  ;;  %v8454_v50 = vadd.f32 1e-08, %v10131_v12 }
 0x421   : > { %5599 = vset.pattern.permute.xlu1 %v10090_v58  ;;  %5598 = vset.pattern.permute.xlu2 %v10091_v62  ;;  %10117 = vst [vmem:[#allocation29_spill] sm:$0xff] %v8345_v9  ;;  %v8349_v6 = vmul.f32 %v8345_v9, %v8336_v17  ;;  %v2042_v37 = vadd.f32 1e-08, %v2010_v7 }
 0x422   : > { %5612 = vset.pattern.permute.xlu0 %v10092_v52  ;;  %v2109_v46 = vor.u32 1.1754944e-38, %v2108_v22 }
 0x423   : > { %v8352_v38 = vperm.slane %v8349_v6, 0  ;;  %v8359_v57 = vperm.slane %v8349_v6, 1  ;;  %v8368_v51 = vperm.slane %v8349_v6, 3  ;;  %v8379_v10 = vperm.slane %v8349_v6, 4  ;;  %v8395_v59 = vpop.permute.xlu2 %3053 }
 0x424   : > { %v8398_v48 = vperm.slane %v8349_v6, 5  ;;  %v8418_v45 = vperm.slane %v8349_v6, 6  ;;  %5759 = vrcp.f32 %v2042_v37  ;;  %vm2177_vm1 = vweird.f32 %v2042_v37 }
 0x425   : > { %5761 = vrcp.f32 %v8454_v50  ;;  %v4142_v26 = vrot.slane %v8349_v6, 5 }
 0x429   : > { %3153 = vperm.xlu1 %5599, %v3142_v61   ;;  %3147 = vperm.xlu2 %5598, %v3142_v61  }
 0x42a   : > { %3234 = vperm.xlu0 %5612, %v8339_v19   ;;  %v5760_v1 = vpop.eup %5759 }
 0x42b   : > { %vm2178_vm7 = vweird.f32 %v5760_v1 }
 0x42c   : > { %vm2179_vm15 = vmor %vm2177_vm1, %vm2178_vm7  ;;  %vm2252_vm1 = vweird.f32 %v8454_v50 }
 0x431   : > { %5601 = vset.pattern.permute.xlu1 %v10096_v33  ;;  %5600 = vset.pattern.permute.xlu2 %v10092_v52 }
 0x432   : > { %3954 = vperm.xlu0 %5612, %v8352_v38  }
 0x439   : > { %3165 = vperm.xlu1 %5601, %v3142_v61   ;;  %3159 = vperm.xlu2 %5600, %v3142_v61   ;;  %v10129_v61 = vld [vmem:[#allocation103_spill] sm:$0xff] }
 0x43a   : > { %5619 = vset.pattern.permute.xlu0 %v10096_v33 }
 0x43b   : > { %v8405_v28 = vpop.permute.xlu1 %3059 }
 0x441   : > { %5604 = vset.pattern.permute.xlu1 %v10092_v52  ;;  %5603 = vset.pattern.permute.xlu2 %v10090_v58 }
 0x442   : > { %3985 = vperm.xlu0 %5619, %v8359_v57  }
 0x449   : > { %3184 = vperm.xlu1 %5604, %v8227_v36   ;;  %3178 = vperm.xlu2 %5603, %v8227_v36  }
 0x44a   : > { %5624 = vset.pattern.permute.xlu0 %v10091_v62 }
 0x44b   : > { %v8414_v49 = vpop.permute.xlu1 %3072 }
 0x451   : > { %5606 = vset.pattern.permute.xlu1 %v10091_v62  ;;  %5605 = vset.pattern.permute.xlu2 %v10096_v33 }
 0x452   : > { %4017 = vperm.xlu0 %5624, %v8368_v51  }
 0x459   : > { %3197 = vperm.xlu1 %5606, %v8248_v63   ;;  %3190 = vperm.xlu2 %5605, %v8227_v36   ;;  %v8391_v36 = vpop.permute.xlu0 %3047 }
 0x45a   : > { %5629 = vset.pattern.permute.xlu0 %v10090_v58 }
 0x45b   : > { %v8425_v34 = vpop.permute.xlu1 %3090 }
 0x461   : > { %5609 = vset.pattern.permute.xlu1 %v10096_v33  ;;  %5608 = vset.pattern.permute.xlu2 %v10092_v52  ;;  %v8403_v23 = vpop.permute.xlu0 %3078 }
 0x462   : > { %4048 = vperm.xlu0 %5629, %v8379_v10  }
 0x469   : > { %3215 = vperm.xlu1 %5609, %v8248_v63   ;;  %3209 = vperm.xlu2 %5608, %v8248_v63   ;;  %v3066_v63 = vpop.permute.xlu2 %3065  ;;  %v8410_v5 = vpop.permute.xlu0 %3109 }
 0x46a   : > { %5634 = vset.pattern.permute.xlu0 %v10092_v52  ;;  %v3277_v32 = vmul.f32 %v3066_v63, %v10123_v21  ;;  %v2173_v63 = vmul.f32 %v5760_v1, %v2042_v37 }
 0x46b   : > { %v8435_v13 = vpop.permute.xlu1 %3103 }
 0x46c   : > { %v2174_v7 = vsub.f32 1.0, %v2173_v63  ;;  %v10137_v63 = vld [vmem:[#allocation114_spill] sm:$0xff] }
 0x471   : > { %5611 = vset.pattern.permute.xlu1 %v10090_v58  ;;  %5610 = vset.pattern.permute.xlu2 %v10091_v62  ;;  %v8412_v60 = vpop.permute.xlu2 %3084  ;;  %v8423_v29 = vpop.permute.xlu0 %3140 }
 0x472   : > { %4079 = vperm.xlu0 %5634, %v8398_v48  }
 0x479   : > { %3228 = vperm.xlu1 %5611, %v8339_v19   ;;  %3222 = vperm.xlu2 %5610, %v8339_v19   ;;  %v3098_v15 = vpop.permute.xlu2 %3097 }
 0x47a   : > { %5639 = vset.pattern.permute.xlu0 %v10096_v33  ;;  %v3282_v47 = vmul.f32 %v3098_v15, %v10127_v54  ;;  %v2175_v54 = vmul.f32 %v5760_v1, %v2174_v7 }
 0x47b   : > { %v8444_v30 = vpop.permute.xlu1 %3122 }
 0x47c   : > { %v8433_v3 = vpop.permute.xlu0 %3172 }
 0x481   : > { %5613 = vset.pattern.permute.xlu2 %v10096_v33  ;;  %3948 = vperm.xlu1 %5611, %v8352_v38   ;;  %v3116_v44 = vpop.permute.xlu2 %3115 }
 0x482   : > { %4110 = vperm.xlu0 %5639, %v8418_v45   ;;  %v3285_v11 = vmul.f32 %v3116_v44, %v10129_v61 }
 0x489   : > { %3240 = vperm.xlu2 %5613, %v8339_v19   ;;  %5616 = vset.pattern.permute.xlu1 %v10091_v62  ;;  %v8442_v2 = vpop.permute.xlu2 %3128  ;;  %v2106_v19 = vand.u32 2147483647, %v2037_v39  ;;  %v10133_v39 = vld [vmem:[#allocation40_spill] sm:$0xff] }
 0x48a   : > { %5646 = vset.pattern.permute.xlu0 %v10124_v4 }
 0x48b   : > { %3348 = vperm.xlu0 %5646, %v3277_v32   ;;  %v3135_v21 = vpop.permute.xlu1 %3134  ;;  %vm2107_vm6 = vcmp.eq.f32.partialorder %v2106_v19, 8.507059e+37  ;;  %v2176_v19 = vadd.f32 %v5760_v1, %v2175_v54  ;;  %v10139_v54 = vld [vmem:[#allocation108_spill] sm:$0xff] }
 0x48c   : > { %v8440_v16 = vpop.permute.xlu0 %3203  ;;  %v2110_v32 = vsel %vm2107_vm6, %v2109_v46, %v2105_v20  ;;  %v3288_v44 = vmul.f32 %v3135_v21, %v10132_v35  ;;  %v5762_v20 = vpop.eup %5761  ;;  %v2183_v21 = vand.u32 2147483648, %v2042_v37 }
 0x48d   : > { %10128 = vst [vmem:[#allocation150_spill] sm:$0xff] %v8440_v16  ;;  %v2111_v53 = vmul.f32 %v2110_v32, %v10133_v39  ;;  %v2181_v32 = vand.u32 2147483647, %v2042_v37  ;;  %v2180_v12 = vsel %vm2179_vm15, %v5760_v1, %v2176_v19  ;;  %v2248_v7 = vmul.f32 %v5762_v20, %v8454_v50  ;;  %v10141_v1 = vld [vmem:[#allocation45_spill] sm:$0xff] }
 0x48e   : > { %v2184_v35 = vor.u32 1.1754944e-38, %v2183_v21  ;;  %v8475_v39 = vperm.slane %v8349_v6, 2  ;;  %vm2253_vm7 = vweird.f32 %v5762_v20 }
 0x48f   : > { %vm2182_vm6 = vcmp.eq.f32.partialorder %v2181_v32, 8.507059e+37  ;;  %vm2254_vm15 = vmor %vm2252_vm1, %vm2253_vm7 }
 0x491   : > { %5614 = vset.pattern.permute.xlu2 %v10091_v62  ;;  %3967 = vperm.xlu1 %5616, %v8359_v57   ;;  %v8451_v15 = vpop.permute.xlu2 %3147 }
 0x493   : > { %3363 = vperm.xlu0 %5646, %v3282_v47  }
 0x499   : > { %5618 = vset.pattern.permute.xlu1 %v10092_v52  ;;  %3942 = vperm.xlu2 %5614, %v8352_v38   ;;  %v8462_v55 = vpop.permute.xlu2 %3159 }
 0x49a   : > { %10134 = vst [vmem:[#allocation149_spill] sm:$0xff] %v8462_v55 }
 0x49b   : > { %3372 = vperm.xlu0 %5646, %v3285_v11   ;;  %v3154_v42 = vpop.permute.xlu1 %3153  ;;  %v2549_v11 = vsel %vm6734_vm4, 1.0, %v2111_v53  ;;  %v2185_v53 = vsel %vm2182_vm6, %v2184_v35, %v2180_v12 }
 0x49c   : > { %v8449_v14 = vpop.permute.xlu0 %3234  ;;  %v3291_v46 = vmul.f32 %v3154_v42, %v10137_v63  ;;  %v2249_v42 = vsub.f32 1.0, %v2248_v7  ;;  %v2186_v19 = vmul.f32 %v2185_v53, %v10141_v1  ;;  %v2258_v53 = vand.u32 2147483648, %v8454_v50 }
 0x49d   : > { %10130 = vst [vmem:[#allocation145_spill] sm:$0xff] %v8449_v14 }
 0x49e   : > { %v2250_v21 = vmul.f32 %v5762_v20, %v2249_v42  ;;  %v2554_v7 = vsel %vm6774_vm5, 1.0, %v2186_v19  ;;  %v2259_v1 = vor.u32 1.1754944e-38, %v2258_v53 }
 0x4a1   : > { %3979 = vperm.xlu1 %5618, %v8359_v57   ;;  %5615 = vset.pattern.permute.xlu2 %v10096_v33 }
 0x4a3   : > { %3381 = vperm.xlu0 %5646, %v3288_v44   ;;  %v8472_v44 = vpop.permute.xlu2 %3178 }
 0x4a4   : > { %v3955_v18 = vpop.permute.xlu0 %3954  ;;  %10138 = vst [vmem:[#allocation148_spill] sm:$0xff] %v8472_v44 }
 0x4a5   : > { %v4163_v47 = vmul.f32 %v3955_v18, %v8352_v38  ;;  %v4138_v18 = vrot.slane %v8349_v6, 1 }
 0x4a7   : > { %v8466_v22 = vmul.f32 %v4163_v47, %v2549_v11  ;;  %v2052_v47 = vadd.f32 1e-08, %v10139_v54  ;;  %v10140_v11 = vld [vmem:[#allocation123_spill] sm:$0xff]  ;;  %v8484_v63 = vperm.slane %v4138_v18, 0  ;;  %v2256_v18 = vand.u32 2147483647, %v8454_v50 }
 0x4a8   : > { %v3294_v37 = vmul.f32 %v8433_v3, %v10140_v11  ;;  %v2251_v3 = vadd.f32 %v5762_v20, %v2250_v21 }
 0x4a9   : > { %10136 = vst [vmem:[#allocation146_spill] sm:$0xff] %v8466_v22  ;;  %5621 = vset.pattern.permute.xlu1 %v10090_v58  ;;  %3960 = vperm.xlu2 %5615, %v8352_v38   ;;  %5763 = vrcp.f32 %v2052_v47  ;;  %v10144_v22 = vld [vmem:[#allocation125_spill] sm:$0xff]  ;;  %vm2257_vm6 = vcmp.eq.f32.partialorder %v2256_v18, 8.507059e+37  ;;  %vm2327_vm1 = vweird.f32 %v2052_v47 }
 0x4aa   : > { %v2255_v42 = vsel %vm2254_vm15, %v5762_v20, %v2251_v3  ;;  %v10147_v20 = vld [vmem:[#allocation128_spill] sm:$0xff] }
 0x4ab   : > { %3390 = vperm.xlu0 %5646, %v3291_v46   ;;  %v2260_v19 = vsel %vm2257_vm6, %v2259_v1, %v2255_v42  ;;  %v10356_v42 = vld [vmem:[#allocation66_spill] sm:$0xff] }
 0x4af   : > { %v5764_v11 = vpop.eup %5763 }
 0x4b0   : > { %vm2328_vm7 = vweird.f32 %v5764_v11 }
 0x4b1   : > { %3998 = vperm.xlu1 %5621, %v8475_v39   ;;  %5617 = vset.pattern.permute.xlu2 %v10090_v58  ;;  %vm2329_vm15 = vmor %vm2327_vm1, %vm2328_vm7 }
 0x4b3   : > { %3399 = vperm.xlu0 %5646, %v3294_v37   ;;  %v3191_v12 = vpop.permute.xlu2 %3190  ;;  %v2323_v37 = vmul.f32 %v5764_v11, %v2052_v47 }
 0x4b4   : > { %v3986_v46 = vpop.permute.xlu0 %3985  ;;  %v3297_v8 = vmul.f32 %v3191_v12, %v10144_v22  ;;  %v10145_v22 = vld [vmem:[#allocation129_spill] sm:$0xff] }
 0x4b5   : > { %v4168_v32 = vmul.f32 %v8484_v63, %v3986_v46  ;;  %v4140_v46 = vrot.slane %v8349_v6, 3  ;;  %v8499_v21 = vadd.f32 1e-08, %v10145_v22 }
 0x4b7   : > { %v8489_v54 = vmul.f32 %v4168_v32, %v2554_v7  ;;  %v2324_v32 = vsub.f32 1.0, %v2323_v37  ;;  %5765 = vrcp.f32 %v8499_v21  ;;  %vm2402_vm1 = vweird.f32 %v8499_v21 }
 0x4b9   : > { %10143 = vst [vmem:[#allocation153_spill] sm:$0xff] %v8489_v54  ;;  %5623 = vset.pattern.permute.xlu1 %v10096_v33  ;;  %3973 = vperm.xlu2 %5617, %v8359_v57   ;;  %v10146_v57 = vld [vmem:[#allocation37_spill] sm:$0xff]  ;;  %v2325_v53 = vmul.f32 %v5764_v11, %v2324_v32 }
 0x4ba   : > { %v2261_v12 = vmul.f32 %v2260_v19, %v10146_v57  ;;  %v2331_v57 = vand.u32 2147483647, %v2052_v47 }
 0x4bb   : > { %3408 = vperm.xlu0 %5646, %v3297_v8   ;;  %v8504_v8 = vperm.slane %v4140_v46, 0  ;;  %v2326_v22 = vadd.f32 %v5764_v11, %v2325_v53  ;;  %v2333_v46 = vand.u32 2147483648, %v2052_v47  ;;  %v10151_v53 = vld [vmem:[#allocation70_spill] sm:$0xff]  ;;  %v4141_v47 = vrot.slane %v8349_v6, 4 }
 0x4bc   : > { %v2559_v37 = vsel %vm6696_vm2, 1.0, %v2261_v12  ;;  %vm2332_vm6 = vcmp.eq.f32.partialorder %v2331_v57, 8.507059e+37 }
 0x4bd   : > { %v5766_v19 = vpop.eup %5765  ;;  %v2330_v32 = vsel %vm2329_vm15, %v5764_v11, %v2326_v22  ;;  %v2334_v12 = vor.u32 1.1754944e-38, %v2333_v46  ;;  %v10153_v11 = vld [vmem:[#allocation53_spill] sm:$0xff]  ;;  %v8536_v57 = vperm.slane %v4141_v47, 0  ;;  %v2406_v47 = vand.u32 2147483647, %v8499_v21 }
 0x4be   : > { %vm2403_vm7 = vweird.f32 %v5766_v19 }
 0x4bf   : > { %v2335_v54 = vsel %vm2332_vm6, %v2334_v12, %v2330_v32  ;;  %vm2404_vm15 = vmor %vm2402_vm1, %vm2403_vm7  ;;  %vm2407_vm6 = vcmp.eq.f32.partialorder %v2406_v47, 8.507059e+37 }
 0x4c0   : > { %v2336_v22 = vmul.f32 %v2335_v54, %v10153_v11 }
 0x4c1   : > { %4010 = vperm.xlu1 %5623, %v8475_v39   ;;  %5620 = vset.pattern.permute.xlu2 %v10091_v62 }
 0x4c3   : > { %v3210_v50 = vpop.permute.xlu2 %3209 }
 0x4c4   : > { %v3300_v7 = vmul.f32 %v3210_v50, %v10147_v20  ;;  %v4018_v3 = vpop.permute.xlu0 %4017  ;;  %v8515_v50 = vpop.permute.xlu1 %3165  ;;  %v2398_v20 = vmul.f32 %v5766_v19, %v8499_v21 }
 0x4c5   : > { %v4173_v18 = vmul.f32 %v8504_v8, %v4018_v3 }
 0x4c6   : > { %3417 = vperm.xlu0 %5646, %v3300_v7   ;;  %v10150_v7 = vld [vmem:[#allocation71_spill] sm:$0xff]  ;;  %v2399_v17 = vsub.f32 1.0, %v2398_v20 }
 0x4c7   : > { %v8511_v1 = vmul.f32 %v4173_v18, %v2559_v37  ;;  %v8519_v3 = vadd.f32 1e-08, %v10150_v7  ;;  %v8522_v18 = vadd.f32 1e-08, %v10151_v53  ;;  %v10152_v37 = vld [vmem:[#allocation118_spill] sm:$0xff]  ;;  %v2564_v53 = vsel %vm6714_vm3, 1.0, %v2336_v22 }
 0x4c8   : > { %v2400_v12 = vmul.f32 %v5766_v19, %v2399_v17  ;;  %v2408_v17 = vand.u32 2147483648, %v8499_v21  ;;  %v8566_v21 = vadd.f32 1e-08, %v10159_v27 }
 0x4c9   : > { %10149 = vst [vmem:[#allocation143_spill] sm:$0xff] %v8511_v1  ;;  %5626 = vset.pattern.permute.xlu1 %v10092_v52  ;;  %3992 = vperm.xlu2 %5620, %v8475_v39   ;;  %v8525_v1 = vadd.f32 1e-08, %v10152_v37  ;;  %5767 = vrcp.f32 %v8519_v3  ;;  %vm2087_vm7 = vweird.f32 %v8519_v3  ;;  %vm2072_vm11 = vweird.f32 %v8522_v18 }
 0x4ca   : > { %5769 = vrcp.f32 %v8522_v18  ;;  %v2401_v11 = vadd.f32 %v5766_v19, %v2400_v12  ;;  %v2409_v43 = vor.u32 1.1754944e-38, %v2408_v17 }
 0x4cb   : > { %5771 = vrcp.f32 %v8525_v1  ;;  %vm2477_vm13 = vweird.f32 %v8525_v1 }
 0x4cc   : > { %v8534_v46 = vpop.permute.xlu1 %3184 }
 0x4cd   : > { %10154 = vst [vmem:[#allocation144_spill] sm:$0xff] %v8534_v46 }
 0x4cf   : > { %v8541_v37 = vpop.eup %5767 }
 0x4d0   : > { %v8545_v54 = vpop.eup %5769  ;;  %vm2088_vm1 = vweird.f32 %v8541_v37 }
 0x4d1   : > { %4029 = vperm.xlu1 %5626, %v8368_v51   ;;  %5622 = vset.pattern.permute.xlu2 %v10092_v52  ;;  %v8547_v56 = vpop.eup %5771  ;;  %v2068_v12 = vmul.f32 %v8545_v54, %v8522_v18  ;;  %vm8606_vm14 = vmor %vm2087_vm7, %vm2088_vm1 }
 0x4d3   : > { %v2069_v25 = vsub.f32 1.0, %v2068_v12  ;;  %v8574_v17 = vpop.permute.xlu2 %3222 }
 0x4d4   : > { %v4049_v32 = vpop.permute.xlu0 %4048  ;;  %v8554_v22 = vpop.permute.xlu1 %3197  ;;  %10161 = vst [vmem:[#allocation151_spill] sm:$0xff] %v8574_v17 }
 0x4d5   : > { %v4178_v20 = vmul.f32 %v8536_v57, %v4049_v32  ;;  %10157 = vst [vmem:[#allocation142_spill] sm:$0xff] %v8554_v22  ;;  %v2083_v32 = vmul.f32 %v8541_v37, %v8519_v3  ;;  %v10171_v22 = vld [vmem:[#allocation132_spill] sm:$0xff] }
 0x4d7   : > { %v8543_v9 = vmul.f32 %v4178_v20, %v2564_v53  ;;  %v2405_v20 = vsel %vm2404_vm15, %v5766_v19, %v2401_v11  ;;  %v2473_v53 = vmul.f32 %v8547_v56, %v8525_v1  ;;  %v2084_v40 = vsub.f32 1.0, %v2083_v32  ;;  %v10160_v19 = vld [vmem:[#allocation58_spill] sm:$0xff] }
 0x4d8   : > { %v2410_v0 = vsel %vm2407_vm6, %v2409_v43, %v2405_v20  ;;  %v8578_v43 = vperm.slane %v4142_v26, 0  ;;  %v2070_v32 = vmul.f32 %v8545_v54, %v2069_v25  ;;  %vm2073_vm15 = vweird.f32 %v8545_v54 }
 0x4d9   : > { %10156 = vst [vmem:[#allocation152_spill] sm:$0xff] %v8543_v9  ;;  %5628 = vset.pattern.permute.xlu1 %v10091_v62  ;;  %4004 = vperm.xlu2 %5622, %v8475_v39   ;;  %v10158_v39 = vld [vmem:[#allocation73_spill] sm:$0xff]  ;;  %v2474_v24 = vsub.f32 1.0, %v2473_v53  ;;  %v2411_v11 = vmul.f32 %v2410_v0, %v10160_v19  ;;  %v2085_v47 = vmul.f32 %v8541_v37, %v2084_v40  ;;  %vm2478_vm6 = vweird.f32 %v8547_v56  ;;  %vm8617_vm9 = vmor %vm2072_vm11, %vm2073_vm15 }
 0x4da   : > { %v8563_v9 = vadd.f32 1e-08, %v10158_v39  ;;  %v2071_v25 = vadd.f32 %v8545_v54, %v2070_v32  ;;  %vm8625_vm7 = vmor %vm2477_vm13, %vm2478_vm6  ;;  %v10172_v32 = vld [vmem:[#allocation78_spill] sm:$0xff]  ;;  %vm2132_vm15 = vweird.f32 %v8566_v21 }
 0x4db   : > { %v2475_v20 = vmul.f32 %v8547_v56, %v2474_v24  ;;  %v2569_v0 = vsel %vm6734_vm4, 1.0, %v2411_v11  ;;  %v2086_v40 = vadd.f32 %v8541_v37, %v2085_v47  ;;  %v2093_v11 = vand.u32 2147483648, %v8519_v3 }
 0x4dc   : > { %5773 = vrcp.f32 %v8563_v9  ;;  %v8576_v27 = vpop.permute.xlu1 %3215  ;;  %v2483_v47 = vand.u32 2147483648, %v8525_v1 }
 0x4dd   : > { %5775 = vrcp.f32 %v8566_v21  ;;  %10162 = vst [vmem:[#allocation72_spill] sm:$0xff] %v8576_v27  ;;  %v2476_v19 = vadd.f32 %v8547_v56, %v2475_v20  ;;  %v2091_v20 = vand.u32 2147483647, %v8519_v3  ;;  %v2094_v55 = vor.u32 1.1754944e-38, %v2093_v11 }
 0x4df   : > { %v2480_v44 = vsel %vm8625_vm7, %v8547_v56, %v2476_v19  ;;  %vm2092_vm13 = vcmp.eq.f32.partialorder %v2091_v20, 8.507059e+37  ;;  %v10174_v19 = vld [vmem:[#allocation35_spill] sm:$0xff]  ;;  %vm2117_vm7 = vweird.f32 %v8563_v9 }
 0x4e1   : > { %4042 = vperm.xlu1 %5628, %v8379_v10   ;;  %5625 = vset.pattern.permute.xlu2 %v10090_v58 }
 0x4e2   : > { %v8588_v39 = vpop.eup %5773 }
 0x4e3   : > { %v8595_v24 = vpop.eup %5775  ;;  %v8621_v31 = vpop.permute.xlu2 %3240  ;;  %vm2118_vm1 = vweird.f32 %v8588_v39 }
 0x4e4   : > { %v4080_v12 = vpop.permute.xlu0 %4079  ;;  %10168 = vst [vmem:[#allocation74_spill] sm:$0xff] %v8621_v31  ;;  %v2128_v27 = vmul.f32 %v8595_v24, %v8566_v21  ;;  %v2113_v31 = vmul.f32 %v8588_v39, %v8563_v9 }
 0x4e5   : > { %v4183_v53 = vmul.f32 %v8578_v43, %v4080_v12  ;;  %v2078_v12 = vand.u32 2147483648, %v8522_v18 }
 0x4e6   : > { %v2129_v3 = vsub.f32 1.0, %v2128_v27  ;;  %v2114_v56 = vsub.f32 1.0, %v2113_v31 }
 0x4e7   : > { %v8590_v26 = vmul.f32 %v4183_v53, %v2569_v0  ;;  %v2076_v53 = vand.u32 2147483647, %v8522_v18  ;;  %v2481_v0 = vand.u32 2147483647, %v8525_v1  ;;  %v2090_v18 = vsel %vm8606_vm14, %v8541_v37, %v2086_v40 }
 0x4e8   : > { %v2075_v1 = vsel %vm8617_vm9, %v8545_v54, %v2071_v25  ;;  %v2079_v16 = vor.u32 1.1754944e-38, %v2078_v12  ;;  %v8644_v37 = vadd.f32 1e-08, %v10172_v32  ;;  %v2484_v40 = vor.u32 1.1754944e-38, %v2483_v47  ;;  %v10173_v25 = vld [vmem:[#allocation77_spill] sm:$0xff] }
 0x4e9   : > { %10163 = vst [vmem:[#allocation102_spill] sm:$0xff] %v8590_v26  ;;  %5631 = vset.pattern.permute.xlu1 %v10096_v33  ;;  %4023 = vperm.xlu2 %5625, %v8368_v51   ;;  %vm2077_vm9 = vcmp.eq.f32.partialorder %v2076_v53, 8.507059e+37  ;;  %vm2482_vm11 = vcmp.eq.f32.partialorder %v2481_v0, 8.507059e+37  ;;  %v2095_v54 = vsel %vm2092_vm13, %v2094_v55, %v2090_v18  ;;  %v8647_v46 = vadd.f32 1e-08, %v10173_v25  ;;  %v10176_v55 = vld [vmem:[#allocation65_spill] sm:$0xff]  ;;  %vm2119_vm13 = vmor %vm2117_vm7, %vm2118_vm1 }
 0x4ea   : > { %v2080_v26 = vsel %vm2077_vm9, %v2079_v16, %v2075_v1  ;;  %5777 = vrcp.f32 %v8644_v37  ;;  %v2096_v11 = vmul.f32 %v2095_v54, %v10174_v19  ;;  %v2130_v31 = vmul.f32 %v8595_v24, %v2129_v3 }
 0x4eb   : > { %v3229_v14 = vpop.permute.xlu1 %3228  ;;  %5779 = vrcp.f32 %v8647_v46  ;;  %v2115_v27 = vmul.f32 %v8588_v39, %v2114_v56  ;;  %vm2133_vm14 = vweird.f32 %v8595_v24  ;;  %vm2147_vm7 = vweird.f32 %v8647_v46 }
 0x4ec   : > { %v3303_v17 = vmul.f32 %v3229_v14, %v10171_v22  ;;  %v2485_v14 = vsel %vm2482_vm11, %v2484_v40, %v2480_v44  ;;  %v4143_v22 = vrot.slane %v8349_v6, 6  ;;  %v2548_v32 = vsel %vm6714_vm3, 1.0, %v2096_v11  ;;  %vm2134_vm6 = vmor %vm2132_vm15, %vm2133_vm14 }
 0x4ed   : > { %v2486_v16 = vmul.f32 %v2485_v14, %v10176_v55  ;;  %v2131_v3 = vadd.f32 %v8595_v24, %v2130_v31  ;;  %v2116_v56 = vadd.f32 %v8588_v39, %v2115_v27  ;;  %v2138_v11 = vand.u32 2147483648, %v8566_v21 }
 0x4ee   : > { %3426 = vperm.xlu0 %5646, %v3303_v17   ;;  %v10175_v17 = vld [vmem:[#allocation32_spill] sm:$0xff]  ;;  %v8657_v47 = vperm.slane %v4143_v22, 0  ;;  %v2121_v55 = vand.u32 2147483647, %v8563_v9  ;;  %vm2162_vm15 = vweird.f32 %v8644_v37 }
 0x4ef   : > { %v2081_v12 = vmul.f32 %v2080_v26, %v10175_v17  ;;  %v2574_v54 = vsel %vm6774_vm5, 1.0, %v2486_v16  ;;  %v2123_v17 = vand.u32 2147483648, %v8563_v9  ;;  %v2135_v16 = vsel %vm2134_vm6, %v8595_v24, %v2131_v3 }
 0x4f0   : > { %v8676_v14 = vpop.eup %5777  ;;  %v2139_v27 = vor.u32 1.1754944e-38, %v2138_v11  ;;  %vm2122_vm11 = vcmp.eq.f32.partialorder %v2121_v55, 8.507059e+37 }
 0x4f1   : > { %4060 = vperm.xlu1 %5631, %v8379_v10   ;;  %5627 = vset.pattern.permute.xlu2 %v10096_v33  ;;  %v2547_v40 = vsel %vm6696_vm2, 1.0, %v2081_v12  ;;  %v8683_v19 = vpop.eup %5779  ;;  %v2136_v12 = vand.u32 2147483647, %v8566_v21  ;;  %vm2163_vm14 = vweird.f32 %v8676_v14 }
 0x4f2   : > { %v2143_v31 = vmul.f32 %v8683_v19, %v8647_v46  ;;  %vm2148_vm1 = vweird.f32 %v8683_v19  ;;  %vm8736_vm6 = vmor %vm2162_vm15, %vm2163_vm14 }
 0x4f3   : > { %v3949_v44 = vpop.permute.xlu1 %3948  ;;  %v3943_v20 = vpop.permute.xlu2 %3942  ;;  %vm2137_vm9 = vcmp.eq.f32.partialorder %v2136_v12, 8.507059e+37 }
 0x4f4   : > { %v4111_v53 = vpop.permute.xlu0 %4110  ;;  %v4162_v0 = vmul.f32 %v3949_v44, %v8352_v38  ;;  %v4161_v18 = vmul.f32 %v3943_v20, %v8352_v38  ;;  %v2120_v44 = vsel %vm2119_vm13, %v8588_v39, %v2116_v56  ;;  %v2158_v20 = vmul.f32 %v8676_v14, %v8644_v37  ;;  %vm2149_vm13 = vmor %vm2147_vm7, %vm2148_vm1 }
 0x4f5   : > { %v4188_v1 = vmul.f32 %v8657_v47, %v4111_v53  ;;  %v10178_v53 = vld [vmem:[#allocation83_spill] sm:$0xff]  ;;  %v2140_v21 = vsel %vm2137_vm9, %v2139_v27, %v2135_v16  ;;  %v2144_v39 = vsub.f32 1.0, %v2143_v31 }
 0x4f6   : > { %v8670_v26 = vmul.f32 %v4162_v0, %v2548_v32  ;;  %v8672_v25 = vmul.f32 %v4161_v18, %v2547_v40  ;;  %5647 = vset.pattern.permute.xlu0 %v10091_v62  ;;  %v8700_v0 = vadd.f32 1e-08, %v10178_v53  ;;  %v10179_v18 = vld [vmem:[#allocation82_spill] sm:$0xff]  ;;  %v2159_v24 = vsub.f32 1.0, %v2158_v20  ;;  %v10180_v32 = vld [vmem:[#allocation33_spill] sm:$0xff] }
 0x4f7   : > { %v8678_v22 = vmul.f32 %v4188_v1, %v2574_v54  ;;  %v8703_v1 = vadd.f32 1e-08, %v10179_v18  ;;  %v2141_v40 = vmul.f32 %v2140_v21, %v10180_v32  ;;  %v10181_v54 = vld [vmem:[#allocation44_spill] sm:$0xff]  ;;  %v2145_v12 = vmul.f32 %v8683_v19, %v2144_v39 }
 0x4f8   : > { %5781 = vrcp.f32 %v8700_v0  ;;  %v2153_v18 = vand.u32 2147483648, %v8647_v46  ;;  %v2166_v39 = vand.u32 2147483647, %v8644_v37  ;;  %v2151_v32 = vand.u32 2147483647, %v8647_v46 }
 0x4f9   : > { %10177 = vst [vmem:[#allocation75_spill] sm:$0xff] %v8678_v22  ;;  %5633 = vset.pattern.permute.xlu1 %v10090_v58  ;;  %4035 = vperm.xlu2 %5627, %v8368_v51   ;;  %v2124_v51 = vor.u32 1.1754944e-38, %v2123_v17  ;;  %5783 = vrcp.f32 %v8703_v1  ;;  %v2160_v17 = vmul.f32 %v8676_v14, %v2159_v24  ;;  %v2146_v21 = vadd.f32 %v8683_v19, %v2145_v12  ;;  %v10202_v22 = vld [vmem:[#allocation109_spill] sm:$0xff] }
 0x4fa   : > { %vm2167_vm9 = vcmp.eq.f32.partialorder %v2166_v39, 8.507059e+37  ;;  %vm2207_vm15 = vweird.f32 %v8700_v0  ;;  %vm2192_vm7 = vweird.f32 %v8703_v1 }
 0x4fb   : > { %v2125_v9 = vsel %vm2122_vm11, %v2124_v51, %v2120_v44  ;;  %v2551_v44 = vsel %vm6696_vm2, 1.0, %v2141_v40  ;;  %v2161_v53 = vadd.f32 %v8676_v14, %v2160_v17  ;;  %v10184_v40 = vld [vmem:[#allocation80_spill] sm:$0xff]  ;;  %v2150_v17 = vsel %vm2149_vm13, %v8683_v19, %v2146_v21  ;;  %v10187_v19 = vld [vmem:[#allocation41_spill] sm:$0xff] }
 0x4fc   : > { %v2126_v3 = vmul.f32 %v2125_v9, %v10181_v54  ;;  %v2168_v9 = vand.u32 2147483648, %v8644_v37  ;;  %v10185_v54 = vld [vmem:[#allocation81_spill] sm:$0xff]  ;;  %vm2152_vm11 = vcmp.eq.f32.partialorder %v2151_v32, 8.507059e+37  ;;  %v10188_v21 = vld [vmem:[#allocation36_spill] sm:$0xff] }
 0x4fe   : > { %v2550_v20 = vsel %vm6774_vm5, 1.0, %v2126_v3  ;;  %v8724_v51 = vpop.eup %5781  ;;  %v2014_v3 = vmul.f32 %v10185_v54, %v10184_v40  ;;  %v2169_v46 = vor.u32 1.1754944e-38, %v2168_v9 }
 0x4ff   : > { %v2203_v37 = vmul.f32 %v8724_v51, %v8700_v0  ;;  %vm2208_vm14 = vweird.f32 %v8724_v51 }
 0x501   : > { %4073 = vperm.xlu1 %5633, %v8398_v48   ;;  %5630 = vset.pattern.permute.xlu2 %v10092_v52  ;;  %v2204_v24 = vsub.f32 1.0, %v2203_v37 }
 0x503   : > { %v3968_v56 = vpop.permute.xlu1 %3967  ;;  %v3961_v11 = vpop.permute.xlu2 %3960  ;;  %v2205_v39 = vmul.f32 %v8724_v51, %v2204_v24  ;;  %v2211_v24 = vand.u32 2147483647, %v8700_v0 }
 0x504   : > { %v4165_v55 = vmul.f32 %v8484_v63, %v3968_v56  ;;  %v4164_v16 = vmul.f32 %v3961_v11, %v8352_v38  ;;  %v8729_v38 = vpop.eup %5783  ;;  %v10186_v56 = vld [vmem:[#allocation79_spill] sm:$0xff] }
 0x505   : > { %v2013_v11 = vmul.f32 %v10185_v54, %v10186_v56  ;;  %v2188_v12 = vmul.f32 %v8729_v38, %v8703_v1  ;;  %vm2193_vm1 = vweird.f32 %v8729_v38 }
 0x506   : > { %v8719_v31 = vmul.f32 %v4165_v55, %v2551_v44  ;;  %v8721_v27 = vmul.f32 %v4164_v16, %v2550_v20  ;;  %v2154_v55 = vor.u32 1.1754944e-38, %v2153_v18  ;;  %v8755_v16 = vadd.f32 1e-08, %v2014_v3  ;;  %vm2194_vm13 = vmor %vm2192_vm7, %vm2193_vm1 }
 0x507   : > { %v8757_v40 = vadd.f32 1e-08, %v2013_v11 }
 0x508   : > { %v2155_v20 = vsel %vm2152_vm11, %v2154_v55, %v2150_v17  ;;  %5785 = vrcp.f32 %v8755_v16 }
 0x509   : > { %5636 = vset.pattern.permute.xlu1 %v10091_v62  ;;  %4054 = vperm.xlu2 %5630, %v8379_v10   ;;  %v2165_v10 = vsel %vm8736_vm6, %v8676_v14, %v2161_v53  ;;  %v2189_v14 = vsub.f32 1.0, %v2188_v12  ;;  %v2156_v54 = vmul.f32 %v2155_v20, %v10188_v21  ;;  %5787 = vrcp.f32 %v8757_v40  ;;  %vm2209_vm6 = vmor %vm2207_vm15, %vm2208_vm14 }
 0x50a   : > { %v2170_v44 = vsel %vm2167_vm9, %v2169_v46, %v2165_v10  ;;  %v2206_v46 = vadd.f32 %v8724_v51, %v2205_v39  ;;  %v2198_v20 = vand.u32 2147483648, %v8703_v1  ;;  %vm2212_vm9 = vcmp.eq.f32.partialorder %v2211_v24, 8.507059e+37 }
 0x50b   : > { %v2171_v53 = vmul.f32 %v2170_v44, %v10187_v19  ;;  %v2190_v32 = vmul.f32 %v8729_v38, %v2189_v14  ;;  %v2552_v10 = vsel %vm6714_vm3, 1.0, %v2156_v54  ;;  %v2213_v44 = vand.u32 2147483648, %v8700_v0  ;;  %v10189_v0 = vld [vmem:[#allocation88_spill] sm:$0xff] }
 0x50c   : > { %v2196_v14 = vand.u32 2147483647, %v8703_v1  ;;  %v2210_v19 = vsel %vm2209_vm6, %v8724_v51, %v2206_v46  ;;  %v8800_v39 = vadd.f32 1e-08, %v10189_v0  ;;  %v4139_v1 = vrot.slane %v8349_v6, 2  ;;  %v10190_v51 = vld [vmem:[#allocation87_spill] sm:$0xff] }
 0x50d   : > { %v2553_v11 = vsel %vm6734_vm4, 1.0, %v2171_v53  ;;  %v2191_v55 = vadd.f32 %v8729_v38, %v2190_v32  ;;  %vm2237_vm15 = vweird.f32 %v8755_v16  ;;  %vm2222_vm7 = vweird.f32 %v8757_v40 }
 0x50e   : > { %v8778_v12 = vpop.eup %5785  ;;  %vm2197_vm11 = vcmp.eq.f32.partialorder %v2196_v14, 8.507059e+37  ;;  %5789 = vrcp.f32 %v8800_v39 }
 0x50f   : > { %v2195_v53 = vsel %vm2194_vm13, %v8729_v38, %v2191_v55  ;;  %v2233_v21 = vmul.f32 %v8778_v12, %v8755_v16  ;;  %v10192_v55 = vld [vmem:[#allocation39_spill] sm:$0xff]  ;;  %vm2238_vm14 = vweird.f32 %v8778_v12 }
 0x510   : > { %vm2239_vm6 = vmor %vm2237_vm15, %vm2238_vm14  ;;  %vm2282_vm15 = vweird.f32 %v8800_v39 }
 0x511   : > { %4092 = vperm.xlu1 %5636, %v8418_v45   ;;  %5632 = vset.pattern.permute.xlu2 %v10091_v62  ;;  %v2234_v38 = vsub.f32 1.0, %v2233_v21 }
 0x513   : > { %v3980_v9 = vpop.permute.xlu1 %3979  ;;  %v3974_v18 = vpop.permute.xlu2 %3973 }
 0x514   : > { %v4167_v3 = vmul.f32 %v8484_v63, %v3980_v9  ;;  %v4166_v56 = vmul.f32 %v8484_v63, %v3974_v18  ;;  %v8783_v63 = vpop.eup %5787  ;;  %v2214_v9 = vor.u32 1.1754944e-38, %v2213_v44  ;;  %v2199_v18 = vor.u32 1.1754944e-38, %v2198_v20 }
 0x515   : > { %v2218_v54 = vmul.f32 %v8783_v63, %v8757_v40  ;;  %v4147_v20 = vperm.slane %v4139_v1, 0  ;;  %v8823_v1 = vpop.eup %5789  ;;  %vm2223_vm1 = vweird.f32 %v8783_v63 }
 0x516   : > { %v8773_v17 = vmul.f32 %v4167_v3, %v2553_v11  ;;  %v8775_v37 = vmul.f32 %v4166_v56, %v2552_v10  ;;  %v2215_v32 = vsel %vm2212_vm9, %v2214_v9, %v2210_v19  ;;  %v2200_v3 = vsel %vm2197_vm11, %v2199_v18, %v2195_v53  ;;  %v10191_v10 = vld [vmem:[#allocation43_spill] sm:$0xff]  ;;  %vm2224_vm13 = vmor %vm2222_vm7, %vm2223_vm1 }
 0x517   : > { %v8804_v56 = vadd.f32 1e-08, %v10190_v51  ;;  %v2219_v11 = vsub.f32 1.0, %v2218_v54  ;;  %v2216_v46 = vmul.f32 %v2215_v32, %v10191_v10  ;;  %v2201_v44 = vmul.f32 %v2200_v3, %v10192_v55 }
 0x518   : > { %v2235_v19 = vmul.f32 %v8778_v12, %v2234_v38  ;;  %v2228_v10 = vand.u32 2147483648, %v8757_v40  ;;  %v2226_v55 = vand.u32 2147483647, %v8757_v40  ;;  %vm2283_vm14 = vweird.f32 %v8823_v1 }
 0x519   : > { %5638 = vset.pattern.permute.xlu1 %v10092_v52  ;;  %4067 = vperm.xlu2 %5632, %v8398_v48   ;;  %5791 = vrcp.f32 %v8804_v56  ;;  %v2220_v53 = vmul.f32 %v8783_v63, %v2219_v11  ;;  %v2556_v9 = vsel %vm6714_vm3, 1.0, %v2216_v46  ;;  %v2555_v18 = vsel %vm6696_vm2, 1.0, %v2201_v44 }
 0x51a   : > { %v2236_v3 = vadd.f32 %v8778_v12, %v2235_v19  ;;  %v2243_v11 = vand.u32 2147483648, %v8755_v16  ;;  %v2241_v46 = vand.u32 2147483647, %v8755_v16  ;;  %vm2227_vm11 = vcmp.eq.f32.partialorder %v2226_v55, 8.507059e+37 }
 0x51b   : > { %v2221_v51 = vadd.f32 %v8783_v63, %v2220_v53  ;;  %vm2267_vm7 = vweird.f32 %v8804_v56 }
 0x51c   : > { %v2240_v44 = vsel %vm2239_vm6, %v8778_v12, %v2236_v3  ;;  %v2244_v53 = vor.u32 1.1754944e-38, %v2243_v11  ;;  %vm2242_vm9 = vcmp.eq.f32.partialorder %v2241_v46, 8.507059e+37  ;;  %v8851_v12 = vperm.slane %v8349_v6, 7  ;;  %vm8882_vm6 = vmor %vm2282_vm15, %vm2283_vm14 }
 0x51e   : > { %v2245_v16 = vsel %vm2242_vm9, %v2244_v53, %v2240_v44 }
 0x51f   : > { %v8828_v38 = vpop.eup %5791 }
 0x520   : > { %v2263_v19 = vmul.f32 %v8828_v38, %v8804_v56  ;;  %vm2268_vm1 = vweird.f32 %v8828_v38 }
 0x521   : > { %4104 = vperm.xlu1 %5638, %v8418_v45   ;;  %5635 = vset.pattern.permute.xlu2 %v10096_v33 }
 0x522   : > { %v2264_v3 = vsub.f32 1.0, %v2263_v19 }
 0x523   : > { %v3999_v24 = vpop.permute.xlu1 %3998  ;;  %v3993_v14 = vpop.permute.xlu2 %3992 }
 0x524   : > { %v4170_v21 = vmul.f32 %v4147_v20, %v3999_v24  ;;  %v4169_v54 = vmul.f32 %v4147_v20, %v3993_v14  ;;  %v2225_v24 = vsel %vm2224_vm13, %v8783_v63, %v2221_v51  ;;  %v2278_v14 = vmul.f32 %v8823_v1, %v8800_v39  ;;  %v10196_v51 = vld [vmem:[#allocation52_spill] sm:$0xff]  ;;  %vm2269_vm13 = vmor %vm2267_vm7, %vm2268_vm1 }
 0x525   : > { %v2246_v11 = vmul.f32 %v2245_v16, %v10196_v51  ;;  %v2265_v53 = vmul.f32 %v8828_v38, %v2264_v3  ;;  %v2288_v51 = vand.u32 2147483648, %v8800_v39 }
 0x526   : > { %v8818_v0 = vmul.f32 %v4170_v21, %v2556_v9  ;;  %v8820_v32 = vmul.f32 %v4169_v54, %v2555_v18  ;;  %v10194_v21 = vld [vmem:[#allocation89_spill] sm:$0xff]  ;;  %v10195_v9 = vld [vmem:[#allocation107_spill] sm:$0xff]  ;;  %v2279_v63 = vsub.f32 1.0, %v2278_v14 }
 0x527   : > { %v8845_v54 = vadd.f32 1e-08, %v10194_v21  ;;  %v8848_v18 = vadd.f32 1e-08, %v10195_v9  ;;  %v2266_v3 = vadd.f32 %v8828_v38, %v2265_v53 }
 0x528   : > { %10193 = vst [vmem:[#allocation96_spill] sm:$0xff] %v8818_v0 }
 0x529   : > { %5641 = vset.pattern.permute.xlu1 %v10090_v58  ;;  %4085 = vperm.xlu2 %5635, %v8398_v48   ;;  %v2229_v48 = vor.u32 1.1754944e-38, %v2228_v10  ;;  %5793 = vrcp.f32 %v8845_v54  ;;  %v10197_v10 = vld [vmem:[#allocation48_spill] sm:$0xff]  ;;  %vm2297_vm15 = vweird.f32 %v8845_v54 }
 0x52a   : > { %5795 = vrcp.f32 %v8848_v18 }
 0x52b   : > { %v2230_v40 = vsel %vm2227_vm11, %v2229_v48, %v2225_v24  ;;  %v2280_v24 = vmul.f32 %v8823_v1, %v2279_v63  ;;  %v2558_v48 = vsel %vm6774_vm5, 1.0, %v2246_v11  ;;  %v2273_v11 = vand.u32 2147483648, %v8804_v56 }
 0x52c   : > { %v2231_v46 = vmul.f32 %v2230_v40, %v10197_v10 }
 0x52d   : > { %v2281_v63 = vadd.f32 %v8823_v1, %v2280_v24  ;;  %v10201_v24 = vld [vmem:[#allocation105_spill] sm:$0xff] }
 0x52e   : > { %v2557_v21 = vsel %vm6734_vm4, 1.0, %v2231_v46  ;;  %v2286_v46 = vand.u32 2147483647, %v8800_v39 }
 0x52f   : > { %v8870_v40 = vpop.eup %5793 }
 0x530   : > { %v2293_v39 = vmul.f32 %v8870_v40, %v8845_v54  ;;  %vm2287_vm9 = vcmp.eq.f32.partialorder %v2286_v46, 8.507059e+37  ;;  %vm2298_vm14 = vweird.f32 %v8870_v40 }
 0x531   : > { %4123 = vperm.xlu1 %5641, %v8851_v12   ;;  %5637 = vset.pattern.permute.xlu2 %v10090_v58  ;;  %vm2299_vm7 = vmor %vm2297_vm15, %vm2298_vm14 }
 0x533   : > { %v4011_v55 = vpop.permute.xlu1 %4010  ;;  %v4005_v44 = vpop.permute.xlu2 %4004 }
 0x534   : > { %v4172_v14 = vmul.f32 %v4147_v20, %v4011_v55  ;;  %v4171_v19 = vmul.f32 %v4147_v20, %v4005_v44  ;;  %v8875_v20 = vpop.eup %5795  ;;  %v2271_v55 = vand.u32 2147483647, %v8804_v56  ;;  %v10200_v44 = vld [vmem:[#allocation104_spill] sm:$0xff]  ;;  %v8900_v56 = vadd.f32 1e-08, %v10202_v22 }
 0x535   : > { %v2022_v53 = vmul.f32 %v10201_v24, %v10200_v44  ;;  %vm2313_vm1 = vweird.f32 %v8875_v20 }
 0x536   : > { %v8865_v9 = vmul.f32 %v4172_v14, %v2558_v48  ;;  %v8867_v16 = vmul.f32 %v4171_v19, %v2557_v21  ;;  %v2285_v14 = vsel %vm8882_vm6, %v8823_v1, %v2281_v63  ;;  %v2308_v19 = vmul.f32 %v8875_v20, %v8848_v18 }
 0x537   : > { %v2289_v48 = vor.u32 1.1754944e-38, %v2288_v51  ;;  %v2274_v21 = vor.u32 1.1754944e-38, %v2273_v11  ;;  %vm2272_vm11 = vcmp.eq.f32.partialorder %v2271_v55, 8.507059e+37  ;;  %v8902_v0 = vadd.f32 1e-08, %v2022_v53  ;;  %v10204_v51 = vld [vmem:[#allocation42_spill] sm:$0xff] }
 0x538   : > { %v2309_v1 = vsub.f32 1.0, %v2308_v19  ;;  %v2294_v63 = vsub.f32 1.0, %v2293_v39  ;;  %5797 = vrcp.f32 %v8900_v56  ;;  %vm2312_vm6 = vweird.f32 %v8848_v18 }
 0x539   : > { %5643 = vset.pattern.permute.xlu1 %v10096_v33  ;;  %4098 = vperm.xlu2 %5637, %v8418_v45   ;;  %v2270_v45 = vsel %vm2269_vm13, %v8828_v38, %v2266_v3  ;;  %v2290_v44 = vsel %vm2287_vm9, %v2289_v48, %v2285_v14  ;;  %v10203_v38 = vld [vmem:[#allocation47_spill] sm:$0xff]  ;;  %5799 = vrcp.f32 %v8902_v0  ;;  %vm2314_vm13 = vmor %vm2312_vm6, %vm2313_vm1  ;;  %vm2357_vm15 = vweird.f32 %v8902_v0 }
 0x53a   : > { %v2275_v24 = vsel %vm2272_vm11, %v2274_v21, %v2270_v45  ;;  %v2291_v3 = vmul.f32 %v2290_v44, %v10203_v38  ;;  %v2310_v46 = vmul.f32 %v8875_v20, %v2309_v1  ;;  %v2295_v55 = vmul.f32 %v8870_v40, %v2294_v63  ;;  %v10206_v63 = vld [vmem:[#allocation84_spill] sm:$0xff] }
 0x53b   : > { %v2276_v11 = vmul.f32 %v2275_v24, %v10204_v51  ;;  %v3274_v38 = vmul.f32 %v8391_v36, %v10206_v63  ;;  %v2303_v51 = vand.u32 2147483648, %v8845_v54  ;;  %v10208_v63 = vld [vmem:[#allocation99_spill] sm:$0xff] }
 0x53c   : > { %v2561_v45 = vsel %vm6734_vm4, 1.0, %v2291_v3  ;;  %v2311_v44 = vadd.f32 %v8875_v20, %v2310_v46  ;;  %v2296_v24 = vadd.f32 %v8870_v40, %v2295_v55  ;;  %v2318_v3 = vand.u32 2147483648, %v8848_v18 }
 0x53d   : > { %v2560_v19 = vsel %vm6714_vm3, 1.0, %v2276_v11  ;;  %v2316_v11 = vand.u32 2147483647, %v8848_v18 }
 0x53e   : > { %v8923_v21 = vpop.eup %5797  ;;  %v2315_v36 = vsel %vm2314_vm13, %v8875_v20, %v2311_v44  ;;  %v10209_v44 = vld [vmem:[#allocation90_spill] sm:$0xff] }
 0x53f   : > { %v8928_v1 = vpop.eup %5799  ;;  %v2338_v55 = vmul.f32 %v8923_v21, %v8900_v56  ;;  %vm2317_vm9 = vcmp.eq.f32.partialorder %v2316_v11, 8.507059e+37  ;;  %vm2343_vm1 = vweird.f32 %v8923_v21 }
 0x540   : > { %v2353_v46 = vmul.f32 %v8928_v1, %v8902_v0  ;;  %vm2358_vm14 = vweird.f32 %v8928_v1 }
 0x541   : > { %4135 = vperm.xlu1 %5643, %v8851_v12   ;;  %5640 = vset.pattern.permute.xlu2 %v10091_v62  ;;  %vm8985_vm6 = vmor %vm2357_vm15, %vm2358_vm14 }
 0x542   : > { %v2354_v20 = vsub.f32 1.0, %v2353_v46 }
 0x543   : > { %v4030_v22 = vpop.permute.xlu1 %4029  ;;  %v4024_v10 = vpop.permute.xlu2 %4023 }
 0x544   : > { %v4175_v53 = vmul.f32 %v8504_v8, %v4030_v22  ;;  %v4174_v14 = vmul.f32 %v8504_v8, %v4024_v10  ;;  %v2301_v22 = vand.u32 2147483647, %v8845_v54  ;;  %v2300_v10 = vsel %vm2299_vm7, %v8870_v40, %v2296_v24 }
 0x545   : > { %v2339_v40 = vsub.f32 1.0, %v2338_v55  ;;  %v3276_v24 = vmul.f32 %v8405_v28, %v10209_v44  ;;  %vm2342_vm7 = vweird.f32 %v8900_v56 }
 0x546   : > { %v8918_v39 = vmul.f32 %v4175_v53, %v2561_v45  ;;  %v8920_v48 = vmul.f32 %v4174_v14, %v2560_v19  ;;  %v2319_v53 = vor.u32 1.1754944e-38, %v2318_v3  ;;  %v2304_v14 = vor.u32 1.1754944e-38, %v2303_v51  ;;  %v10207_v45 = vld [vmem:[#allocation100_spill] sm:$0xff]  ;;  %v10210_v3 = vld [vmem:[#allocation49_spill] sm:$0xff]  ;;  %vm2344_vm13 = vmor %vm2342_vm7, %vm2343_vm1 }
 0x547   : > { %v8947_v19 = vadd.f32 1e-08, %v10207_v45  ;;  %vm2302_vm11 = vcmp.eq.f32.partialorder %v2301_v22, 8.507059e+37  ;;  %v10211_v45 = vld [vmem:[#allocation51_spill] sm:$0xff] }
 0x548   : > { %10205 = vst [vmem:[#allocation103_spill] sm:$0xff] %v8918_v39  ;;  %v2320_v54 = vsel %vm2317_vm9, %v2319_v53, %v2315_v36  ;;  %v2305_v18 = vsel %vm2302_vm11, %v2304_v14, %v2300_v10  ;;  %v2355_v36 = vmul.f32 %v8928_v1, %v2354_v20  ;;  %v2340_v10 = vmul.f32 %v8923_v21, %v2339_v40  ;;  %v10212_v40 = vld [vmem:[#allocation93_spill] sm:$0xff] }
 0x549   : > { %5644 = vset.pattern.permute.xlu1 %v10124_v4  ;;  %4117 = vperm.xlu2 %5640, %v8851_v12   ;;  %5801 = vrcp.f32 %v8947_v19  ;;  %v2321_v51 = vmul.f32 %v2320_v54, %v10210_v3  ;;  %v2306_v39 = vmul.f32 %v2305_v18, %v10211_v45  ;;  %v3279_v44 = vmul.f32 %v8403_v23, %v10212_v40  ;;  %v10215_v23 = vld [vmem:[#allocation94_spill] sm:$0xff]  ;;  %v10219_v3 = vld [vmem:[#allocation101_spill] sm:$0xff] }
 0x54a   : > { %3339 = vperm.xlu1 %5644, %v3274_v38   ;;  %v8950_v38 = vadd.f32 1e-08, %v10208_v63  ;;  %v2356_v63 = vadd.f32 %v8928_v1, %v2355_v36  ;;  %v2341_v20 = vadd.f32 %v8923_v21, %v2340_v10  ;;  %v2346_v45 = vand.u32 2147483647, %v8900_v56 }
 0x54b   : > { %v2563_v55 = vsel %vm6696_vm2, 1.0, %v2321_v51  ;;  %v2562_v53 = vsel %vm6774_vm5, 1.0, %v2306_v39  ;;  %v2363_v39 = vand.u32 2147483648, %v8902_v0  ;;  %v2361_v51 = vand.u32 2147483647, %v8902_v0 }
 0x54c   : > { %5803 = vrcp.f32 %v8950_v38  ;;  %v2360_v36 = vsel %vm8985_vm6, %v8928_v1, %v2356_v63  ;;  %vm2347_vm11 = vcmp.eq.f32.partialorder %v2346_v45, 8.507059e+37  ;;  %vm2387_vm1 = vweird.f32 %v8947_v19 }
 0x54d   : > { %vm2362_vm9 = vcmp.eq.f32.partialorder %v2361_v51, 8.507059e+37  ;;  %v10221_v51 = vld [vmem:[#allocation57_spill] sm:$0xff]  ;;  %vm2372_vm7 = vweird.f32 %v8950_v38 }
 0x54f   : > { %v8972_v18 = vpop.eup %5801 }
 0x550   : > { %v2383_v10 = vmul.f32 %v8972_v18, %v8947_v19  ;;  %vm2388_vm14 = vweird.f32 %v8972_v18 }
 0x551   : > { %5642 = vset.pattern.permute.xlu2 %v10092_v52  ;;  %vm9043_vm6 = vmor %vm2387_vm1, %vm2388_vm14 }
 0x552   : > { %3345 = vperm.xlu1 %5644, %v3276_v24   ;;  %v2348_v24 = vand.u32 2147483648, %v8900_v56  ;;  %v10217_v56 = vld [vmem:[#allocation115_spill] sm:$0xff]  ;;  %v2384_v1 = vsub.f32 1.0, %v2383_v10 }
 0x553   : > { %v4043_v11 = vpop.permute.xlu1 %4042  ;;  %v4036_v22 = vpop.permute.xlu2 %4035 }
 0x554   : > { %v4177_v46 = vmul.f32 %v8536_v57, %v4043_v11  ;;  %v4176_v28 = vmul.f32 %v8504_v8, %v4036_v22  ;;  %v8977_v8 = vpop.eup %5803  ;;  %v10216_v11 = vld [vmem:[#allocation97_spill] sm:$0xff] }
 0x555   : > { %v2026_v22 = vmul.f32 %v10216_v11, %v10215_v23  ;;  %v2368_v0 = vmul.f32 %v8977_v8, %v8950_v38  ;;  %v3281_v23 = vmul.f32 %v8425_v34, %v10219_v3  ;;  %vm2373_vm15 = vweird.f32 %v8977_v8 }
 0x556   : > { %v8967_v14 = vmul.f32 %v4177_v46, %v2563_v55  ;;  %v8969_v54 = vmul.f32 %v4176_v28, %v2562_v53  ;;  %v2364_v46 = vor.u32 1.1754944e-38, %v2363_v39  ;;  %v2349_v28 = vor.u32 1.1754944e-38, %v2348_v24  ;;  %v10220_v39 = vld [vmem:[#allocation60_spill] sm:$0xff] }
 0x557   : > { %v9003_v55 = vadd.f32 1e-08, %v10217_v56  ;;  %v2369_v63 = vsub.f32 1.0, %v2368_v0  ;;  %v2378_v3 = vand.u32 2147483648, %v8950_v38 }
 0x558   : > { %v2365_v53 = vsel %vm2362_vm9, %v2364_v46, %v2360_v36  ;;  %v2385_v36 = vmul.f32 %v8972_v18, %v2384_v1 }
 0x559   : > { %4129 = vperm.xlu2 %5642, %v8851_v12   ;;  %v2345_v12 = vsel %vm2344_vm13, %v8923_v21, %v2341_v20  ;;  %v10218_v21 = vld [vmem:[#allocation92_spill] sm:$0xff]  ;;  %v2366_v24 = vmul.f32 %v2365_v53, %v10220_v39  ;;  %5805 = vrcp.f32 %v9003_v55  ;;  %v2391_v39 = vand.u32 2147483647, %v8947_v19  ;;  %vm2374_vm13 = vmor %vm2372_vm7, %vm2373_vm15 }
 0x55a   : > { %3354 = vperm.xlu1 %5644, %v3279_v44   ;;  %v2350_v40 = vsel %vm2347_vm11, %v2349_v28, %v2345_v12  ;;  %v9005_v44 = vadd.f32 1e-08, %v2026_v22  ;;  %v3275_v20 = vmul.f32 %v8395_v59, %v10218_v21  ;;  %v2370_v59 = vmul.f32 %v8977_v8, %v2369_v63  ;;  %v10224_v63 = vld [vmem:[#allocation106_spill] sm:$0xff] }
 0x55b   : > { %v2351_v45 = vmul.f32 %v2350_v40, %v10221_v51  ;;  %v2566_v12 = vsel %vm6774_vm5, 1.0, %v2366_v24  ;;  %v2386_v56 = vadd.f32 %v8972_v18, %v2385_v36  ;;  %v10223_v40 = vld [vmem:[#allocation91_spill] sm:$0xff]  ;;  %v3284_v21 = vmul.f32 %v8410_v5, %v10224_v63  ;;  %v10232_v63 = vld [vmem:[#allocation50_spill] sm:$0xff] }
 0x55c   : > { %5807 = vrcp.f32 %v9005_v44  ;;  %v3278_v1 = vmul.f32 %v8414_v49, %v10223_v40  ;;  %v2376_v24 = vand.u32 2147483647, %v8950_v38  ;;  %vm2392_vm9 = vcmp.eq.f32.partialorder %v2391_v39, 8.507059e+37  ;;  %v10227_v38 = vld [vmem:[#allocation117_spill] sm:$0xff]  ;;  %v10231_v40 = vld [vmem:[#allocation54_spill] sm:$0xff] }
 0x55d   : > { %v2565_v10 = vsel %vm6734_vm4, 1.0, %v2351_v45  ;;  %v2390_v5 = vsel %vm9043_vm6, %v8972_v18, %v2386_v56  ;;  %v10230_v56 = vld [vmem:[#allocation112_spill] sm:$0xff]  ;;  %vm2432_vm1 = vweird.f32 %v9003_v55  ;;  %vm2417_vm7 = vweird.f32 %v9005_v44 }
 0x55e   : > { %vm2377_vm11 = vcmp.eq.f32.partialorder %v2376_v24, 8.507059e+37 }
 0x55f   : > { %v9029_v28 = vpop.eup %5805 }
 0x560   : > { %v2428_v51 = vmul.f32 %v9029_v28, %v9003_v55  ;;  %vm2433_vm14 = vweird.f32 %v9029_v28 }
 0x561   : > { %5645 = vset.pattern.permute.xlu2 %v10124_v4  ;;  %vm9107_vm6 = vmor %vm2432_vm1, %vm2433_vm14 }
 0x562   : > { %3360 = vperm.xlu1 %5644, %v3281_v23   ;;  %3342 = vperm.xlu2 %5645, %v3275_v20   ;;  %v9035_v53 = vpop.eup %5807  ;;  %v2393_v20 = vand.u32 2147483648, %v8947_v19  ;;  %v2429_v18 = vsub.f32 1.0, %v2428_v51 }
 0x563   : > { %v4061_v11 = vpop.permute.xlu1 %4060  ;;  %v4055_v22 = vpop.permute.xlu2 %4054  ;;  %v2413_v45 = vmul.f32 %v9035_v53, %v9005_v44  ;;  %vm2418_vm15 = vweird.f32 %v9035_v53 }
 0x564   : > { %v4180_v34 = vmul.f32 %v8536_v57, %v4061_v11  ;;  %v4179_v4 = vmul.f32 %v8536_v57, %v4055_v22  ;;  %v2371_v57 = vadd.f32 %v8977_v8, %v2370_v59  ;;  %v2394_v19 = vor.u32 1.1754944e-38, %v2393_v20  ;;  %v10233_v20 = vld [vmem:[#allocation135_spill] sm:$0xff] }
 0x565   : > { %v2379_v11 = vor.u32 1.1754944e-38, %v2378_v3  ;;  %v9059_v22 = vadd.f32 1e-08, %v10227_v38  ;;  %v1938_v3 = vperm.slane %v10233_v20, %v7055_v41 }
 0x566   : > { %v9024_v0 = vmul.f32 %v4180_v34, %v2566_v12  ;;  %v9026_v46 = vmul.f32 %v4179_v4, %v2565_v10  ;;  %v2375_v49 = vsel %vm2374_vm13, %v8977_v8, %v2371_v57  ;;  %v2395_v36 = vsel %vm2392_vm9, %v2394_v19, %v2390_v5  ;;  %v10228_v34 = vld [vmem:[#allocation116_spill] sm:$0xff]  ;;  %v10229_v12 = vld [vmem:[#allocation110_spill] sm:$0xff]  ;;  %vm2419_vm13 = vmor %vm2417_vm7, %vm2418_vm15 }
 0x567   : > { %v2380_v59 = vsel %vm2377_vm11, %v2379_v11, %v2375_v49  ;;  %v9062_v4 = vadd.f32 1e-08, %v10228_v34  ;;  %v2414_v8 = vsub.f32 1.0, %v2413_v45  ;;  %v3280_v10 = vmul.f32 %v8412_v60, %v10229_v12  ;;  %v10234_v45 = vld [vmem:[#allocation122_spill] sm:$0xff] }
 0x568   : > { %10222 = vst [vmem:[#allocation86_spill] sm:$0xff] %v9024_v0  ;;  %v3287_v57 = vmul.f32 %v8442_v2, %v10230_v56  ;;  %5809 = vrcp.f32 %v9059_v22  ;;  %v2430_v60 = vmul.f32 %v9029_v28, %v2429_v18  ;;  %v9084_v19 = vsel %vm1889_vm0, %v1938_v3, %v10234_v45 }
 0x569   : > { %5811 = vrcp.f32 %v9062_v4  ;;  %v2415_v24 = vmul.f32 %v9035_v53, %v2414_v8  ;;  %10235 = vst [vmem:[#allocation111_spill] sm:$0xff] %v9084_v19  ;;  %v10237_v8 = vld [vmem:[#allocation113_spill] sm:$0xff]  ;;  %v2436_v3 = vand.u32 2147483647, %v9003_v55  ;;  %vm2462_vm1 = vweird.f32 %v9059_v22 }
 0x56a   : > { %3369 = vperm.xlu1 %5644, %v3284_v21   ;;  %3351 = vperm.xlu2 %5645, %v3278_v1   ;;  %v2396_v1 = vmul.f32 %v2395_v36, %v10231_v40  ;;  %v2381_v21 = vmul.f32 %v2380_v59, %v10232_v63  ;;  %v2431_v59 = vadd.f32 %v9029_v28, %v2430_v60  ;;  %v2423_v40 = vand.u32 2147483648, %v9005_v44 }
 0x56b   : > { %v2416_v34 = vadd.f32 %v9035_v53, %v2415_v24  ;;  %v3283_v12 = vmul.f32 %v8435_v13, %v10237_v8  ;;  %v2421_v13 = vand.u32 2147483647, %v9005_v44  ;;  %vm2437_vm9 = vcmp.eq.f32.partialorder %v2436_v3, 8.507059e+37 }
 0x56c   : > { %v2568_v49 = vsel %vm6714_vm3, 1.0, %v2396_v1  ;;  %v2567_v51 = vsel %vm6696_vm2, 1.0, %v2381_v21  ;;  %v10239_v1 = vld [vmem:[#allocation95_spill] sm:$0xff]  ;;  %v2424_v44 = vor.u32 1.1754944e-38, %v2423_v40  ;;  %vm2447_vm7 = vweird.f32 %v9062_v4 }
 0x56d   : > { %v2032_v63 = vmul.f32 %v9084_v19, %v10239_v1  ;;  %v2420_v60 = vsel %vm2419_vm13, %v9035_v53, %v2416_v34  ;;  %vm2422_vm11 = vcmp.eq.f32.partialorder %v2421_v13, 8.507059e+37  ;;  %v10244_v34 = vld [vmem:[#allocation85_spill] sm:$0xff] }
 0x56e   : > { %v9091_v36 = vpop.eup %5809 }
 0x56f   : > { %v9097_v18 = vpop.eup %5811  ;;  %v2458_v24 = vmul.f32 %v9091_v36, %v9059_v22  ;;  %vm2463_vm14 = vweird.f32 %v9091_v36 }
 0x570   : > { %vm2448_vm15 = vweird.f32 %v9097_v18 }
 0x571   : > { %v2459_v8 = vsub.f32 1.0, %v2458_v24  ;;  %vm2449_vm13 = vmor %vm2447_vm7, %vm2448_vm15 }
 0x572   : > { %3378 = vperm.xlu1 %5644, %v3287_v57   ;;  %3357 = vperm.xlu2 %5645, %v3280_v10   ;;  %v10238_v10 = vld [vmem:[#allocation120_spill] sm:$0xff]  ;;  %v2438_v57 = vand.u32 2147483648, %v9003_v55  ;;  %v2443_v55 = vmul.f32 %v9097_v18, %v9062_v4 }
 0x573   : > { %v4074_v23 = vpop.permute.xlu1 %4073  ;;  %v4068_v39 = vpop.permute.xlu2 %4067  ;;  %v3290_v56 = vmul.f32 %v8451_v15, %v10238_v10  ;;  %v10245_v10 = vld [vmem:[#allocation56_spill] sm:$0xff]  ;;  %v2460_v21 = vmul.f32 %v9091_v36, %v2459_v8 }
 0x574   : > { %v4182_v2 = vmul.f32 %v8578_v43, %v4074_v23  ;;  %v4181_v5 = vmul.f32 %v8578_v43, %v4068_v39  ;;  %v10242_v23 = vld [vmem:[#allocation98_spill] sm:$0xff]  ;;  %v2435_v39 = vsel %vm9107_vm6, %v9029_v28, %v2431_v59  ;;  %v2444_v28 = vsub.f32 1.0, %v2443_v55  ;;  %v10243_v59 = vld [vmem:[#allocation121_spill] sm:$0xff]  ;;  %vm9163_vm6 = vmor %vm2462_vm1, %vm2463_vm14 }
 0x575   : > { %v2031_v15 = vmul.f32 %v9084_v19, %v10242_v23  ;;  %v3286_v53 = vmul.f32 %v8444_v30, %v10243_v59  ;;  %v2461_v24 = vadd.f32 %v9091_v36, %v2460_v21  ;;  %v2453_v59 = vand.u32 2147483648, %v9062_v4 }
 0x576   : > { %v9086_v11 = vmul.f32 %v4182_v2, %v2568_v49  ;;  %v9088_v38 = vmul.f32 %v4181_v5, %v2567_v51  ;;  %v2439_v2 = vor.u32 1.1754944e-38, %v2438_v57  ;;  %v9124_v5 = vadd.f32 1e-08, %v2032_v63  ;;  %v10246_v57 = vld [vmem:[#allocation62_spill] sm:$0xff] }
 0x577   : > { %v2425_v51 = vsel %vm2422_vm11, %v2424_v44, %v2420_v60  ;;  %v9126_v45 = vadd.f32 1e-08, %v2031_v15  ;;  %v2445_v3 = vmul.f32 %v9097_v18, %v2444_v28  ;;  %v2468_v28 = vand.u32 2147483648, %v9059_v22 }
 0x578   : > { %10236 = vst [vmem:[#allocation40_spill] sm:$0xff] %v9086_v11  ;;  %v2440_v49 = vsel %vm2437_vm9, %v2439_v2, %v2435_v39  ;;  %v2426_v40 = vmul.f32 %v2425_v51, %v10246_v57  ;;  %5813 = vrcp.f32 %v9124_v5  ;;  %v10249_v2 = vld [vmem:[#allocation124_spill] sm:$0xff]  ;;  %vm2507_vm1 = vweird.f32 %v9124_v5 }
 0x579   : > { %5815 = vrcp.f32 %v9126_v45  ;;  %v3289_v44 = vmul.f32 %v8423_v29, %v10249_v2  ;;  %v10251_v51 = vld [vmem:[#allocation144_spill] sm:$0xff]  ;;  %v10259_v2 = vld [vmem:[#allocation63_spill] sm:$0xff]  ;;  %vm2492_vm7 = vweird.f32 %v9126_v45 }
 0x57a   : > { %3387 = vperm.xlu1 %5644, %v3290_v56   ;;  %3366 = vperm.xlu2 %5645, %v3283_v12   ;;  %v3293_v12 = vmul.f32 %v8515_v50, %v10244_v34  ;;  %v2441_v56 = vmul.f32 %v2440_v49, %v10245_v10  ;;  %v2570_v23 = vsel %vm6774_vm5, 1.0, %v2426_v40  ;;  %v10250_v49 = vld [vmem:[#allocation126_spill] sm:$0xff]  ;;  %v2466_v34 = vand.u32 2147483647, %v9059_v22  ;;  %v10254_v10 = vld [vmem:[#allocation119_spill] sm:$0xff] }
 0x57b   : > { %v3296_v8 = vmul.f32 %v10251_v51, %v10250_v49  ;;  %v2033_v29 = vmul.f32 %v9084_v19, %v10254_v10  ;;  %v10260_v49 = vld [vmem:[#allocation59_spill] sm:$0xff]  ;;  %v10286_v19 = vld [vmem:[#allocation140_spill] sm:$0xff] }
 0x57c   : > { %v2571_v13 = vsel %vm6696_vm2, 1.0, %v2441_v56  ;;  %v2465_v56 = vsel %vm9163_vm6, %v9091_v36, %v2461_v24  ;;  %vm2467_vm9 = vcmp.eq.f32.partialorder %v2466_v34, 8.507059e+37  ;;  %v10256_v36 = vld [vmem:[#allocation150_spill] sm:$0xff]  ;;  %v10258_v24 = vld [vmem:[#allocation149_spill] sm:$0xff] }
 0x57e   : > { %v9149_v60 = vpop.eup %5813 }
 0x57f   : > { %v9155_v55 = vpop.eup %5815  ;;  %v2503_v40 = vmul.f32 %v9149_v60, %v9124_v5  ;;  %vm2508_vm14 = vweird.f32 %v9149_v60 }
 0x580   : > { %v2488_v22 = vmul.f32 %v9155_v55, %v9126_v45  ;;  %vm2493_vm15 = vweird.f32 %v9155_v55  ;;  %vm2509_vm6 = vmor %vm2507_vm1, %vm2508_vm14 }
 0x582   : > { %3396 = vperm.xlu1 %5644, %v3293_v12   ;;  %3375 = vperm.xlu2 %5645, %v3286_v53   ;;  %v2451_v12 = vand.u32 2147483647, %v9062_v4  ;;  %v2454_v4 = vor.u32 1.1754944e-38, %v2453_v59 }
 0x583   : > { %v4093_v1 = vpop.permute.xlu1 %4092  ;;  %v4086_v63 = vpop.permute.xlu2 %4085 }
 0x584   : > { %v4185_v30 = vmul.f32 %v8657_v47, %v4093_v1  ;;  %v4184_v50 = vmul.f32 %v8578_v43, %v4086_v63  ;;  %v2446_v43 = vadd.f32 %v9097_v18, %v2445_v3  ;;  %v2469_v1 = vor.u32 1.1754944e-38, %v2468_v28 }
 0x585   : > { %vm2452_vm11 = vcmp.eq.f32.partialorder %v2451_v12, 8.507059e+37  ;;  %v9180_v63 = vadd.f32 1e-08, %v2033_v29 }
 0x586   : > { %v9144_v15 = vmul.f32 %v4185_v30, %v2571_v13  ;;  %v9146_v39 = vmul.f32 %v4184_v50, %v2570_v23  ;;  %v2450_v57 = vsel %vm2449_vm13, %v9097_v18, %v2446_v43  ;;  %v2470_v21 = vsel %vm2467_vm9, %v2469_v1, %v2465_v56  ;;  %v10255_v13 = vld [vmem:[#allocation130_spill] sm:$0xff]  ;;  %v10257_v18 = vld [vmem:[#allocation127_spill] sm:$0xff]  ;;  %vm2494_vm13 = vmor %vm2492_vm7, %vm2493_vm15 }
 0x587   : > { %v2455_v3 = vsel %vm2452_vm11, %v2454_v4, %v2450_v57  ;;  %v2504_v30 = vsub.f32 1.0, %v2503_v40  ;;  %v2489_v50 = vsub.f32 1.0, %v2488_v22  ;;  %v3299_v23 = vmul.f32 %v10256_v36, %v10255_v13  ;;  %v10262_v1 = vld [vmem:[#allocation131_spill] sm:$0xff]  ;;  %v10263_v4 = vld [vmem:[#allocation148_spill] sm:$0xff] }
 0x588   : > { %10247 = vst [vmem:[#allocation38_spill] sm:$0xff] %v9144_v15  ;;  %v3292_v43 = vmul.f32 %v10258_v24, %v10257_v18  ;;  %v2456_v51 = vmul.f32 %v2455_v3, %v10260_v49  ;;  %5817 = vrcp.f32 %v9180_v63  ;;  %v10264_v3 = vld [vmem:[#allocation133_spill] sm:$0xff]  ;;  %v2513_v13 = vand.u32 2147483648, %v9124_v5 }
 0x589   : > { %10248 = vst [vmem:[#allocation114_spill] sm:$0xff] %v9146_v39  ;;  %v2505_v59 = vmul.f32 %v9149_v60, %v2504_v30  ;;  %v2490_v53 = vmul.f32 %v9155_v55, %v2489_v50  ;;  %v10265_v30 = vld [vmem:[#allocation151_spill] sm:$0xff]  ;;  %v2498_v36 = vand.u32 2147483648, %v9126_v45  ;;  %v2496_v18 = vand.u32 2147483647, %v9126_v45  ;;  %v10267_v45 = vld [vmem:[#allocation142_spill] sm:$0xff] }
 0x58a   : > { %3405 = vperm.xlu1 %5644, %v3296_v8   ;;  %3384 = vperm.xlu2 %5645, %v3289_v44   ;;  %v2471_v44 = vmul.f32 %v2470_v21, %v10259_v2  ;;  %v2572_v29 = vsel %vm6714_vm3, 1.0, %v2456_v51  ;;  %v3295_v21 = vmul.f32 %v10263_v4, %v10262_v1  ;;  %v3302_v50 = vmul.f32 %v10265_v30, %v10264_v3  ;;  %v10287_v39 = vld [vmem:[#allocation27_spill] sm:$0xff] }
 0x58b   : > { %v2506_v40 = vadd.f32 %v9149_v60, %v2505_v59  ;;  %v2491_v22 = vadd.f32 %v9155_v55, %v2490_v53  ;;  %v2499_v49 = vor.u32 1.1754944e-38, %v2498_v36  ;;  %vm2497_vm11 = vcmp.eq.f32.partialorder %v2496_v18, 8.507059e+37  ;;  %v10266_v59 = vld [vmem:[#allocation134_spill] sm:$0xff]  ;;  %v10274_v18 = vld [vmem:[#allocation137_spill] sm:$0xff] }
 0x58c   : > { %v2573_v10 = vsel %vm6734_vm4, 1.0, %v2471_v44  ;;  %v2514_v44 = vor.u32 1.1754944e-38, %v2513_v13  ;;  %v3298_v53 = vmul.f32 %v10267_v45, %v10266_v59  ;;  %vm2522_vm1 = vweird.f32 %v9180_v63  ;;  %v10278_v45 = vld [vmem:[#allocation64_spill] sm:$0xff] }
 0x58d   : > { %v2510_v24 = vsel %vm2509_vm6, %v9149_v60, %v2506_v40  ;;  %v10270_v60 = vld [vmem:[#allocation61_spill] sm:$0xff]  ;;  %vm10290_vm7 = vcmask 1042434  }
 0x592   : > { %3414 = vperm.xlu1 %5644, %v3299_v23   ;;  %3393 = vperm.xlu2 %5645, %v3292_v43   ;;  %v2511_v23 = vand.u32 2147483647, %v9124_v5  ;;  %v2495_v43 = vsel %vm2494_vm13, %v9155_v55, %v2491_v22  ;;  %v4144_v5 = vrot.slane %v8349_v6, 7  ;;  %v10271_v55 = vld [vmem:[#allocation55_spill] sm:$0xff]  ;;  %vm10291_vm13 = vcmask 1043459  }
 0x593   : > { %v4105_v8 = vpop.permute.xlu1 %4104  ;;  %v4099_v28 = vpop.permute.xlu2 %4098 }
 0x594   : > { %v4187_v34 = vmul.f32 %v8657_v47, %v4105_v8  ;;  %v4186_v12 = vmul.f32 %v8657_v47, %v4099_v28  ;;  %v5818_v47 = vpop.eup %5817  ;;  %vm2512_vm9 = vcmp.eq.f32.partialorder %v2511_v23, 8.507059e+37  ;;  %v2500_v8 = vsel %vm2497_vm11, %v2499_v49, %v2495_v43 }
 0x595   : > { %v2518_v2 = vmul.f32 %v5818_v47, %v9180_v63  ;;  %v2515_v51 = vsel %vm2512_vm9, %v2514_v44, %v2510_v24  ;;  %v2501_v40 = vmul.f32 %v2500_v8, %v10271_v55  ;;  %v4152_v22 = vperm.slane %v4144_v5, 0  ;;  %v10275_v24 = vld [vmem:[#allocation72_spill] sm:$0xff]  ;;  %v10276_v8 = vld [vmem:[#allocation138_spill] sm:$0xff] }
 0x596   : > { %v9197_v56 = vmul.f32 %v4187_v34, %v2573_v10  ;;  %v9199_v57 = vmul.f32 %v4186_v12, %v2572_v29  ;;  %v10268_v34 = vld [vmem:[#allocation136_spill] sm:$0xff]  ;;  %v10269_v12 = vld [vmem:[#allocation74_spill] sm:$0xff]  ;;  %v2516_v29 = vmul.f32 %v2515_v51, %v10270_v60  ;;  %vm2523_vm14 = vweird.f32 %v5818_v47 }
 0x597   : > { %v2519_v28 = vsub.f32 1.0, %v2518_v2  ;;  %v3305_v10 = vmul.f32 %v10269_v12, %v10268_v34  ;;  %v3301_v43 = vmul.f32 %v10275_v24, %v10274_v18  ;;  %v2528_v2 = vand.u32 2147483648, %v9180_v63  ;;  %vm2524_vm15 = vmor %vm2522_vm1, %vm2523_vm14 }
 0x598   : > { %10261 = vst [vmem:[#allocation108_spill] sm:$0xff] %v9197_v56  ;;  %v2576_v30 = vsel %vm6714_vm3, 1.0, %v2516_v29  ;;  %v2526_v44 = vand.u32 2147483647, %v9180_v63  ;;  %vm10292_vm9 = vcmask 1044484   ;;  %vm10294_vm11 = vcmask 1045509  }
 0x599   : > { %v2529_v51 = vor.u32 1.1754944e-38, %v2528_v2  ;;  %vm10296_vm14 = vcmask 1046534   ;;  %vm10299_vm1 = vcmask 261120  }
 0x59a   : > { %3423 = vperm.xlu1 %5644, %v3302_v50   ;;  %3402 = vperm.xlu2 %5645, %v3295_v21   ;;  %v2520_v21 = vmul.f32 %v5818_v47, %v2519_v28  ;;  %v2575_v50 = vsel %vm6696_vm2, 1.0, %v2501_v40  ;;  %vm2527_vm6 = vcmp.eq.f32.partialorder %v2526_v44, 8.507059e+37  ;;  %v10277_v28 = vld [vmem:[#allocation145_spill] sm:$0xff]  ;;  %v10280_v40 = vld [vmem:[#allocation30_spill] sm:$0xff] }
 0x59b   : > { %v3304_v59 = vmul.f32 %v10277_v28, %v10276_v8 }
 0x59c   : > { %v2521_v23 = vadd.f32 %v5818_v47, %v2520_v21 }
 0x59e   : > { %v2525_v49 = vsel %vm2524_vm15, %v5818_v47, %v2521_v23  ;;  %v10282_v23 = vld [vmem:[#allocation69_spill] sm:$0xff]  ;;  %vm10300_vm15 = vmmov %vm10299_vm1 }
 0x59f   : > { %v2530_v5 = vsel %vm2527_vm6, %v2529_v51, %v2525_v49 }
 0x5a2   : > { %3432 = vperm.xlu1 %5644, %v3305_v10   ;;  %3411 = vperm.xlu2 %5645, %v3298_v53   ;;  %v2531_v53 = vmul.f32 %v2530_v5, %v10278_v45 }
 0x5a3   : > { %v4124_v1 = vpop.permute.xlu1 %4123  ;;  %v4118_v4 = vpop.permute.xlu2 %4117 }
 0x5a4   : > { %v4190_v3 = vmul.f32 %v4152_v22, %v4124_v1  ;;  %v4189_v6 = vmul.f32 %v4152_v22, %v4118_v4  ;;  %v2577_v63 = vsel %vm6734_vm4, 1.0, %v2531_v53  ;;  %v10281_v4 = vld [vmem:[#allocation68_spill] sm:$0xff] }
 0x5a6   : > { %v9229_v13 = vmul.f32 %v4190_v3, %v2576_v30  ;;  %v9231_v36 = vmul.f32 %v4189_v6, %v2575_v50  ;;  %v3349_v6 = vpop.permute.xlu0 %3348 }
 0x5a8   : > { %10272 = vst [vmem:[#allocation123_spill] sm:$0xff] %v9229_v13 }
 0x5a9   : > { %10273 = vst [vmem:[#allocation45_spill] sm:$0xff] %v9231_v36 }
 0x5aa   : > { %3420 = vperm.xlu2 %5645, %v3301_v43   ;;  %5649 = vset.pattern.permute.xlu1 %v10092_v52 }
 0x5ae   : > { %v3364_v24 = vpop.permute.xlu0 %3363 }
 0x5b2   : > { %3429 = vperm.xlu2 %5645, %v3304_v59   ;;  %v3439_v59 = vperm.slane %v3349_v6, %v7055_v41 }
 0x5b3   : > { %v4136_v34 = vpop.permute.xlu1 %4135  ;;  %v4130_v12 = vpop.permute.xlu2 %4129 }
 0x5b4   : > { %v9242_v10 = vmul.f32 %v4152_v22, %v4136_v34  ;;  %v4191_v60 = vmul.f32 %v4152_v22, %v4130_v12 }
 0x5b6   : > { %10279 = vst [vmem:[#allocation46_spill] sm:$0xff] %v9242_v10  ;;  %v9246_v29 = vmul.f32 %v4191_v60, %v2577_v63  ;;  %v9259_v45 = vpop.permute.xlu0 %3372 }
 0x5ba   : > { %5648 = vset.pattern.permute.xlu2 %v10090_v58 }
 0x5bc   : > { %v3340_v47 = vpop.permute.xlu1 %3339  ;;  %v3343_v55 = vpop.permute.xlu2 %3342 }
 0x5bd   : > { %v3434_v1 = vperm.slane %v3340_v47, %v10280_v40  ;;  %v3435_v21 = vperm.slane %v3343_v55, %v10281_v4 }
 0x5bf   : > { %v3436_v3 = vsel %vm1881_vm12, %v3435_v21, %v3434_v1  ;;  %v3382_v1 = vpop.permute.xlu0 %3381 }
 0x5c4   : > { %v3346_v30 = vpop.permute.xlu1 %3345  ;;  %v3352_v50 = vpop.permute.xlu2 %3351 }
 0x5c5   : > { %v3437_v22 = vperm.slane %v3346_v30, %v10282_v23  ;;  %v3441_v44 = vperm.slane %v3352_v50, %v10280_v40 }
 0x5c7   : > { %v3438_v18 = vsel %vm1885_vm10, %v3437_v22, %v3436_v3  ;;  %v3391_v30 = vpop.permute.xlu0 %3390 }
 0x5c8   : > { %v3440_v12 = vsel %vm1889_vm0, %v3439_v59, %v3438_v18  ;;  %v10283_v18 = vld [vmem:[#allocation147_spill] sm:$0xff] }
 0x5cc   : > { %v3355_v43 = vpop.permute.xlu1 %3354  ;;  %v3358_v2 = vpop.permute.xlu2 %3357 }
 0x5cd   : > { %v3442_v49 = vperm.slane %v3355_v43, %v10281_v4  ;;  %v3444_v5 = vperm.slane %v3358_v2, %v10282_v23 }
 0x5cf   : > { %v3443_v51 = vsel %vm1881_vm12, %v3442_v49, %v3441_v44  ;;  %v3400_v22 = vpop.permute.xlu0 %3399 }
 0x5d0   : > { %v3445_v34 = vsel %vm1885_vm10, %v3444_v5, %v3443_v51  ;;  %v3710_v5 = vperm.slane %v10283_v18, %v10281_v4  ;;  %v3714_v18 = vperm.slane %v10286_v19, %v7055_v41 }
 0x5d4   : > { %v3361_v8 = vpop.permute.xlu1 %3360  ;;  %v3367_v28 = vpop.permute.xlu2 %3366 }
 0x5d5   : > { %v3446_v53 = vperm.slane %v3361_v8, %v7055_v41  ;;  %v10284_v8 = vld [vmem:[#allocation141_spill] sm:$0xff]  ;;  %v3449_v56 = vperm.slane %v3367_v28, %v10281_v4  ;;  %v3458_v28 = vperm.slane %v3382_v1, %v10282_v23 }
 0x5d6   : > { %v3709_v59 = vperm.slane %v10284_v8, %v10280_v40 }
 0x5d7   : > { %v3447_v60 = vsel %vm1889_vm0, %v3446_v53, %v3445_v34  ;;  %v3409_v51 = vpop.permute.xlu0 %3408 }
 0x5d8   : > { %v9266_v63 = vsel %vm1940_vm8, %v3447_v60, %v3440_v12  ;;  %v3711_v34 = vsel %vm1881_vm12, %v3710_v5, %v3709_v59  ;;  %v10285_v60 = vld [vmem:[#allocation139_spill] sm:$0xff]  ;;  %v3499_v5 = vmul.f32 %v10287_v39, %v10287_v39  ;;  %v3448_v59 = vperm.slane %v3364_v24, %v10280_v40 }
 0x5d9   : > { %v3712_v13 = vperm.slane %v10285_v60, %v10282_v23  ;;  %vm10289_vm8 = vcmask 1047559  }
 0x5db   : > { %v3713_v15 = vsel %vm1885_vm10, %v3712_v13, %v3711_v34 }
 0x5dc   : > { %v3370_v47 = vpop.permute.xlu1 %3369  ;;  %v3376_v55 = vpop.permute.xlu2 %3375  ;;  %v3715_v13 = vsel %vm1889_vm0, %v3714_v18, %v3713_v15  ;;  %v3469_v15 = vperm.slane %v3400_v22, %v10280_v40 }
 0x5dd   : > { %v3451_v20 = vperm.slane %v3370_v47, %v10282_v23  ;;  %v3455_v8 = vperm.slane %v3376_v55, %v10280_v40  ;;  %v3463_v47 = vperm.slane %v3391_v30, %v10281_v4  ;;  %v3450_v55 = vsel %vm1881_vm12, %v3449_v56, %v3448_v59 }
 0x5de   : > { %v3474_v59 = vperm.slane %v3409_v51, %v7055_v41 }
 0x5df   : > { %v3418_v10 = vpop.permute.xlu0 %3417  ;;  %v3452_v1 = vsel %vm1885_vm10, %v3451_v20, %v3450_v55 }
 0x5e4   : > { %v3379_v21 = vpop.permute.xlu1 %3378  ;;  %v3385_v3 = vpop.permute.xlu2 %3384 }
 0x5e5   : > { %v3456_v36 = vperm.slane %v3379_v21, %v10281_v4  ;;  %v3460_v18 = vperm.slane %v3385_v3, %v7055_v41 }
 0x5e7   : > { %v3457_v34 = vsel %vm1881_vm12, %v3456_v36, %v3455_v8  ;;  %v10288_v8 = vld [vmem:[#allocation28_spill] sm:$0xff] }
 0x5ec   : > { %v3388_v6 = vpop.permute.xlu1 %3387  ;;  %v3394_v50 = vpop.permute.xlu2 %3393 }
 0x5ed   : > { %v3462_v60 = vperm.slane %v3388_v6, %v10280_v40  ;;  %v3453_v6 = vperm.slane %v9259_v45, %v7055_v41  ;;  %v3465_v36 = vperm.slane %v3394_v50, %v10282_v23  ;;  %v3722_v50 = vsel %vm10289_vm8, %v3715_v13, %v10288_v8 }
 0x5ef   : > { %v3464_v30 = vsel %vm1881_vm12, %v3463_v47, %v3462_v60  ;;  %v3454_v60 = vsel %vm1889_vm0, %v3453_v6, %v3452_v1 }
 0x5f0   : > { %v3466_v3 = vsel %vm1885_vm10, %v3465_v36, %v3464_v30  ;;  %v3491_v51 = vsel %vm10290_vm7, %v3454_v60, %v9266_v63 }
 0x5f4   : > { %v3397_v43 = vpop.permute.xlu1 %3396  ;;  %v3403_v2 = vpop.permute.xlu2 %3402 }
 0x5f5   : > { %v3470_v19 = vperm.slane %v3403_v2, %v10281_v4  ;;  %v3459_v2 = vsel %vm1885_vm10, %v3458_v28, %v3457_v34  ;;  %v3467_v56 = vperm.slane %v3397_v43, %v7055_v41  ;;  %v3724_v34 = vadd.f32 %v3722_v50, %v3499_v5 }
 0x5f7   : > { %v3471_v45 = vsel %vm1881_vm12, %v3470_v19, %v3469_v15  ;;  %v10295_v15 = vld [vmem:[#allocation67_spill] sm:$0xff] }
 0x5f8   : > { %v3725_v1 = vmul.f32 %v3724_v34, %v10295_v15 }
 0x5fc   : > { %v3406_v44 = vpop.permute.xlu1 %3405  ;;  %v3412_v49 = vpop.permute.xlu2 %3411 }
 0x5fd   : > { %v3472_v0 = vperm.slane %v3406_v44, %v10282_v23  ;;  %v3476_v24 = vperm.slane %v3412_v49, %v10280_v40  ;;  %v3479_v49 = vperm.slane %v3418_v10, %v10282_v23  ;;  %v3461_v10 = vsel %vm1889_vm0, %v3460_v18, %v3459_v2 }
 0x5fe   : > { %v3492_v19 = vsel %vm10291_vm13, %v3461_v10, %v3491_v51 }
 0x5ff   : > { %v3473_v43 = vsel %vm1885_vm10, %v3472_v0, %v3471_v45 }
 0x600   : > { %v3475_v0 = vsel %vm1889_vm0, %v3474_v59, %v3473_v43 }
 0x604   : > { %v3415_v53 = vpop.permute.xlu1 %3414  ;;  %v3421_v12 = vpop.permute.xlu2 %3420 }
 0x605   : > { %v3477_v21 = vperm.slane %v3415_v53, %v10281_v4  ;;  %v3427_v53 = vpop.permute.xlu0 %3426 }
 0x607   : > { %v3478_v44 = vsel %vm1881_vm12, %v3477_v21, %v3476_v24  ;;  %v3484_v21 = vperm.slane %v3427_v53, %v10281_v4  ;;  %v3040_v53 = vmul.f32 %v10295_v15, %v10287_v39 }
 0x608   : > { %v3480_v28 = vsel %vm1885_vm10, %v3479_v49, %v3478_v44 }
 0x60c   : > { %v3424_v11 = vpop.permute.xlu1 %3423  ;;  %v3430_v20 = vpop.permute.xlu2 %3429 }
 0x60d   : > { %v3483_v22 = vperm.slane %v3424_v11, %v10280_v40  ;;  %v3468_v11 = vsel %vm1889_vm0, %v3467_v56, %v3466_v3  ;;  %v3481_v40 = vperm.slane %v3421_v12, %v7055_v41  ;;  %v3486_v13 = vperm.slane %v3430_v20, %v10282_v23  ;;  %v10293_v12 = vld [vmem:[#allocation29_spill] sm:$0xff]  ;;  %v10298_v56 = vld [vmem:[#allocation26_spill] sm:$0xff] }
 0x60e   : > { %v3493_v24 = vsel %vm10292_vm9, %v3468_v11, %v3492_v19  ;;  %v3918_v23 = vmul.f32 %v10293_v12, %v10287_v39  ;;  %vm10301_vm9 = vmmov %vm10299_vm1 }
 0x60f   : > { %v3485_v4 = vsel %vm1881_vm12, %v3484_v21, %v3483_v22  ;;  %v3482_v47 = vsel %vm1889_vm0, %v3481_v40, %v3480_v28  ;;  %v3494_v5 = vsel %vm10294_vm11, %v3475_v0, %v3493_v24  ;;  %vm10297_vm12 = vmmov %vm10289_vm8 }
 0x610   : > { %v3487_v63 = vsel %vm1885_vm10, %v3486_v13, %v3485_v4  ;;  %v3495_v36 = vsel %vm10296_vm14, %v3482_v47, %v3494_v5 }
 0x614   : > { %v3433_v55 = vpop.permute.xlu1 %3432 }
 0x615   : > { %v3488_v6 = vperm.slane %v3433_v55, %v7055_v41  ;;  %v3919_v41 = vmul.f32 %v3918_v23, %v10298_v56 }
 0x617   : > { %v3489_v2 = vsel %vm1889_vm0, %v3488_v6, %v3487_v63  ;;  %v3920_v49 = vadd.f32 %v3919_v41, %v3725_v1 }
 0x618   : > { %v3496_v30 = vsel %vm10297_vm12, %v3489_v2, %v3495_v36 }
 0x619   : > { %v3498_v44 = vadd.f32 %v3496_v30, %v3040_v53 }
 0x61b   : > { %v3921_v18 = vmul.f32 %v3498_v44, %v3498_v44  ;;  %5089 = vst.msk [vmem:[#allocation13] sm:$0xff] %vm10299_vm1, %v3498_v44 }
 0x61c   : > { %5483 = dma.vmem_to_hbm [thread:$0]  (%p5521_p8), %s5130_s12, 128, %s5132_s30, [#allocation4]  }
 0x61d   : > { %v3922_v45 = vsub.f32 %v3920_v49, %v3921_v18 }
 0x61f   : > { %v3923_v22 = vmax.f32 %v3922_v45, 0.0 }
 0x621   : > { %5819 = vrsqrt.f32 %v3923_v22  ;;  %vm3931_vm10 = vcmp.eq.f32.partialorder %v3923_v22, inf  ;;  %v3934_v21 = vand.u32 2147483648, %v3923_v22  ;;  %vm3933_vm0 = vcmp.eq.f32.partialorder %v3923_v22, 0.0 }
 0x627   : > { %v5820_v20 = vpop.eup %5819 }
 0x628   : > { %v3925_v8 = vmul.f32 %v5820_v20, %v3923_v22 }
 0x62a   : > { %v3926_v50 = vmul.f32 %v5820_v20, %v3925_v8 }
 0x62c   : > { %v3927_v59 = vmul.f32 0.5, %v3926_v50 }
 0x62e   : > { %v3928_v60 = vsub.f32 1.5, %v3927_v59 }
 0x630   : > { %v3929_v39 = vmul.f32 %v5820_v20, %v3928_v60 }
 0x632   : > { %v3930_v43 = vmul.f32 %v3929_v39, %v3923_v22 }
 0x634   : > { %v3932_v10 = vsel %vm3931_vm10, %v3923_v22, %v3930_v43 }
 0x635   : > { %v9340_v3 = vsel %vm3933_vm0, %v3934_v21, %v3932_v10 }
 0x636   : > { %5090 = vst.msk [vmem:[#allocation14] sm:$0xff] %vm10300_vm15, %v9340_v3  ;;  %v9345_v28 = vperm.slane %v9340_v3, 0  ;;  %v4218_v11 = vperm.slane %v9340_v3, 1  ;;  %v4243_v40 = vperm.slane %v9340_v3, 2  ;;  %v4268_v13 = vperm.slane %v9340_v3, 3 }
 0x637   : > { %v9367_v34 = vperm.slane %v9340_v3, 5  ;;  %v9374_v51 = vperm.slane %v9340_v3, 6  ;;  %v4293_v47 = vperm.slane %v9340_v3, 4  ;;  %v9383_v55 = vperm.slane %v9340_v3, 7  ;;  %5485 = dma.vmem_to_hbm [thread:$0]  (%p5521_p8), %s5142_s25, 128, %s5144_s21, [#allocation15]  }
 0x638   : > { %4210 = vperm.xlu1 %5649, %v9345_v28   ;;  %4204 = vperm.xlu2 %5648, %v9345_v28   ;;  %v4394_v59 = vrot.slane %v9340_v3, 1 }
 0x639   : > { %4198 = vperm.xlu0 %5647, %v9345_v28  }
 0x63a   : > { %v9402_v21 = vperm.slane %v4394_v59, 0 }
 0x640   : > { %5651 = vset.pattern.permute.xlu1 %v10091_v62  ;;  %5650 = vset.pattern.permute.xlu2 %v10096_v33 }
 0x641   : > { %5652 = vset.pattern.permute.xlu0 %v10090_v58 }
 0x648   : > { %4223 = vperm.xlu1 %5651, %v4218_v11   ;;  %4216 = vperm.xlu2 %5650, %v9345_v28  }
 0x649   : > { %4229 = vperm.xlu0 %5652, %v4218_v11  }
 0x650   : > { %5654 = vset.pattern.permute.xlu1 %v10096_v33  ;;  %5653 = vset.pattern.permute.xlu2 %v10092_v52 }
 0x651   : > { %5657 = vset.pattern.permute.xlu0 %v10092_v52 }
 0x658   : > { %4241 = vperm.xlu1 %5654, %v4218_v11   ;;  %4235 = vperm.xlu2 %5653, %v4218_v11  }
 0x659   : > { %4260 = vperm.xlu0 %5657, %v4243_v40  }
 0x660   : > { %5656 = vset.pattern.permute.xlu1 %v10090_v58  ;;  %5655 = vset.pattern.permute.xlu2 %v10091_v62 }
 0x661   : > { %5662 = vset.pattern.permute.xlu0 %v10096_v33 }
 0x668   : > { %4254 = vperm.xlu1 %5656, %v4243_v40   ;;  %4248 = vperm.xlu2 %5655, %v4243_v40  }
 0x669   : > { %4291 = vperm.xlu0 %5662, %v4268_v13  }
 0x670   : > { %5659 = vset.pattern.permute.xlu1 %v10091_v62  ;;  %5658 = vset.pattern.permute.xlu2 %v10096_v33 }
 0x671   : > { %5667 = vset.pattern.permute.xlu0 %v10091_v62 }
 0x678   : > { %4273 = vperm.xlu1 %5659, %v4268_v13   ;;  %4266 = vperm.xlu2 %5658, %v4243_v40  }
 0x679   : > { %4323 = vperm.xlu0 %5667, %v9367_v34  }
 0x680   : > { %5661 = vset.pattern.permute.xlu1 %v10092_v52  ;;  %5660 = vset.pattern.permute.xlu2 %v10090_v58 }
 0x681   : > { %5672 = vset.pattern.permute.xlu0 %v10090_v58 }
 0x688   : > { %4285 = vperm.xlu1 %5661, %v4268_v13   ;;  %4279 = vperm.xlu2 %5660, %v4268_v13  }
 0x689   : > { %4354 = vperm.xlu0 %5672, %v9374_v51  }
 0x690   : > { %5664 = vset.pattern.permute.xlu1 %v10090_v58  ;;  %5663 = vset.pattern.permute.xlu2 %v10091_v62 }
 0x691   : > { %5677 = vset.pattern.permute.xlu0 %v10092_v52 }
 0x692   : > { %v4205_v0 = vpop.permute.xlu2 %4204 }
 0x693   : > { %v4418_v4 = vmul.f32 %v4205_v0, %v9345_v28 }
 0x695   : > { %v4450_v19 = vadd.f32 1e-08, %v4418_v4 }
 0x697   : > { %5821 = vrcp.f32 %v4450_v19  ;;  %v4539_v23 = vand.u32 2147483648, %v4450_v19  ;;  %v4537_v63 = vand.u32 2147483647, %v4450_v19  ;;  %vm4533_vm8 = vweird.f32 %v4450_v19 }
 0x698   : > { %4304 = vperm.xlu1 %5664, %v4293_v47   ;;  %4298 = vperm.xlu2 %5663, %v4293_v47  }
 0x699   : > { %4385 = vperm.xlu0 %5677, %v9383_v55   ;;  %v4540_v53 = vor.u32 1.1754944e-38, %v4539_v23  ;;  %vm4538_vm13 = vcmp.eq.f32.partialorder %v4537_v63, 8.507059e+37 }
 0x69d   : > { %v5822_v24 = vpop.eup %5821 }
 0x69e   : > { %v4529_v6 = vmul.f32 %v5822_v24, %v4450_v19  ;;  %vm4534_vm6 = vweird.f32 %v5822_v24 }
 0x69f   : > { %vm4535_vm7 = vmor %vm4533_vm8, %vm4534_vm6 }
 0x6a0   : > { %v4530_v12 = vsub.f32 1.0, %v4529_v6  ;;  %5666 = vset.pattern.permute.xlu1 %v10096_v33  ;;  %5665 = vset.pattern.permute.xlu2 %v10092_v52 }
 0x6a1   : > { %5679 = vset.pattern.permute.xlu0 %v10096_v33 }
 0x6a2   : > { %v4531_v5 = vmul.f32 %v5822_v24, %v4530_v12  ;;  %v4217_v15 = vpop.permute.xlu2 %4216 }
 0x6a3   : > { %v4420_v1 = vmul.f32 %v4217_v15, %v9345_v28 }
 0x6a4   : > { %v4532_v36 = vadd.f32 %v5822_v24, %v4531_v5 }
 0x6a5   : > { %v4452_v2 = vadd.f32 1e-08, %v4420_v1 }
 0x6a6   : > { %v4536_v30 = vsel %vm4535_vm7, %v5822_v24, %v4532_v36  ;;  %vm10302_vm7 = vmmov %vm10301_vm9 }
 0x6a7   : > { %v4541_v56 = vsel %vm4538_vm13, %v4540_v53, %v4536_v30  ;;  %5823 = vrcp.f32 %v4452_v2  ;;  %v4569_v43 = vand.u32 2147483648, %v4452_v2  ;;  %vm4563_vm14 = vweird.f32 %v4452_v2 }
 0x6a8   : > { %v4542_v41 = vmul.f32 %v4541_v56, %v8670_v26  ;;  %4316 = vperm.xlu1 %5666, %v4293_v47   ;;  %4310 = vperm.xlu2 %5665, %v4293_v47  }
 0x6a9   : > { %v4570_v4 = vor.u32 1.1754944e-38, %v4569_v43 }
 0x6aa   : > { %v5424_v44 = vclamps-f32 %v4542_v41, 1.0  ;;  %v4211_v49 = vpop.permute.xlu1 %4210 }
 0x6ab   : > { %v4419_v18 = vmul.f32 %v4211_v49, %v9345_v28  ;;  %v4199_v45 = vpop.permute.xlu0 %4198 }
 0x6ac   : > { %v5058_v22 = vsel %vm6714_vm3, 1.0, %v5424_v44  ;;  %v4417_v20 = vmul.f32 %v4199_v45, %v9345_v28  ;;  %v4567_v28 = vand.u32 2147483647, %v4452_v2 }
 0x6ad   : > { %v5824_v8 = vpop.eup %5823  ;;  %5092 = vst.msk [vmem:[#allocation16 + $0x8] sm:$0xff] %vm10301_vm9, %v5058_v22  ;;  %v4451_v50 = vadd.f32 1e-08, %v4419_v18 }
 0x6ae   : > { %v4559_v60 = vmul.f32 %v5824_v8, %v4452_v2  ;;  %v9397_v26 = vadd.f32 1e-08, %v4417_v20  ;;  %vm4564_vm11 = vweird.f32 %v5824_v8  ;;  %vm4568_vm1 = vcmp.eq.f32.partialorder %v4567_v28, 8.507059e+37 }
 0x6af   : > { %5825 = vrcp.f32 %v4451_v50  ;;  %vm4565_vm12 = vmor %vm4563_vm14, %vm4564_vm11  ;;  %v4552_v15 = vand.u32 2147483647, %v4451_v50  ;;  %vm4548_vm10 = vweird.f32 %v4451_v50  ;;  %v4554_v1 = vand.u32 2147483648, %v4451_v50 }
 0x6b0   : > { %v4560_v39 = vsub.f32 1.0, %v4559_v60  ;;  %5827 = vrcp.f32 %v9397_v26  ;;  %5669 = vset.pattern.permute.xlu1 %v10092_v52  ;;  %5668 = vset.pattern.permute.xlu2 %v10090_v58  ;;  %vm4518_vm0 = vweird.f32 %v9397_v26  ;;  %v4524_v30 = vand.u32 2147483648, %v9397_v26 }
 0x6b1   : > { %vm4553_vm8 = vcmp.eq.f32.partialorder %v4552_v15, 8.507059e+37 }
 0x6b2   : > { %v4561_v10 = vmul.f32 %v5824_v8, %v4560_v39  ;;  %v4236_v11 = vpop.permute.xlu2 %4235  ;;  %v4395_v39 = vrot.slane %v9340_v3, 2 }
 0x6b3   : > { %v4423_v40 = vmul.f32 %v9402_v21, %v4236_v11 }
 0x6b4   : > { %v4562_v13 = vadd.f32 %v5824_v8, %v4561_v10  ;;  %v4525_v10 = vor.u32 1.1754944e-38, %v4524_v30 }
 0x6b5   : > { %v5826_v0 = vpop.eup %5825  ;;  %v9405_v19 = vadd.f32 1e-08, %v4423_v40 }
 0x6b6   : > { %v5828_v47 = vpop.eup %5827  ;;  %v4566_v24 = vsel %vm4565_vm12, %v5824_v8, %v4562_v13  ;;  %v4544_v6 = vmul.f32 %v5826_v0, %v4451_v50  ;;  %vm4549_vm15 = vweird.f32 %v5826_v0  ;;  %v4555_v8 = vor.u32 1.1754944e-38, %v4554_v1  ;;  %v10303_v50 = vld [vmem:[#allocation146_spill] sm:$0xff] }
 0x6b7   : > { %v4571_v12 = vsel %vm4568_vm1, %v4570_v4, %v4566_v24  ;;  %v4514_v23 = vmul.f32 %v5828_v47, %v9397_v26  ;;  %5829 = vrcp.f32 %v9405_v19  ;;  %vm4519_vm6 = vweird.f32 %v5828_v47  ;;  %vm4550_vm13 = vmor %vm4548_vm10, %vm4549_vm15 }
 0x6b8   : > { %v4572_v5 = vmul.f32 %v4571_v12, %v8721_v27  ;;  %v4545_v63 = vsub.f32 1.0, %v4544_v6  ;;  %4335 = vperm.xlu1 %5669, %v9367_v34   ;;  %4329 = vperm.xlu2 %5668, %v9367_v34   ;;  %v4522_v27 = vand.u32 2147483647, %v9397_v26  ;;  %vm4520_vm9 = vmor %vm4518_vm0, %vm4519_vm6  ;;  %v9437_v12 = vperm.slane %v4395_v39, 0 }
 0x6b9   : > { %v4515_v36 = vsub.f32 1.0, %v4514_v23  ;;  %vm4608_vm12 = vweird.f32 %v9405_v19  ;;  %vm10304_vm1 = vmmov %vm10302_vm7 }
 0x6ba   : > { %v5426_v53 = vclamps-f32 %v4572_v5, 1.0  ;;  %v4546_v2 = vmul.f32 %v5826_v0, %v4545_v63  ;;  %v4224_v56 = vpop.permute.xlu1 %4223  ;;  %vm4523_vm11 = vcmp.eq.f32.partialorder %v4522_v27, 8.507059e+37  ;;  %v4612_v5 = vand.u32 2147483647, %v9405_v19  ;;  %vm10305_vm0 = vmmov %vm10304_vm1 }
 0x6bb   : > { %v4516_v41 = vmul.f32 %v5828_v47, %v4515_v36  ;;  %v4421_v44 = vmul.f32 %v9402_v21, %v4224_v56  ;;  %v4230_v49 = vpop.permute.xlu0 %4229 }
 0x6bc   : > { %v5060_v18 = vsel %vm6774_vm5, 1.0, %v5426_v53  ;;  %v4547_v45 = vadd.f32 %v5826_v0, %v4546_v2  ;;  %v4422_v22 = vmul.f32 %v9402_v21, %v4230_v49  ;;  %vm4613_vm15 = vcmp.eq.f32.partialorder %v4612_v5, 8.507059e+37 }
 0x6bd   : > { %v5830_v20 = vpop.eup %5829  ;;  %5094 = vst.msk [vmem:[#allocation16 + $0x18] sm:$0xff] %vm10302_vm7, %v5060_v18  ;;  %v4517_v59 = vadd.f32 %v5828_v47, %v4516_v41  ;;  %v9421_v60 = vadd.f32 1e-08, %v4421_v44 }
 0x6be   : > { %v4551_v43 = vsel %vm4550_vm13, %v5826_v0, %v4547_v45  ;;  %v4604_v28 = vmul.f32 %v5830_v20, %v9405_v19  ;;  %v9428_v11 = vadd.f32 1e-08, %v4422_v22  ;;  %v4614_v0 = vand.u32 2147483648, %v9405_v19  ;;  %vm10306_vm13 = vmmov %vm10305_vm0 }
 0x6bf   : > { %v4556_v40 = vsel %vm4553_vm8, %v4555_v8, %v4551_v43  ;;  %v4521_v13 = vsel %vm4520_vm9, %v5828_v47, %v4517_v59  ;;  %5831 = vrcp.f32 %v9421_v60  ;;  %vm4609_vm14 = vweird.f32 %v5830_v20 }
 0x6c0   : > { %v4557_v4 = vmul.f32 %v4556_v40, %v10303_v50  ;;  %v4526_v24 = vsel %vm4523_vm11, %v4525_v10, %v4521_v13  ;;  %v4605_v6 = vsub.f32 1.0, %v4604_v28  ;;  %5671 = vset.pattern.permute.xlu1 %v10091_v62  ;;  %5670 = vset.pattern.permute.xlu2 %v10096_v33  ;;  %5833 = vrcp.f32 %v9428_v11  ;;  %vm4610_vm10 = vmor %vm4608_vm12, %vm4609_vm14 }
 0x6c1   : > { %v4527_v26 = vmul.f32 %v4526_v24, %v8672_v25  ;;  %v4615_v30 = vor.u32 1.1754944e-38, %v4614_v0  ;;  %v4582_v22 = vand.u32 2147483647, %v9421_v60  ;;  %vm4578_vm8 = vweird.f32 %v9421_v60 }
 0x6c2   : > { %v5425_v47 = vclamps-f32 %v4557_v4, 1.0  ;;  %v4606_v23 = vmul.f32 %v5830_v20, %v4605_v6  ;;  %v4249_v63 = vpop.permute.xlu2 %4248  ;;  %v4599_v10 = vand.u32 2147483648, %v9428_v11  ;;  %vm4593_vm11 = vweird.f32 %v9428_v11 }
 0x6c3   : > { %v5423_v15 = vclamps-f32 %v4527_v26, 1.0  ;;  %v4425_v1 = vmul.f32 %v9437_v12, %v4249_v63  ;;  %vm4583_vm14 = vcmp.eq.f32.partialorder %v4582_v22, 8.507059e+37 }
 0x6c4   : > { %v5059_v36 = vsel %vm6734_vm4, 1.0, %v5425_v47  ;;  %v4607_v53 = vadd.f32 %v5830_v20, %v4606_v23  ;;  %v4600_v23 = vor.u32 1.1754944e-38, %v4599_v10 }
 0x6c5   : > { %v5832_v25 = vpop.eup %5831  ;;  %5093 = vst.msk [vmem:[#allocation16 + $0x10] sm:$0xff] %vm10304_vm1, %v5059_v36  ;;  %v5057_v2 = vsel %vm6696_vm2, 1.0, %v5423_v15  ;;  %v9447_v56 = vadd.f32 1e-08, %v4425_v1 }
 0x6c6   : > { %5091 = vst.msk [vmem:[#allocation16] sm:$0xff] %vm10305_vm0, %v5057_v2  ;;  %v4611_v41 = vsel %vm4610_vm10, %v5830_v20, %v4607_v53  ;;  %v4574_v27 = vmul.f32 %v5832_v25, %v9421_v60  ;;  %v5834_v44 = vpop.eup %5833  ;;  %v4584_v20 = vand.u32 2147483648, %v9421_v60  ;;  %vm4579_vm6 = vweird.f32 %v5832_v25 }
 0x6c7   : > { %v4616_v49 = vsel %vm4613_vm15, %v4615_v30, %v4611_v41  ;;  %5835 = vrcp.f32 %v9447_v56  ;;  %v4589_v45 = vmul.f32 %v5834_v44, %v9428_v11  ;;  %vm4594_vm7 = vweird.f32 %v5834_v44  ;;  %vm4580_vm9 = vmor %vm4578_vm8, %vm4579_vm6 }
 0x6c8   : > { %v4617_v19 = vmul.f32 %v4616_v49, %v8773_v17  ;;  %v4575_v18 = vsub.f32 1.0, %v4574_v27  ;;  %4348 = vperm.xlu1 %5671, %v9374_v51   ;;  %4341 = vperm.xlu2 %5670, %v9367_v34   ;;  %v4597_v17 = vand.u32 2147483647, %v9428_v11  ;;  %v4585_v24 = vor.u32 1.1754944e-38, %v4584_v20  ;;  %vm4595_vm12 = vmor %vm4593_vm11, %vm4594_vm7 }
 0x6c9   : > { %v4590_v39 = vsub.f32 1.0, %v4589_v45  ;;  %v4642_v1 = vand.u32 2147483647, %v9447_v56  ;;  %v4644_v36 = vand.u32 2147483648, %v9447_v56  ;;  %vm4638_vm0 = vweird.f32 %v9447_v56  ;;  %vm10307_vm15 = vmmov %vm10306_vm13 }
 0x6ca   : > { %v5429_v8 = vclamps-f32 %v4617_v19, 1.0  ;;  %v4576_v59 = vmul.f32 %v5832_v25, %v4575_v18  ;;  %v4242_v43 = vpop.permute.xlu1 %4241  ;;  %vm4598_vm1 = vcmp.eq.f32.partialorder %v4597_v17, 8.507059e+37  ;;  %vm10308_vm7 = vmmov %vm10306_vm13 }
 0x6cb   : > { %v4424_v28 = vmul.f32 %v9402_v21, %v4242_v43  ;;  %v4261_v40 = vpop.permute.xlu0 %4260  ;;  %v4591_v50 = vmul.f32 %v5834_v44, %v4590_v39  ;;  %v4645_v19 = vor.u32 1.1754944e-38, %v4644_v36  ;;  %vm4643_vm8 = vcmp.eq.f32.partialorder %v4642_v1, 8.507059e+37 }
 0x6cc   : > { %v5063_v34 = vsel %vm6734_vm4, 1.0, %v5429_v8  ;;  %v4577_v13 = vadd.f32 %v5832_v25, %v4576_v59  ;;  %v4427_v6 = vmul.f32 %v9437_v12, %v4261_v40 }
 0x6cd   : > { %v5836_v4 = vpop.eup %5835  ;;  %5097 = vst.msk [vmem:[#allocation16 + $0x30] sm:$0xff] %vm10306_vm13, %v5063_v34  ;;  %v9466_v60 = vadd.f32 1e-08, %v4424_v28  ;;  %v4592_v21 = vadd.f32 %v5834_v44, %v4591_v50 }
 0x6ce   : > { %v4581_v26 = vsel %vm4580_vm9, %v5832_v25, %v4577_v13  ;;  %v4634_v0 = vmul.f32 %v5836_v4, %v9447_v56  ;;  %v9476_v53 = vadd.f32 1e-08, %v4427_v6  ;;  %vm4639_vm10 = vweird.f32 %v5836_v4 }
 0x6cf   : > { %v4586_v47 = vsel %vm4583_vm14, %v4585_v24, %v4581_v26  ;;  %5837 = vrcp.f32 %v9466_v60  ;;  %v4596_v63 = vsel %vm4595_vm12, %v5834_v44, %v4592_v21  ;;  %vm4640_vm6 = vmor %vm4638_vm0, %vm4639_vm10  ;;  %v4627_v20 = vand.u32 2147483647, %v9466_v60 }
 0x6d0   : > { %v4587_v5 = vmul.f32 %v4586_v47, %v8719_v31  ;;  %v4635_v15 = vsub.f32 1.0, %v4634_v0  ;;  %5674 = vset.pattern.permute.xlu1 %v10096_v33  ;;  %5673 = vset.pattern.permute.xlu2 %v10092_v52  ;;  %v4601_v11 = vsel %vm4598_vm1, %v4600_v23, %v4596_v63  ;;  %5839 = vrcp.f32 %v9476_v53  ;;  %vm10311_vm14 = vmmov %vm10308_vm7 }
 0x6d1   : > { %v4602_v2 = vmul.f32 %v4601_v11, %v8775_v37  ;;  %v4396_v37 = vrot.slane %v9340_v3, 3  ;;  %v4629_v8 = vand.u32 2147483648, %v9466_v60  ;;  %vm4623_vm9 = vweird.f32 %v9466_v60  ;;  %v10312_v11 = vld [vmem:[#allocation153_spill] sm:$0xff] }
 0x6d2   : > { %v5427_v25 = vclamps-f32 %v4587_v5, 1.0  ;;  %v4636_v30 = vmul.f32 %v5836_v4, %v4635_v15  ;;  %v4267_v31 = vpop.permute.xlu2 %4266  ;;  %vm9502_vm11 = vcmp.eq.f32.partialorder %v4627_v20, 8.507059e+37  ;;  %v4674_v0 = vand.u32 2147483648, %v9476_v53 }
 0x6d3   : > { %v5428_v41 = vclamps-f32 %v4602_v2, 1.0  ;;  %v4428_v44 = vmul.f32 %v9437_v12, %v4267_v31  ;;  %v9498_v10 = vperm.slane %v4396_v37, 0  ;;  %v4630_v50 = vor.u32 1.1754944e-38, %v4629_v8 }
 0x6d4   : > { %v5061_v52 = vsel %vm6696_vm2, 1.0, %v5427_v25  ;;  %v4637_v27 = vadd.f32 %v5836_v4, %v4636_v30  ;;  %vm4668_vm10 = vweird.f32 %v9476_v53  ;;  %v4675_v2 = vor.u32 1.1754944e-38, %v4674_v0 }
 0x6d5   : > { %v5838_v49 = vpop.eup %5837  ;;  %5095 = vst.msk [vmem:[#allocation16 + $0x20] sm:$0xff] %vm10307_vm15, %v5061_v52  ;;  %v5062_v18 = vsel %vm6714_vm3, 1.0, %v5428_v41  ;;  %v9492_v59 = vadd.f32 1e-08, %v4428_v44 }
 0x6d6   : > { %v4641_v56 = vsel %vm4640_vm6, %v5836_v4, %v4637_v27  ;;  %v4619_v45 = vmul.f32 %v5838_v49, %v9466_v60  ;;  %5096 = vst.msk [vmem:[#allocation16 + $0x28] sm:$0xff] %vm10308_vm7, %v5062_v18  ;;  %v5840_v17 = vpop.eup %5839  ;;  %vm4624_vm13 = vweird.f32 %v5838_v49  ;;  %v4672_v60 = vand.u32 2147483647, %v9476_v53 }
 0x6d7   : > { %v4646_v22 = vsel %vm4643_vm8, %v4645_v19, %v4641_v56  ;;  %5841 = vrcp.f32 %v9492_v59  ;;  %v4664_v34 = vmul.f32 %v5840_v17, %v9476_v53  ;;  %vm4625_vm12 = vmor %vm4623_vm9, %vm4624_vm13  ;;  %vm4669_vm1 = vweird.f32 %v5840_v17 }
 0x6d8   : > { %v4647_v39 = vmul.f32 %v4646_v22, %v8820_v32  ;;  %v4620_v43 = vsub.f32 1.0, %v4619_v45  ;;  %4366 = vperm.xlu1 %5674, %v9374_v51   ;;  %4360 = vperm.xlu2 %5673, %v9374_v51   ;;  %vm4670_vm0 = vmor %vm4668_vm10, %vm4669_vm1  ;;  %vm4673_vm15 = vcmp.eq.f32.partialorder %v4672_v60, 8.507059e+37  ;;  %v4687_v44 = vand.u32 2147483647, %v9492_v59 }
 0x6d9   : > { %v4665_v26 = vsub.f32 1.0, %v4664_v34  ;;  %v4689_v53 = vand.u32 2147483648, %v9492_v59  ;;  %vm10313_vm8 = vmmov %vm10308_vm7  ;;  %v4398_v56 = vrot.slane %v9340_v3, 5  ;;  %vm4683_vm7 = vweird.f32 %v9492_v59 }
 0x6da   : > { %v5431_v28 = vclamps-f32 %v4647_v39, 1.0  ;;  %v4621_v40 = vmul.f32 %v5838_v49, %v4620_v43  ;;  %v4255_v13 = vpop.permute.xlu1 %4254  ;;  %vm4688_vm9 = vcmp.eq.f32.partialorder %v4687_v44, 8.507059e+37 }
 0x6db   : > { %v4426_v51 = vmul.f32 %v9437_v12, %v4255_v13  ;;  %v4292_v4 = vpop.permute.xlu0 %4291  ;;  %v4666_v5 = vmul.f32 %v5840_v17, %v4665_v26  ;;  %v4690_v39 = vor.u32 1.1754944e-38, %v4689_v53  ;;  %v9548_v13 = vperm.slane %v4398_v56, 0 }
 0x6dc   : > { %v5065_v24 = vsel %vm6696_vm2, 1.0, %v5431_v28  ;;  %v4622_v6 = vadd.f32 %v5838_v49, %v4621_v40  ;;  %v4432_v21 = vmul.f32 %v9498_v10, %v4292_v4 }
 0x6dd   : > { %5099 = vst.msk [vmem:[#allocation16 + $0x40] sm:$0xff] %vm10311_vm14, %v5065_v24  ;;  %v9513_v47 = vadd.f32 1e-08, %v4426_v51  ;;  %v5842_v63 = vpop.eup %5841  ;;  %v4667_v36 = vadd.f32 %v5840_v17, %v4666_v5 }
 0x6de   : > { %v4626_v23 = vsel %vm4625_vm12, %v5838_v49, %v4622_v6  ;;  %v9515_v12 = vadd.f32 1e-08, %v4432_v21  ;;  %v4679_v25 = vmul.f32 %v5842_v63, %v9492_v59  ;;  %vm4684_vm6 = vweird.f32 %v5842_v63 }
 0x6df   : > { %v4631_v15 = vsel %vm9502_vm11, %v4630_v50, %v4626_v23  ;;  %5843 = vrcp.f32 %v9513_v47  ;;  %v4671_v31 = vsel %vm4670_vm0, %v5840_v17, %v4667_v36  ;;  %vm4685_vm13 = vmor %vm4683_vm7, %vm4684_vm6  ;;  %vm4653_vm14 = vweird.f32 %v9513_v47 }
 0x6e0   : > { %v4632_v1 = vmul.f32 %v4631_v15, %v10312_v11  ;;  %5676 = vset.pattern.permute.xlu1 %v10090_v58  ;;  %5675 = vset.pattern.permute.xlu2 %v10091_v62  ;;  %5845 = vrcp.f32 %v9515_v12  ;;  %v4680_v52 = vsub.f32 1.0, %v4679_v25  ;;  %v4676_v27 = vsel %vm4673_vm15, %v4675_v2, %v4671_v31  ;;  %vm10314_vm11 = vmmov %vm10313_vm8  ;;  %v10318_v31 = vld [vmem:[#allocation96_spill] sm:$0xff] }
 0x6e1   : > { %v4677_v62 = vmul.f32 %v4676_v27, %v8867_v16  ;;  %v4657_v16 = vand.u32 2147483647, %v9513_v47  ;;  %v4659_v34 = vand.u32 2147483648, %v9513_v47  ;;  %v4747_v6 = vand.u32 2147483647, %v9515_v12  ;;  %vm10317_vm6 = vmmov %vm10313_vm8 }
 0x6e2   : > { %v5430_v30 = vclamps-f32 %v4632_v1, 1.0  ;;  %v4280_v41 = vpop.permute.xlu2 %4279  ;;  %v4681_v19 = vmul.f32 %v5842_v63, %v4680_v52  ;;  %v4749_v26 = vand.u32 2147483648, %v9515_v12  ;;  %vm4743_vm15 = vweird.f32 %v9515_v12 }
 0x6e3   : > { %v4430_v49 = vmul.f32 %v9498_v10, %v4280_v41  ;;  %v5433_v45 = vclamps-f32 %v4677_v62, 1.0  ;;  %vm9551_vm1 = vcmp.eq.f32.partialorder %v4657_v16, 8.507059e+37  ;;  %vm4748_vm7 = vcmp.eq.f32.partialorder %v4747_v6, 8.507059e+37 }
 0x6e4   : > { %v5064_v58 = vsel %vm6774_vm5, 1.0, %v5430_v30  ;;  %v4682_v22 = vadd.f32 %v5842_v63, %v4681_v19  ;;  %v4750_v30 = vor.u32 1.1754944e-38, %v4749_v26  ;;  %v4399_v16 = vrot.slane %v9340_v3, 6 }
 0x6e5   : > { %v5844_v37 = vpop.eup %5843  ;;  %5098 = vst.msk [vmem:[#allocation16 + $0x38] sm:$0xff] %vm10313_vm8, %v5064_v58  ;;  %v9533_v18 = vadd.f32 1e-08, %v4430_v49  ;;  %v5067_v43 = vsel %vm6734_vm4, 1.0, %v5433_v45 }
 0x6e6   : > { %v4649_v20 = vmul.f32 %v5844_v37, %v9513_v47  ;;  %v5846_v8 = vpop.eup %5845  ;;  %v4686_v17 = vsel %vm4685_vm13, %v5842_v63, %v4682_v22  ;;  %5101 = vst.msk [vmem:[#allocation16 + $0x50] sm:$0xff] %vm10314_vm11, %v5067_v43  ;;  %vm4654_vm12 = vweird.f32 %v5844_v37  ;;  %v4660_v63 = vor.u32 1.1754944e-38, %v4659_v34  ;;  %vm10319_vm11 = vmmov %vm10317_vm6 }
 0x6e7   : > { %5847 = vrcp.f32 %v9533_v18  ;;  %v4739_v40 = vmul.f32 %v5846_v8, %v9515_v12  ;;  %v4691_v59 = vsel %vm4688_vm9, %v4690_v39, %v4686_v17  ;;  %vm4744_vm10 = vweird.f32 %v5846_v8  ;;  %vm4655_vm0 = vmor %vm4653_vm14, %vm4654_vm12 }
 0x6e8   : > { %v4650_v28 = vsub.f32 1.0, %v4649_v20  ;;  %4379 = vperm.xlu1 %5676, %v9383_v55   ;;  %4373 = vperm.xlu2 %5675, %v9383_v55   ;;  %v4692_v32 = vmul.f32 %v4691_v59, %v8865_v9  ;;  %vm4745_vm8 = vmor %vm4743_vm15, %vm4744_vm10  ;;  %v4397_v12 = vrot.slane %v9340_v3, 4  ;;  %v4717_v53 = vand.u32 2147483647, %v9533_v18 }
 0x6e9   : > { %v4740_v51 = vsub.f32 1.0, %v4739_v40  ;;  %v4719_v49 = vand.u32 2147483648, %v9533_v18  ;;  %vm4713_vm9 = vweird.f32 %v9533_v18 }
 0x6ea   : > { %v4651_v50 = vmul.f32 %v5844_v37, %v4650_v28  ;;  %v4274_v4 = vpop.permute.xlu1 %4273  ;;  %v5434_v0 = vclamps-f32 %v4692_v32, 1.0  ;;  %v9580_v45 = vperm.slane %v4397_v12, 0  ;;  %vm4718_vm12 = vcmp.eq.f32.partialorder %v4717_v53, 8.507059e+37 }
 0x6eb   : > { %v4429_v21 = vmul.f32 %v9498_v10, %v4274_v4  ;;  %v4324_v60 = vpop.permute.xlu0 %4323  ;;  %v4741_v5 = vmul.f32 %v5846_v8, %v4740_v51  ;;  %v9605_v4 = vperm.slane %v4399_v16, 0 }
 0x6ec   : > { %v4652_v23 = vadd.f32 %v5844_v37, %v4651_v50  ;;  %v4437_v11 = vmul.f32 %v9548_v13, %v4324_v60  ;;  %v5068_v1 = vsel %vm6774_vm5, 1.0, %v5434_v0 }
 0x6ed   : > { %v5848_v9 = vpop.eup %5847  ;;  %v9561_v15 = vadd.f32 1e-08, %v4429_v21  ;;  %v4742_v25 = vadd.f32 %v5846_v8, %v4741_v5  ;;  %5102 = vst.msk [vmem:[#allocation16 + $0x58] sm:$0xff] %vm10317_vm6, %v5068_v1 }
 0x6ee   : > { %v4656_v36 = vsel %vm4655_vm0, %v5844_v37, %v4652_v23  ;;  %v4709_v2 = vmul.f32 %v5848_v9, %v9533_v18  ;;  %v9576_v58 = vadd.f32 1e-08, %v4437_v11  ;;  %vm4714_vm13 = vweird.f32 %v5848_v9 }
 0x6ef   : > { %v4661_v47 = vsel %vm9551_vm1, %v4660_v63, %v4656_v36  ;;  %5849 = vrcp.f32 %v9561_v15  ;;  %v4746_v41 = vsel %vm4745_vm8, %v5846_v8, %v4742_v25  ;;  %vm4715_vm14 = vmor %vm4713_vm9, %vm4714_vm13  ;;  %v4702_v40 = vand.u32 2147483647, %v9561_v15 }
 0x6f0   : > { %v4662_v52 = vmul.f32 %v4661_v47, %v10318_v31  ;;  %v4710_v27 = vsub.f32 1.0, %v4709_v2  ;;  %5678 = vset.pattern.permute.xlu2 %v10096_v33  ;;  %v4751_v44 = vsel %vm4748_vm7, %v4750_v30, %v4746_v41  ;;  %5851 = vrcp.f32 %v9576_v58  ;;  %vm10320_vm1 = vmmov %vm10317_vm6  ;;  %v10324_v30 = vld [vmem:[#allocation143_spill] sm:$0xff] }
 0x6f1   : > { %v4752_v19 = vmul.f32 %v4751_v44, %v8969_v54  ;;  %v4720_v54 = vor.u32 1.1754944e-38, %v4719_v49  ;;  %v4704_v59 = vand.u32 2147483648, %v9561_v15  ;;  %vm4698_vm0 = vweird.f32 %v9561_v15  ;;  %vm10323_vm6 = vmmov %vm10320_vm1 }
 0x6f2   : > { %v5432_v62 = vclamps-f32 %v4662_v52, 1.0  ;;  %v4711_v37 = vmul.f32 %v5848_v9, %v4710_v27  ;;  %v4299_v56 = vpop.permute.xlu2 %4298  ;;  %vm9612_vm15 = vcmp.eq.f32.partialorder %v4702_v40, 8.507059e+37  ;;  %v4824_v11 = vand.u32 2147483648, %v9576_v58 }
 0x6f3   : > { %v5438_v22 = vclamps-f32 %v4752_v19, 1.0  ;;  %v4433_v39 = vmul.f32 %v9580_v45, %v4299_v56  ;;  %v4705_v21 = vor.u32 1.1754944e-38, %v4704_v59  ;;  %vm4818_vm13 = vweird.f32 %v9576_v58 }
 0x6f4   : > { %v5066_v33 = vsel %vm6714_vm3, 1.0, %v5432_v62  ;;  %v4712_v20 = vadd.f32 %v5848_v9, %v4711_v37  ;;  %v4825_v41 = vor.u32 1.1754944e-38, %v4824_v11 }
 0x6f5   : > { %v5850_v8 = vpop.eup %5849  ;;  %5100 = vst.msk [vmem:[#allocation16 + $0x48] sm:$0xff] %vm10319_vm11, %v5066_v33  ;;  %v5072_v43 = vsel %vm6774_vm5, 1.0, %v5438_v22  ;;  %v9598_v34 = vadd.f32 1e-08, %v4433_v39 }
 0x6f6   : > { %v4716_v17 = vsel %vm4715_vm14, %v5848_v9, %v4712_v20  ;;  %v4694_v28 = vmul.f32 %v5850_v8, %v9561_v15  ;;  %5106 = vst.msk [vmem:[#allocation16 + $0x78] sm:$0xff] %vm10320_vm1, %v5072_v43  ;;  %v5852_v51 = vpop.eup %5851  ;;  %vm4699_vm10 = vweird.f32 %v5850_v8  ;;  %v4822_v15 = vand.u32 2147483647, %v9576_v58 }
 0x6f7   : > { %v4721_v18 = vsel %vm4718_vm12, %v4720_v54, %v4716_v17  ;;  %5853 = vrcp.f32 %v9598_v34  ;;  %vm4700_vm8 = vmor %vm4698_vm0, %vm4699_vm10  ;;  %vm4819_vm7 = vweird.f32 %v5852_v51  ;;  %v4762_v19 = vand.u32 2147483647, %v9598_v34 }
 0x6f8   : > { %v4722_v32 = vmul.f32 %v4721_v18, %v8920_v48  ;;  %v4695_v50 = vsub.f32 1.0, %v4694_v28  ;;  %4391 = vperm.xlu2 %5678, %v9383_v55   ;;  %v4814_v48 = vmul.f32 %v5852_v51, %v9576_v58  ;;  %vm4820_vm9 = vmor %vm4818_vm13, %vm4819_vm7  ;;  %vm4823_vm11 = vcmp.eq.f32.partialorder %v4822_v15, 8.507059e+37 }
 0x6f9   : > { %v4764_v37 = vand.u32 2147483648, %v9598_v34  ;;  %vm10325_vm12 = vmmov %vm10320_vm1  ;;  %v4400_v54 = vrot.slane %v9340_v3, 7  ;;  %vm4758_vm1 = vweird.f32 %v9598_v34  ;;  %vm4763_vm0 = vcmp.eq.f32.partialorder %v4762_v19, 8.507059e+37 }
 0x6fa   : > { %v5436_v24 = vclamps-f32 %v4722_v32, 1.0  ;;  %v4696_v6 = vmul.f32 %v5850_v8, %v4695_v50  ;;  %v4286_v26 = vpop.permute.xlu1 %4285  ;;  %v4815_v9 = vsub.f32 1.0, %v4814_v48 }
 0x6fb   : > { %v4431_v60 = vmul.f32 %v9498_v10, %v4286_v26  ;;  %v4355_v0 = vpop.permute.xlu0 %4354  ;;  %v4765_v28 = vor.u32 1.1754944e-38, %v4764_v37  ;;  %v9657_v50 = vperm.slane %v4400_v54, 0 }
 0x6fc   : > { %v5070_v23 = vsel %vm6714_vm3, 1.0, %v5436_v24  ;;  %v4697_v5 = vadd.f32 %v5850_v8, %v4696_v6  ;;  %v4442_v63 = vmul.f32 %v9605_v4, %v4355_v0  ;;  %v4816_v36 = vmul.f32 %v5852_v51, %v4815_v9 }
 0x6fd   : > { %5104 = vst.msk [vmem:[#allocation16 + $0x68] sm:$0xff] %vm10323_vm6, %v5070_v23  ;;  %v9626_v10 = vadd.f32 1e-08, %v4431_v60  ;;  %v5854_v2 = vpop.eup %5853 }
 0x6fe   : > { %v4701_v1 = vsel %vm4700_vm8, %v5850_v8, %v4697_v5  ;;  %v9628_v25 = vadd.f32 1e-08, %v4442_v63  ;;  %v4817_v31 = vadd.f32 %v5852_v51, %v4816_v36  ;;  %v4754_v52 = vmul.f32 %v5854_v2, %v9598_v34 }
 0x6ff   : > { %v4706_v47 = vsel %vm9612_vm15, %v4705_v21, %v4701_v1  ;;  %5855 = vrcp.f32 %v9626_v10  ;;  %vm4759_vm14 = vweird.f32 %v5854_v2  ;;  %vm10326_vm15 = vmmov %vm10323_vm6  ;;  %vm4728_vm6 = vweird.f32 %v9626_v10 }
 0x700   : > { %v4707_v12 = vmul.f32 %v4706_v47, %v10324_v30  ;;  %5857 = vrcp.f32 %v9628_v25  ;;  %v4821_v44 = vsel %vm4820_vm9, %v5852_v51, %v4817_v31  ;;  %v4755_v53 = vsub.f32 1.0, %v4754_v52  ;;  %vm4760_vm10 = vmor %vm4758_vm1, %vm4759_vm14 }
 0x701   : > { %v4826_v62 = vsel %vm4823_vm11, %v4825_v41, %v4821_v44  ;;  %v4734_v32 = vand.u32 2147483648, %v9626_v10  ;;  %v4897_v55 = vand.u32 2147483647, %v9628_v25  ;;  %v4899_v21 = vand.u32 2147483648, %v9628_v25  ;;  %vm10329_vm14 = vmmov %vm10325_vm12 }
 0x702   : > { %v5435_v27 = vclamps-f32 %v4707_v12, 1.0  ;;  %v4311_v49 = vpop.permute.xlu2 %4310  ;;  %v4827_v33 = vmul.f32 %v4826_v62, %v9088_v38  ;;  %v4756_v22 = vmul.f32 %v5854_v2, %v4755_v53  ;;  %v4732_v38 = vand.u32 2147483647, %v9626_v10  ;;  %v10330_v12 = vld [vmem:[#allocation103_spill] sm:$0xff] }
 0x703   : > { %v4435_v56 = vmul.f32 %v9580_v45, %v4311_v49  ;;  %v4735_v63 = vor.u32 1.1754944e-38, %v4734_v32  ;;  %vm4893_vm11 = vweird.f32 %v9628_v25  ;;  %vm4898_vm1 = vcmp.eq.f32.partialorder %v4897_v55, 8.507059e+37 }
 0x704   : > { %v5069_v58 = vsel %vm6696_vm2, 1.0, %v5435_v27  ;;  %v5443_v39 = vclamps-f32 %v4827_v33, 1.0  ;;  %v4757_v16 = vadd.f32 %v5854_v2, %v4756_v22  ;;  %vm9660_vm7 = vcmp.eq.f32.partialorder %v4732_v38, 8.507059e+37 }
 0x705   : > { %v5856_v20 = vpop.eup %5855  ;;  %5103 = vst.msk [vmem:[#allocation16 + $0x60] sm:$0xff] %vm10325_vm12, %v5069_v58  ;;  %v9644_v8 = vadd.f32 1e-08, %v4435_v56 }
 0x706   : > { %v4724_v43 = vmul.f32 %v5856_v20, %v9626_v10  ;;  %v5858_v17 = vpop.eup %5857  ;;  %v5077_v18 = vsel %vm6696_vm2, 1.0, %v5443_v39  ;;  %v4761_v40 = vsel %vm4760_vm10, %v5854_v2, %v4757_v16  ;;  %vm4729_vm8 = vweird.f32 %v5856_v20 }
 0x707   : > { %5859 = vrcp.f32 %v9644_v8  ;;  %v4889_v3 = vmul.f32 %v5858_v17, %v9628_v25  ;;  %5111 = vst.msk [vmem:[#allocation16 + $0xa0] sm:$0xff] %vm10326_vm15, %v5077_v18  ;;  %v4766_v34 = vsel %vm4763_vm0, %v4765_v28, %v4761_v40  ;;  %vm4894_vm13 = vweird.f32 %v5858_v17  ;;  %vm4730_vm9 = vmor %vm4728_vm6, %vm4729_vm8 }
 0x708   : > { %v4725_v59 = vsub.f32 1.0, %v4724_v43  ;;  %v4767_v51 = vmul.f32 %v4766_v34, %v8967_v14  ;;  %vm4895_vm12 = vmor %vm4893_vm11, %vm4894_vm13  ;;  %v4900_v10 = vor.u32 1.1754944e-38, %v4899_v21  ;;  %v4792_v27 = vand.u32 2147483647, %v9644_v8 }
 0x709   : > { %v4890_v6 = vsub.f32 1.0, %v4889_v3  ;;  %v4794_v44 = vand.u32 2147483648, %v9644_v8  ;;  %vm4788_vm0 = vweird.f32 %v9644_v8  ;;  %vm10331_vm15 = vmmov %vm10329_vm14 }
 0x70a   : > { %v4726_v24 = vmul.f32 %v5856_v20, %v4725_v59  ;;  %v4305_v48 = vpop.permute.xlu1 %4304  ;;  %v5439_v23 = vclamps-f32 %v4767_v51, 1.0  ;;  %vm4793_vm8 = vcmp.eq.f32.partialorder %v4792_v27, 8.507059e+37 }
 0x70b   : > { %v4434_v60 = vmul.f32 %v9580_v45, %v4305_v48  ;;  %v4386_v0 = vpop.permute.xlu0 %4385  ;;  %v4891_v9 = vmul.f32 %v5858_v17, %v4890_v6 }
 0x70c   : > { %v4727_v5 = vadd.f32 %v5856_v20, %v4726_v24  ;;  %v4447_v11 = vmul.f32 %v9657_v50, %v4386_v0  ;;  %v5073_v1 = vsel %vm6696_vm2, 1.0, %v5439_v23 }
 0x70d   : > { %v5860_v14 = vpop.eup %5859  ;;  %v4466_v15 = vadd.f32 1e-08, %v4434_v60  ;;  %v4892_v2 = vadd.f32 %v5858_v17, %v4891_v9  ;;  %5107 = vst.msk [vmem:[#allocation16 + $0x80] sm:$0xff] %vm10329_vm14, %v5073_v1 }
 0x70e   : > { %v4731_v36 = vsel %vm4730_vm9, %v5856_v20, %v4727_v5  ;;  %v4784_v47 = vmul.f32 %v5860_v14, %v9644_v8  ;;  %v4479_v53 = vadd.f32 1e-08, %v4447_v11  ;;  %vm4789_vm10 = vweird.f32 %v5860_v14 }
 0x70f   : > { %v4736_v30 = vsel %vm9660_vm7, %v4735_v63, %v4731_v36  ;;  %5861 = vrcp.f32 %v4466_v15  ;;  %v4896_v31 = vsel %vm4895_vm12, %v5858_v17, %v4892_v2  ;;  %vm4790_vm6 = vmor %vm4788_vm0, %vm4789_vm10  ;;  %v4795_v20 = vor.u32 1.1754944e-38, %v4794_v44 }
 0x710   : > { %v4737_v25 = vmul.f32 %v4736_v30, %v10330_v12  ;;  %v4785_v52 = vsub.f32 1.0, %v4784_v47  ;;  %v4901_v41 = vsel %vm4898_vm1, %v4900_v10, %v4896_v31  ;;  %5863 = vrcp.f32 %v4479_v53  ;;  %vm10332_vm7 = vmmov %vm10329_vm14 }
 0x711   : > { %v4902_v62 = vmul.f32 %v4901_v41, %v9199_v57  ;;  %v4777_v18 = vand.u32 2147483647, %v4466_v15  ;;  %v4779_v40 = vand.u32 2147483648, %v4466_v15  ;;  %vm4773_vm9 = vweird.f32 %v4466_v15  ;;  %vm10333_vm11 = vmmov %vm10332_vm7 }
 0x712   : > { %v5437_v49 = vclamps-f32 %v4737_v25, 1.0  ;;  %v4786_v19 = vmul.f32 %v5860_v14, %v4785_v52  ;;  %v4330_v37 = vpop.permute.xlu2 %4329  ;;  %v4974_v26 = vand.u32 2147483648, %v4479_v53  ;;  %v4972_v0 = vand.u32 2147483647, %v4479_v53 }
 0x713   : > { %v5448_v58 = vclamps-f32 %v4902_v62, 1.0  ;;  %v4438_v54 = vmul.f32 %v9548_v13, %v4330_v37  ;;  %vm4778_vm12 = vcmp.eq.f32.partialorder %v4777_v18, 8.507059e+37  ;;  %vm4968_vm10 = vweird.f32 %v4479_v53 }
 0x714   : > { %v5071_v56 = vsel %vm6734_vm4, 1.0, %v5437_v49  ;;  %v4787_v33 = vadd.f32 %v5860_v14, %v4786_v19 }
 0x715   : > { %v5862_v22 = vpop.eup %5861  ;;  %5105 = vst.msk [vmem:[#allocation16 + $0x70] sm:$0xff] %vm10331_vm15, %v5071_v56  ;;  %v5082_v57 = vsel %vm6714_vm3, 1.0, %v5448_v58  ;;  %v4470_v17 = vadd.f32 1e-08, %v4438_v54  ;;  %vm4973_vm15 = vcmp.eq.f32.partialorder %v4972_v0, 8.507059e+37 }
 0x716   : > { %v4791_v39 = vsel %vm4790_vm6, %v5860_v14, %v4787_v33  ;;  %v4769_v16 = vmul.f32 %v5862_v22, %v4466_v15  ;;  %5116 = vst.msk [vmem:[#allocation16 + $0xc8] sm:$0xff] %vm10332_vm7, %v5082_v57  ;;  %v5864_v38 = vpop.eup %5863  ;;  %vm4774_vm13 = vweird.f32 %v5862_v22  ;;  %v4975_v15 = vor.u32 1.1754944e-38, %v4974_v26  ;;  %v10337_v33 = vld [vmem:[#allocation40_spill] sm:$0xff] }
 0x717   : > { %v4796_v43 = vsel %vm4793_vm8, %v4795_v20, %v4791_v39  ;;  %5865 = vrcp.f32 %v4470_v17  ;;  %v4964_v34 = vmul.f32 %v5864_v38, %v4479_v53  ;;  %vm4775_vm14 = vmor %vm4773_vm9, %vm4774_vm13  ;;  %vm4969_vm1 = vweird.f32 %v5864_v38 }
 0x718   : > { %v4797_v28 = vmul.f32 %v4796_v43, %v9026_v46  ;;  %v4770_v8 = vsub.f32 1.0, %v4769_v16  ;;  %v4780_v46 = vor.u32 1.1754944e-38, %v4779_v40  ;;  %vm4970_vm0 = vmor %vm4968_vm10, %vm4969_vm1  ;;  %v4837_v30 = vand.u32 2147483647, %v4470_v17 }
 0x719   : > { %v4965_v48 = vsub.f32 1.0, %v4964_v34  ;;  %v4839_v10 = vand.u32 2147483648, %v4470_v17  ;;  %vm10335_vm8 = vmmov %vm10332_vm7  ;;  %vm4833_vm7 = vweird.f32 %v4470_v17 }
 0x71a   : > { %v5441_v59 = vclamps-f32 %v4797_v28, 1.0  ;;  %v4771_v3 = vmul.f32 %v5862_v22, %v4770_v8  ;;  %v4317_v32 = vpop.permute.xlu1 %4316  ;;  %vm4838_vm9 = vcmp.eq.f32.partialorder %v4837_v30, 8.507059e+37 }
 0x71b   : > { %v4436_v51 = vmul.f32 %v9580_v45, %v4317_v32  ;;  %v4966_v60 = vmul.f32 %v5864_v38, %v4965_v48  ;;  %v10334_v45 = vld [vmem:[#allocation152_spill] sm:$0xff]  ;;  %v4840_v62 = vor.u32 1.1754944e-38, %v4839_v10 }
 0x71c   : > { %v5075_v24 = vsel %vm6734_vm4, 1.0, %v5441_v59  ;;  %v4772_v6 = vadd.f32 %v5862_v22, %v4771_v3  ;;  %v10339_v3 = vld [vmem:[#allocation86_spill] sm:$0xff] }
 0x71d   : > { %5109 = vst.msk [vmem:[#allocation16 + $0x90] sm:$0xff] %vm10333_vm11, %v5075_v24  ;;  %v4468_v55 = vadd.f32 1e-08, %v4436_v51  ;;  %v5866_v23 = vpop.eup %5865  ;;  %v4967_v14 = vadd.f32 %v5864_v38, %v4966_v60  ;;  %vm10336_vm11 = vmmov %vm10335_vm8 }
 0x71e   : > { %v4776_v21 = vsel %vm4775_vm14, %v5862_v22, %v4772_v6  ;;  %v4829_v63 = vmul.f32 %v5866_v23, %v4470_v17  ;;  %vm4834_vm6 = vweird.f32 %v5866_v23 }
 0x71f   : > { %v4781_v5 = vsel %vm4778_vm12, %v4780_v46, %v4776_v21  ;;  %5867 = vrcp.f32 %v4468_v55  ;;  %v4971_v1 = vsel %vm4970_vm0, %v5864_v38, %v4967_v14  ;;  %vm4835_vm13 = vmor %vm4833_vm7, %vm4834_vm6  ;;  %v4809_v58 = vand.u32 2147483648, %v4468_v55 }
 0x720   : > { %v4782_v9 = vmul.f32 %v4781_v5, %v10334_v45  ;;  %v4830_v36 = vsub.f32 1.0, %v4829_v63  ;;  %v4976_v47 = vsel %vm4973_vm15, %v4975_v15, %v4971_v1  ;;  %v4807_v54 = vand.u32 2147483647, %v4468_v55  ;;  %vm10338_vm0 = vmmov %vm10335_vm8  ;;  %v10342_v15 = vld [vmem:[#allocation135_spill] sm:$0xff] }
 0x721   : > { %v4977_v31 = vmul.f32 %v4976_v47, %v9246_v29  ;;  %vm4803_vm12 = vweird.f32 %v4468_v55  ;;  %v4810_v28 = vor.u32 1.1754944e-38, %v4809_v58 }
 0x722   : > { %v5440_v11 = vclamps-f32 %v4782_v9, 1.0  ;;  %v4342_v2 = vpop.permute.xlu2 %4341  ;;  %v4831_v52 = vmul.f32 %v5866_v23, %v4830_v36  ;;  %vm4808_vm10 = vcmp.eq.f32.partialorder %v4807_v54, 8.507059e+37  ;;  %v10341_v9 = vld [vmem:[#allocation114_spill] sm:$0xff] }
 0x723   : > { %v4440_v12 = vmul.f32 %v9548_v13, %v4342_v2  ;;  %v5453_v44 = vclamps-f32 %v4977_v31, 1.0 }
 0x724   : > { %v5074_v25 = vsel %vm6714_vm3, 1.0, %v5440_v11  ;;  %v4832_v53 = vadd.f32 %v5866_v23, %v4831_v52  ;;  %v10343_v11 = vld [vmem:[#allocation111_spill] sm:$0xff] }
 0x725   : > { %v5868_v41 = vpop.eup %5867  ;;  %5108 = vst.msk [vmem:[#allocation16 + $0x88] sm:$0xff] %vm10335_vm8, %v5074_v25  ;;  %v4472_v27 = vadd.f32 1e-08, %v4440_v12  ;;  %v5087_v19 = vsel %vm6734_vm4, 1.0, %v5453_v44  ;;  %vm10340_vm8 = vmmov %vm10338_vm0  ;;  %v2034_v1 = vmul.f32 %v10343_v11, %v10342_v15 }
 0x726   : > { %v4799_v49 = vmul.f32 %v5868_v41, %v4468_v55  ;;  %v4836_v37 = vsel %vm4835_vm13, %v5866_v23, %v4832_v53  ;;  %5121 = vst.msk [vmem:[#allocation16 + $0xf0] sm:$0xff] %vm10336_vm11, %v5087_v19  ;;  %vm4804_vm14 = vweird.f32 %v5868_v41  ;;  %v10345_v19 = vld [vmem:[#allocation102_spill] sm:$0xff] }
 0x727   : > { %5869 = vrcp.f32 %v4472_v27  ;;  %v4841_v29 = vsel %vm4838_vm9, %v4840_v62, %v4836_v37  ;;  %vm4805_vm1 = vmor %vm4803_vm12, %vm4804_vm14  ;;  %v4869_v32 = vand.u32 2147483648, %v4472_v27  ;;  %v4867_v6 = vand.u32 2147483647, %v4472_v27 }
 0x728   : > { %v4800_v56 = vsub.f32 1.0, %v4799_v49  ;;  %v4842_v22 = vmul.f32 %v4841_v29, %v10337_v33  ;;  %vm4863_vm6 = vweird.f32 %v4472_v27  ;;  %vm10344_vm14 = vmmov %vm10338_vm0 }
 0x729   : > { %v4870_v60 = vor.u32 1.1754944e-38, %v4869_v32  ;;  %vm4868_vm13 = vcmp.eq.f32.partialorder %v4867_v6, 8.507059e+37 }
 0x72a   : > { %v4801_v20 = vmul.f32 %v5868_v41, %v4800_v56  ;;  %v4336_v57 = vpop.permute.xlu1 %4335  ;;  %v5444_v16 = vclamps-f32 %v4842_v22, 1.0 }
 0x72b   : > { %v4439_v39 = vmul.f32 %v9548_v13, %v4336_v57 }
 0x72c   : > { %v4802_v43 = vadd.f32 %v5868_v41, %v4801_v20  ;;  %v5078_v38 = vsel %vm6714_vm3, 1.0, %v5444_v16 }
 0x72d   : > { %v5870_v17 = vpop.eup %5869  ;;  %v4471_v8 = vadd.f32 1e-08, %v4439_v39  ;;  %5112 = vst.msk [vmem:[#allocation16 + $0xa8] sm:$0xff] %vm10338_vm0, %v5078_v38 }
 0x72e   : > { %v4806_v18 = vsel %vm4805_vm1, %v5868_v41, %v4802_v43  ;;  %v4859_v40 = vmul.f32 %v5870_v17, %v4472_v27  ;;  %vm4864_vm15 = vweird.f32 %v5870_v17  ;;  %v9719_v41 = vadd.f32 1e-08, %v2034_v1 }
 0x72f   : > { %v4811_v59 = vsel %vm4808_vm10, %v4810_v28, %v4806_v18  ;;  %5871 = vrcp.f32 %v4471_v8  ;;  %vm4865_vm7 = vmor %vm4863_vm6, %vm4864_vm15  ;;  %v4854_v36 = vand.u32 2147483648, %v4471_v8  ;;  %v4852_v30 = vand.u32 2147483647, %v4471_v8 }
 0x730   : > { %v4812_v34 = vmul.f32 %v4811_v59, %v10339_v3  ;;  %v4860_v13 = vsub.f32 1.0, %v4859_v40  ;;  %vm4848_vm11 = vweird.f32 %v4471_v8  ;;  %vm10346_vm15 = vmmov %vm10340_vm8  ;;  %v10347_v40 = vld [vmem:[#allocation108_spill] sm:$0xff] }
 0x731   : > { %v4855_v27 = vor.u32 1.1754944e-38, %v4854_v36  ;;  %vm4853_vm1 = vcmp.eq.f32.partialorder %v4852_v30, 8.507059e+37 }
 0x732   : > { %v5442_v51 = vclamps-f32 %v4812_v34, 1.0  ;;  %v4861_v24 = vmul.f32 %v5870_v17, %v4860_v13  ;;  %v4361_v48 = vpop.permute.xlu2 %4360 }
 0x733   : > { %v4443_v46 = vmul.f32 %v9605_v4, %v4361_v48 }
 0x734   : > { %v5076_v26 = vsel %vm6774_vm5, 1.0, %v5442_v51  ;;  %v4862_v55 = vadd.f32 %v5870_v17, %v4861_v24 }
 0x735   : > { %v5872_v21 = vpop.eup %5871  ;;  %5110 = vst.msk [vmem:[#allocation16 + $0x98] sm:$0xff] %vm10340_vm8, %v5076_v26  ;;  %v4475_v0 = vadd.f32 1e-08, %v4443_v46 }
 0x736   : > { %v4866_v23 = vsel %vm4865_vm7, %v5870_v17, %v4862_v55  ;;  %v4844_v5 = vmul.f32 %v5872_v21, %v4471_v8  ;;  %vm4849_vm9 = vweird.f32 %v5872_v21 }
 0x737   : > { %v4871_v45 = vsel %vm4868_vm13, %v4870_v60, %v4866_v23  ;;  %5873 = vrcp.f32 %v4475_v0  ;;  %vm4850_vm12 = vmor %vm4848_vm11, %vm4849_vm9  ;;  %v4914_v29 = vand.u32 2147483648, %v4475_v0  ;;  %v4912_v22 = vand.u32 2147483647, %v4475_v0 }
 0x738   : > { %v4872_v14 = vmul.f32 %v4871_v45, %v10341_v9  ;;  %v4845_v63 = vsub.f32 1.0, %v4844_v5  ;;  %vm4908_vm0 = vweird.f32 %v4475_v0  ;;  %vm10348_vm9 = vmmov %vm10344_vm14  ;;  %v10349_v9 = vld [vmem:[#allocation38_spill] sm:$0xff] }
 0x739   : > { %v4915_v43 = vor.u32 1.1754944e-38, %v4914_v29  ;;  %vm4913_vm8 = vcmp.eq.f32.partialorder %v4912_v22, 8.507059e+37 }
 0x73a   : > { %v5446_v2 = vclamps-f32 %v4872_v14, 1.0  ;;  %v4846_v47 = vmul.f32 %v5872_v21, %v4845_v63  ;;  %v4349_v10 = vpop.permute.xlu1 %4348 }
 0x73b   : > { %v4441_v12 = vmul.f32 %v9605_v4, %v4349_v10 }
 0x73c   : > { %v5080_v25 = vsel %vm6774_vm5, 1.0, %v5446_v2  ;;  %v4847_v31 = vadd.f32 %v5872_v21, %v4846_v47 }
 0x73d   : > { %v5874_v52 = vpop.eup %5873  ;;  %5114 = vst.msk [vmem:[#allocation16 + $0xb8] sm:$0xff] %vm10344_vm14, %v5080_v25  ;;  %v4473_v44 = vadd.f32 1e-08, %v4441_v12 }
 0x73e   : > { %v4851_v53 = vsel %vm4850_vm12, %v5872_v21, %v4847_v31  ;;  %v4904_v49 = vmul.f32 %v5874_v52, %v4475_v0  ;;  %vm4909_vm10 = vweird.f32 %v5874_v52 }
 0x73f   : > { %v4856_v62 = vsel %vm4853_vm1, %v4855_v27, %v4851_v53  ;;  %5875 = vrcp.f32 %v4473_v44  ;;  %vm4910_vm6 = vmor %vm4908_vm0, %vm4909_vm10  ;;  %v4884_v34 = vand.u32 2147483648, %v4473_v44  ;;  %v4882_v51 = vand.u32 2147483647, %v4473_v44 }
 0x740   : > { %v4857_v37 = vmul.f32 %v4856_v62, %v10345_v19  ;;  %v4905_v56 = vsub.f32 1.0, %v4904_v49  ;;  %5877 = vrcp.f32 %v9719_v41  ;;  %vm4878_vm13 = vweird.f32 %v4473_v44  ;;  %vm10350_vm1 = vmmov %vm10348_vm9  ;;  %v10351_v49 = vld [vmem:[#allocation45_spill] sm:$0xff] }
 0x741   : > { %v4885_v21 = vor.u32 1.1754944e-38, %v4884_v34  ;;  %vm4883_vm14 = vcmp.eq.f32.partialorder %v4882_v51, 8.507059e+37  ;;  %v2543_v53 = vand.u32 2147483648, %v9719_v41 }
 0x742   : > { %v5445_v58 = vclamps-f32 %v4857_v37, 1.0  ;;  %v4906_v33 = vmul.f32 %v5874_v52, %v4905_v56  ;;  %v4374_v20 = vpop.permute.xlu2 %4373  ;;  %v2541_v37 = vand.u32 2147483647, %v9719_v41 }
 0x743   : > { %v4445_v54 = vmul.f32 %v9657_v50, %v4374_v20 }
 0x744   : > { %v5079_v57 = vsel %vm6734_vm4, 1.0, %v5445_v58  ;;  %v4907_v39 = vadd.f32 %v5874_v52, %v4906_v33 }
 0x745   : > { %v5876_v16 = vpop.eup %5875  ;;  %5113 = vst.msk [vmem:[#allocation16 + $0xb0] sm:$0xff] %vm10346_vm15, %v5079_v57  ;;  %v4477_v17 = vadd.f32 1e-08, %v4445_v54 }
 0x746   : > { %v4911_v28 = vsel %vm4910_vm6, %v5874_v52, %v4907_v39  ;;  %v4874_v8 = vmul.f32 %v5876_v16, %v4473_v44  ;;  %v9728_v38 = vpop.eup %5877  ;;  %vm4879_vm7 = vweird.f32 %v5876_v16  ;;  %vm2537_vm6 = vweird.f32 %v9719_v41 }
 0x747   : > { %v4916_v18 = vsel %vm4913_vm8, %v4915_v43, %v4911_v28  ;;  %5879 = vrcp.f32 %v4477_v17  ;;  %v2533_v6 = vmul.f32 %v9728_v38, %v9719_v41  ;;  %vm4880_vm11 = vmor %vm4878_vm13, %vm4879_vm7  ;;  %v4944_v63 = vand.u32 2147483648, %v4477_v17 }
 0x748   : > { %v4917_v59 = vmul.f32 %v4916_v18, %v10347_v40  ;;  %v4875_v3 = vsub.f32 1.0, %v4874_v8  ;;  %v4942_v11 = vand.u32 2147483647, %v4477_v17  ;;  %vm4938_vm12 = vweird.f32 %v4477_v17 }
 0x749   : > { %v2534_v5 = vsub.f32 1.0, %v2533_v6  ;;  %v4945_v12 = vor.u32 1.1754944e-38, %v4944_v63  ;;  %vm2538_vm15 = vweird.f32 %v9728_v38  ;;  %v2544_v39 = vor.u32 1.1754944e-38, %v2543_v53 }
 0x74a   : > { %v5449_v13 = vclamps-f32 %v4917_v59, 1.0  ;;  %v4876_v32 = vmul.f32 %v5876_v16, %v4875_v3  ;;  %v4367_v24 = vpop.permute.xlu1 %4366  ;;  %vm4943_vm0 = vcmp.eq.f32.partialorder %v4942_v11, 8.507059e+37  ;;  %vm9749_vm8 = vmor %vm2537_vm6, %vm2538_vm15 }
 0x74b   : > { %v4444_v48 = vmul.f32 %v9605_v4, %v4367_v24  ;;  %v2535_v36 = vmul.f32 %v9728_v38, %v2534_v5 }
 0x74c   : > { %v5083_v46 = vsel %vm6734_vm4, 1.0, %v5449_v13  ;;  %v4877_v26 = vadd.f32 %v5876_v16, %v4876_v32 }
 0x74d   : > { %v5880_v55 = vpop.eup %5879  ;;  %5117 = vst.msk [vmem:[#allocation16 + $0xd0] sm:$0xff] %vm10348_vm9, %v5083_v46  ;;  %v4476_v60 = vadd.f32 1e-08, %v4444_v48  ;;  %v2536_v27 = vadd.f32 %v9728_v38, %v2535_v36  ;;  %vm2542_vm9 = vcmp.eq.f32.partialorder %v2541_v37, 8.507059e+37 }
 0x74e   : > { %v4881_v0 = vsel %vm4880_vm11, %v5876_v16, %v4877_v26  ;;  %v4934_v23 = vmul.f32 %v5880_v55, %v4477_v17  ;;  %vm4939_vm4 = vweird.f32 %v5880_v55  ;;  %vm10354_vm11 = vmmov %vm10350_vm1 }
 0x74f   : > { %v4886_v45 = vsel %vm4883_vm14, %v4885_v21, %v4881_v0  ;;  %5881 = vrcp.f32 %v4476_v60  ;;  %vm4940_vm10 = vmor %vm4938_vm12, %vm4939_vm4  ;;  %v4929_v56 = vand.u32 2147483648, %v4476_v60  ;;  %v4927_v22 = vand.u32 2147483647, %v4476_v60  ;;  %v10357_v21 = vld [vmem:[#allocation46_spill] sm:$0xff] }
 0x750   : > { %v4887_v14 = vmul.f32 %v4886_v45, %v10349_v9  ;;  %v4935_v4 = vsub.f32 1.0, %v4934_v23  ;;  %v2540_v54 = vsel %vm9749_vm8, %v9728_v38, %v2536_v27  ;;  %vm4923_vm13 = vweird.f32 %v4476_v60  ;;  %vm10358_vm8 = vmmov %vm10350_vm1 }
 0x751   : > { %v4930_v17 = vor.u32 1.1754944e-38, %v4929_v56  ;;  %v2545_v8 = vsel %vm2542_vm9, %v2544_v39, %v2540_v54  ;;  %vm4928_vm4 = vcmp.eq.f32.partialorder %v4927_v22, 8.507059e+37 }
 0x752   : > { %v5447_v61 = vclamps-f32 %v4887_v14, 1.0  ;;  %v4936_v15 = vmul.f32 %v5880_v55, %v4935_v4  ;;  %v4392_v1 = vpop.permute.xlu2 %4391  ;;  %v2546_v34 = vmul.f32 %v2545_v8, %v10356_v42 }
 0x753   : > { %v4448_v2 = vmul.f32 %v9657_v50, %v4392_v1 }
 0x754   : > { %v5081_v47 = vsel %vm6696_vm2, 1.0, %v5447_v61  ;;  %v4937_v30 = vadd.f32 %v5880_v55, %v4936_v15  ;;  %v2578_v26 = vsel %vm6774_vm5, 1.0, %v2546_v34 }
 0x755   : > { %v5882_v10 = vpop.eup %5881  ;;  %5115 = vst.msk [vmem:[#allocation16 + $0xc0] sm:$0xff] %vm10350_vm1, %v5081_v47  ;;  %v4480_v25 = vadd.f32 1e-08, %v4448_v2  ;;  %v10359_v47 = vld [vmem:[#allocation123_spill] sm:$0xff] }
 0x756   : > { %v4941_v31 = vsel %vm4940_vm10, %v5880_v55, %v4937_v30  ;;  %v4919_v52 = vmul.f32 %v5882_v10, %v4476_v60  ;;  %vm4924_vm7 = vweird.f32 %v5882_v10  ;;  %v4512_v60 = vmul.f32 %v10357_v21, %v2578_v26 }
 0x757   : > { %v4946_v44 = vsel %vm4943_vm0, %v4945_v12, %v4941_v31  ;;  %5883 = vrcp.f32 %v4480_v25  ;;  %vm4925_vm14 = vmor %vm4923_vm13, %vm4924_vm7  ;;  %v4989_v13 = vand.u32 2147483648, %v4480_v25  ;;  %v4987_v24 = vand.u32 2147483647, %v4480_v25 }
 0x758   : > { %v4947_v62 = vmul.f32 %v4946_v44, %v10351_v49  ;;  %v4920_v19 = vsub.f32 1.0, %v4919_v52  ;;  %vm4983_vm12 = vweird.f32 %v4480_v25 }
 0x759   : > { %v4990_v55 = vor.u32 1.1754944e-38, %v4989_v13  ;;  %vm4988_vm0 = vcmp.eq.f32.partialorder %v4987_v24, 8.507059e+37 }
 0x75a   : > { %v5451_v58 = vclamps-f32 %v4947_v62, 1.0  ;;  %v4921_v33 = vmul.f32 %v5882_v10, %v4920_v19  ;;  %v4380_v20 = vpop.permute.xlu1 %4379 }
 0x75b   : > { %v4446_v57 = vmul.f32 %v9657_v50, %v4380_v20  ;;  %v10355_v50 = vld [vmem:[#allocation75_spill] sm:$0xff] }
 0x75c   : > { %v5085_v41 = vsel %vm6696_vm2, 1.0, %v5451_v58  ;;  %v4922_v16 = vadd.f32 %v5882_v10, %v4921_v33 }
 0x75d   : > { %v5884_v43 = vpop.eup %5883  ;;  %5119 = vst.msk [vmem:[#allocation16 + $0xe0] sm:$0xff] %vm10354_vm11, %v5085_v41  ;;  %v4478_v28 = vadd.f32 1e-08, %v4446_v57 }
 0x75e   : > { %v4926_v18 = vsel %vm4925_vm14, %v5882_v10, %v4922_v16  ;;  %v4979_v40 = vmul.f32 %v5884_v43, %v4480_v25  ;;  %vm4984_vm2 = vweird.f32 %v5884_v43 }
 0x75f   : > { %v4931_v38 = vsel %vm4928_vm4, %v4930_v17, %v4926_v18  ;;  %5885 = vrcp.f32 %v4478_v28  ;;  %vm4985_vm10 = vmor %vm4983_vm12, %vm4984_vm2  ;;  %v4959_v14 = vand.u32 2147483648, %v4478_v28  ;;  %v4957_v61 = vand.u32 2147483647, %v4478_v28 }
 0x760   : > { %v4932_v59 = vmul.f32 %v4931_v38, %v10355_v50  ;;  %v4980_v3 = vsub.f32 1.0, %v4979_v40  ;;  %vm4953_vm6 = vweird.f32 %v4478_v28 }
 0x761   : > { %v4960_v1 = vor.u32 1.1754944e-38, %v4959_v14  ;;  %vm4958_vm13 = vcmp.eq.f32.partialorder %v4957_v61, 8.507059e+37 }
 0x762   : > { %v5450_v32 = vclamps-f32 %v4932_v59, 1.0  ;;  %v4981_v51 = vmul.f32 %v5884_v43, %v4980_v3 }
 0x764   : > { %v5084_v6 = vsel %vm6774_vm5, 1.0, %v5450_v32  ;;  %v4982_v48 = vadd.f32 %v5884_v43, %v4981_v51 }
 0x765   : > { %v5886_v46 = vpop.eup %5885  ;;  %5118 = vst.msk [vmem:[#allocation16 + $0xd8] sm:$0xff] %vm10350_vm1, %v5084_v6 }
 0x766   : > { %v4986_v0 = vsel %vm4985_vm10, %v5884_v43, %v4982_v48  ;;  %v4949_v23 = vmul.f32 %v5886_v46, %v4478_v28  ;;  %vm4954_vm15 = vweird.f32 %v5886_v46 }
 0x767   : > { %v4991_v5 = vsel %vm4988_vm0, %v4990_v55, %v4986_v0  ;;  %vm4955_vm7 = vmor %vm4953_vm6, %vm4954_vm15 }
 0x768   : > { %v4992_v45 = vmul.f32 %v4991_v5, %v4512_v60  ;;  %v4950_v9 = vsub.f32 1.0, %v4949_v23 }
 0x76a   : > { %v5454_v4 = vclamps-f32 %v4992_v45, 1.0  ;;  %v4951_v63 = vmul.f32 %v5886_v46, %v4950_v9 }
 0x76c   : > { %v5088_v15 = vsel %vm6774_vm5, 1.0, %v5454_v4  ;;  %v4952_v11 = vadd.f32 %v5886_v46, %v4951_v63  ;;  %vm10360_vm5 = vmmov %vm10350_vm1 }
 0x76d   : > { %5122 = vst.msk [vmem:[#allocation16 + $0xf8] sm:$0xff] %vm10358_vm8, %v5088_v15 }
 0x76e   : > { %v4956_v36 = vsel %vm4955_vm7, %v5886_v46, %v4952_v11 }
 0x76f   : > { %v4961_v2 = vsel %vm4958_vm13, %v4960_v1, %v4956_v36 }
 0x770   : > { %v4962_v35 = vmul.f32 %v4961_v2, %v10359_v47 }
 0x772   : > { %v5452_v30 = vclamps-f32 %v4962_v35, 1.0 }
 0x774   : > { %v5086_v10 = vsel %vm6714_vm3, 1.0, %v5452_v30 }
 0x775   : > { %5120 = vst.msk [vmem:[#allocation16 + $0xe8] sm:$0xff] %vm10360_vm5, %v5086_v10 }
 0x776   : > { %5487 = dma.vmem_to_hbm [thread:$0]  (%p5521_p8), %s5153_s28, 4096, %s5155_s29, [#allocation15], %s6217_s24, %s6217_s24, %s6218_s26  }
 0x777   : > { %6184 = dma.done.wait (%p5521_p8), [#allocation4], 128  }
 0x778   : > { %6186 = vsyncadd (%p5521_p8), [#allocation4], 4294967168 }
 0x779   : > { %6188 = dma.done.wait (%p5521_p8), [#allocation15], 4224  }
 0x77a   : > { %6190 = vsyncadd (%p5521_p8), [#allocation15], 4294963072 }
 0x77b PF: > { %s10361_s12 = sld [smem:[#allocation24_spill]]  ;;  %s10364_s30 = smov %s6197_s10 }
 0x77c   : > { %s10362_s0 = sld [smem:[#allocation23_spill]] }
 0x77d   : > { %s10363_s11 = sld [smem:[#allocation25_spill]] }
 0x781   : > { %p27_p9 = scmp.ge.s32.totalorder %s10361_s12, 6  }
 0x782   : > { %s10365_s10 = smov %s10362_s0 }
 0x783   :  { %29 = sbr.rel (!%p27_p9) target bundleno = 13 (0xd), region = 145 }
 0x788   :  { %5181 = vsyncpa [#allocation3], 1 }
 0x789   :  { %5183 = vsyncpa [#allocation3 + $0x1], 1 }
 0x78a   :  { %5184 = vsyncpa [#allocation6], 1 }
 0x78b   :  { %5185 = vsyncpa [#allocation9], 1 }
 0x78c   :  { %5187 = vsyncpa [#allocation9 + $0x1], 1 }
 0x78d   :  { %5188 = vsyncpa [#allocation12], 1 }
 0x78e   :  { %5190 = vsyncpa [#allocation12 + $0x1], 1 }
 0x78f   :  { %5191 = vsyncpa [#allocation4], 1 }
 0x790   :  { %5193 = vsyncpa [#allocation4 + $0x1], 1 }
 0x791   :  { %5194 = vsyncpa [#allocation15], 1 }

</bundles_post_ra>
